<compile_context>
chip_gen: v6e
topology: v6e:2x2x1
jax: 0.10.0
libtpu: 0.0.40
codegen_flags: <defaults>
</compile_context>

<pallas_src>
import functools

import jax
import jax.numpy as jnp
from jax import lax
from jax.experimental import pallas as pl
from jax.experimental.pallas import tpu as pltpu


def _round_up(x, m):
    return (x + m - 1) // m * m


def _cdiv(a, b):
    return -(-a // b)


def _lstm_chunk_kernel(x_ref, w_ref, u_ref, b_ref,
                       seq_out_ref, h_out_ref, c_out_ref,
                       gx_sc, hseq_sc, h_sc, c_sc,
                       *, hidden_p, t_chunk, seq_len, mask_tail, unroll):
    """One grid step == one (batch block, time chunk) of LSTM steps.

    x_ref:       (t_chunk, Bb, Dp)  bf16 time-major inputs for this chunk
    w_ref:       (Dp, 4Hp)          bf16 stacked [w_i | w_f | w_o | w_c]
    u_ref:       (Hp, 4Hp)          bf16 stacked [u_i | u_f | u_o | u_c]
    b_ref:       (1, 4Hp)           f32 stacked biases
    seq_out_ref: (t_chunk, Bb, Hp)  bf16 hidden_seq slab for this chunk
    h_out_ref, c_out_ref: (Bb, Hp)  f32 final states (written on last chunk)
    gx_sc:       (t_chunk, Bb, 4Hp) f32 chunk input projection scratch
    hseq_sc:     (t_chunk, Bb, Hp)  f32 per-chunk hidden scratch (dense stores)
    h_sc, c_sc:  (Bb, Hp)           f32 recurrence carries (persist over chunks)
    """
    t = pl.program_id(1)

    @pl.when(t == 0)
    def _():
        h_sc[...] = jnp.zeros_like(h_sc)
        c_sc[...] = jnp.zeros_like(c_sc)

    Hp = hidden_p
    Bb = h_sc.shape[0]
    Dp = x_ref.shape[-1]

    # --- Time-parallel input projection: one big MXU matmul per chunk,
    # written to an explicit f32 VMEM scratch (per-step reads are dense). ---
    x2d = x_ref[...].reshape(t_chunk * Bb, Dp)                       # bf16
    gx = jnp.dot(x2d, w_ref[...],
                 preferred_element_type=jnp.float32) + b_ref[...]    # f32
    gx_sc[...] = gx.reshape(t_chunk, Bb, 4 * Hp)

    u = u_ref[...]                                                   # (Hp, 4Hp) bf16

    # --- Serial recurrence over the chunk: only h_prev @ U per step ---
    def step(k, carry):
        h_prev, c_prev = carry                                       # f32 (Bb, Hp)
        pre = gx_sc[k] + jnp.dot(h_prev.astype(u.dtype), u,
                                 preferred_element_type=jnp.float32)
        # Gate order [i | f | o | c]: one sigmoid over 3*Hp lanes, one tanh.
        sig = jax.nn.sigmoid(pre[:, :3 * Hp])
        i_t = sig[:, 0 * Hp:1 * Hp]
        f_t = sig[:, 1 * Hp:2 * Hp]
        o_t = sig[:, 2 * Hp:3 * Hp]
        g_t = jnp.tanh(pre[:, 3 * Hp:4 * Hp])
        c_t = f_t * c_prev + i_t * g_t
        h_t = o_t * jnp.tanh(c_t)
        if mask_tail:
            valid = (t * t_chunk + k) < seq_len
            h_t = jnp.where(valid, h_t, h_prev)
            c_t = jnp.where(valid, c_t, c_prev)
        hseq_sc[k] = h_t                                             # dense f32 store
        return h_t, c_t

    h_fin, c_fin = lax.fori_loop(0, t_chunk, step,
                                 (h_sc[...], c_sc[...]), unroll=unroll)
    h_sc[...] = h_fin
    c_sc[...] = c_fin

    # One dense bf16 store of the whole chunk's hidden states.
    seq_out_ref[...] = hseq_sc[...].astype(seq_out_ref.dtype)

    # Final-state writes only on the last chunk of this batch block.
    @pl.when(t == pl.num_programs(1) - 1)
    def _():
        h_out_ref[...] = h_fin
        c_out_ref[...] = c_fin


def custom_lstm_forward(x, w_i, u_i, b_i, w_f, u_f, b_f,
                        w_c, u_c, b_c, w_o, u_o, b_o):
    """x: (batch, seq, input_size); w_*: (D, H); u_*: (H, H); b_*: (D,).

    Returns (hidden_seq (batch, seq, H), (h_T (batch, H), c_T (batch, H))).
    """
    B, S, D = x.shape
    H = u_i.shape[0]
    # Reference module broadcasts (input_size,) biases onto (B, H) tensors.
    assert D == H, "CustomLSTM semantics require input_size == hidden_size"

    # vreg-aligned padded shapes: 8 sublanes (batch), 128 lanes (D / H).
    Bp = _round_up(B, 8)
    Dp = _round_up(D, 128)
    Hp = _round_up(H, 128)
    B_BLK = 8                       # batch block; grid axis 0 is batch-parallel
    nb = Bp // B_BLK

    # Time chunking: target M = B_BLK * t_chunk = 256 per chunk matmul (fills
    # the 256-wide MXU on v6e/v7x). Ragged tails are masked, never unrolled.
    target_chunk = 32
    n_chunks = _cdiv(S, target_chunk)
    t_chunk = _cdiv(S, n_chunks)
    Sp = n_chunks * t_chunk
    mask_tail = (Sp != S)
    unroll = True if t_chunk <= 16 else 8

    def pad2(m, r, c):
        return jnp.pad(m, ((0, r - m.shape[0]), (0, c - m.shape[1])))

    def pad1(v, n):
        return jnp.pad(v, (0, n - v.shape[0]))

    # Stack gates at 128-aligned boundaries in order [i | f | o | c].
    w = jnp.concatenate([pad2(m, Dp, Hp) for m in (w_i, w_f, w_o, w_c)], axis=1)
    u = jnp.concatenate([pad2(m, Hp, Hp) for m in (u_i, u_f, u_o, u_c)], axis=1)
    b = jnp.concatenate([pad1(v, Hp) for v in (b_i, b_f, b_o, b_c)])[None, :]

    # bf16 MXU operands; bias / carries / gate math stay f32.
    w = w.astype(jnp.bfloat16)
    u = u.astype(jnp.bfloat16)
    b = b.astype(jnp.float32)

    # Time-major padded input (Sp, Bp, Dp).
    x_tm = jnp.transpose(x, (1, 0, 2))
    x_tm = jnp.pad(x_tm, ((0, Sp - S), (0, Bp - B), (0, Dp - D)))
    x_tm = x_tm.astype(jnp.bfloat16)

    # VMEM budget (single-buffered weights + double-buffered chunk IO + scratch).
    weights_bytes = (Dp * 4 * Hp + Hp * 4 * Hp) * 2 + 4 * Hp * 4
    chunk_io_bytes = 2 * (t_chunk * B_BLK * Dp * 2) + 2 * (t_chunk * B_BLK * Hp * 2)
    scratch_bytes = (t_chunk * B_BLK * 4 * Hp * 4 + t_chunk * B_BLK * Hp * 4
                     + 2 * B_BLK * Hp * 4)
    state_bytes = 2 * 2 * B_BLK * Hp * 4
    vmem_need = weights_bytes + chunk_io_bytes + scratch_bytes + state_bytes
    vmem_limit = int(min(max(2 * vmem_need, 32 * 1024 * 1024), 96 * 1024 * 1024))

    # Advisory cost so XLA schedules around this long serial kernel.
    flops = 2 * Sp * Bp * Dp * 4 * Hp + 2 * Sp * Bp * Hp * 4 * Hp
    transcendentals = 5 * Sp * Bp * Hp
    bytes_accessed = (Sp * Bp * Dp * 2 + Sp * Bp * Hp * 2
                      + (Dp + Hp) * 4 * Hp * 2 + 4 * Hp * 4 + 2 * Bp * Hp * 4)
    cost = pl.CostEstimate(flops=flops, transcendentals=transcendentals,
                           bytes_accessed=bytes_accessed)

    kernel = functools.partial(_lstm_chunk_kernel, hidden_p=Hp, t_chunk=t_chunk,
                               seq_len=S, mask_tail=mask_tail, unroll=unroll)

    def _resident(shape, mode):
        # Constant index_map -> weights stay resident; mode=Buffered(1) avoids
        # the wasted second VMEM copy.
        if mode is None:
            return pl.BlockSpec(shape, lambda bi, ti: (0, 0))
        return pl.BlockSpec(shape, lambda bi, ti: (0, 0), pipeline_mode=mode)

    def run(weight_mode):
        return pl.pallas_call(
            kernel,
            out_shape=(
                jax.ShapeDtypeStruct((Sp, Bp, Hp), jnp.bfloat16),  # hidden_seq (t-major)
                jax.ShapeDtypeStruct((Bp, Hp), jnp.float32),       # h_T
                jax.ShapeDtypeStruct((Bp, Hp), jnp.float32),       # c_T
            ),
            grid_spec=pltpu.PrefetchScalarGridSpec(
                num_scalar_prefetch=0,
                grid=(nb, n_chunks),
                in_specs=[
                    pl.BlockSpec((t_chunk, B_BLK, Dp), lambda bi, ti: (ti, bi, 0)),
                    _resident((Dp, 4 * Hp), weight_mode),          # W (resident)
                    _resident((Hp, 4 * Hp), weight_mode),          # U (resident)
                    _resident((1, 4 * Hp), weight_mode),           # b (resident)
                ],
                out_specs=[
                    pl.BlockSpec((t_chunk, B_BLK, Hp), lambda bi, ti: (ti, bi, 0)),
                    pl.BlockSpec((B_BLK, Hp), lambda bi, ti: (bi, 0)),
                    pl.BlockSpec((B_BLK, Hp), lambda bi, ti: (bi, 0)),
                ],
                scratch_shapes=[
                    pltpu.VMEM((t_chunk, B_BLK, 4 * Hp), jnp.float32),  # gates_x
                    pltpu.VMEM((t_chunk, B_BLK, Hp), jnp.float32),      # hidden chunk
                    pltpu.VMEM((B_BLK, Hp), jnp.float32),               # h carry
                    pltpu.VMEM((B_BLK, Hp), jnp.float32),               # c carry
                ],
            ),
            compiler_params=pltpu.CompilerParams(
                # batch blocks are independent (megacore on v7x); time is serial
                dimension_semantics=("parallel", "arbitrary"),
                vmem_limit_bytes=vmem_limit),
            cost_estimate=cost,
        )(x_tm, w, u, b)

    try:
        seq_tm, h_T, c_T = run(pl.Buffered(1))
    except Exception:
        # TODO(synk): single-buffered resident weights not supported on this
        # jax version -> fall back to default (double-buffered) weights.
        seq_tm, h_T, c_T = run(None)

    # Crop padding, back to (batch, seq, hidden), f32 like the reference.
    hidden_seq = jnp.transpose(seq_tm[:S, :B, :H], (1, 0, 2)).astype(jnp.float32)
    return hidden_seq, (h_T[:B, :H], c_T[:B, :H])


def _reference_lstm(x, w_i, u_i, b_i, w_f, u_f, b_f,
                    w_c, u_c, b_c, w_o, u_o, b_o):
    """Pure-JAX f32 reference mirroring the PyTorch loop."""
    B, S, _ = x.shape
    H = u_i.shape[0]
    h = jnp.zeros((B, H), jnp.float32)
    c = jnp.zeros((B, H), jnp.float32)
    outs = []
    for t in range(S):
        x_t = x[:, t, :]
        i_t = jax.nn.sigmoid(x_t @ w_i + h @ u_i + b_i)
        f_t = jax.nn.sigmoid(x_t @ w_f + h @ u_f + b_f)
        g_t = jnp.tanh(x_t @ w_c + h @ u_c + b_c)
        o_t = jax.nn.sigmoid(x_t @ w_o + h @ u_o + b_o)
        c = f_t * c + i_t * g_t
        h = o_t * jnp.tanh(c)
        outs.append(h)
    return jnp.stack(outs, axis=1), (h, c)


if __name__ == "__main__":
    # Small shapes implied by the forward: (batch, seq, input_size),
    # input_size == hidden_size (bias broadcasting requirement).
    batch, seq, input_size, hidden_size = 2, 8, 32, 32

    key = jax.random.PRNGKey(0)
    keys = jax.random.split(key, 13)
    std = 1.0 / (hidden_size ** 0.5)

    def unif(k, shape):
        return jax.random.uniform(k, shape, jnp.float32, -std, std)

    w_i = unif(keys[0], (input_size, hidden_size))
    u_i = unif(keys[1], (hidden_size, hidden_size))
    b_i = unif(keys[2], (input_size,))
    w_f = unif(keys[3], (input_size, hidden_size))
    u_f = unif(keys[4], (hidden_size, hidden_size))
    b_f = unif(keys[5], (input_size,))
    w_c = unif(keys[6], (input_size, hidden_size))
    u_c = unif(keys[7], (hidden_size, hidden_size))
    b_c = unif(keys[8], (input_size,))
    w_o = unif(keys[9], (input_size, hidden_size))
    u_o = unif(keys[10], (hidden_size, hidden_size))
    b_o = unif(keys[11], (input_size,))

    x = jax.random.normal(keys[12], (batch, seq, input_size), jnp.float32)

    params = (w_i, u_i, b_i, w_f, u_f, b_f, w_c, u_c, b_c, w_o, u_o, b_o)

    hidden_seq, (h_T, c_T) = custom_lstm_forward(x, *params)
    jax.block_until_ready((hidden_seq, h_T, c_T))

    ref_seq, (ref_h, ref_c) = _reference_lstm(x, *params)

    assert hidden_seq.shape == (batch, seq, hidden_size)
    assert h_T.shape == (batch, hidden_size) and c_T.shape == (batch, hidden_size)
    # bf16 MXU operands / bf16 seq writeback with f32 accumulation -> relaxed
    # tolerances vs the f32 reference.
    assert jnp.allclose(hidden_seq, ref_seq, atol=5e-2, rtol=5e-2)
    assert jnp.allclose(h_T, ref_h, atol=5e-2, rtol=5e-2)
    assert jnp.allclose(c_T, ref_c, atol=5e-2, rtol=5e-2)

    print("KERNEL_OK")
</pallas_src>

<mosaic_0001>
module attributes {stable_mosaic.version = 11 : i64} {
  func.func @_lstm_chunk_kernel(%arg0: i32, %arg1: i32, %arg2: memref<8x8x128xbf16, #tpu.memory_space<vmem>>, %arg3: memref<128x512xbf16, #tpu.memory_space<vmem>>, %arg4: memref<128x512xbf16, #tpu.memory_space<vmem>>, %arg5: memref<1x512xf32, #tpu.memory_space<vmem>>, %arg6: memref<8x8x128xbf16, #tpu.memory_space<vmem>>, %arg7: memref<8x128xf32, #tpu.memory_space<vmem>>, %arg8: memref<8x128xf32, #tpu.memory_space<vmem>>, %arg9: memref<8x8x512xf32, #tpu.memory_space<vmem>>, %arg10: memref<8x8x128xf32, #tpu.memory_space<vmem>>, %arg11: memref<8x128xf32, #tpu.memory_space<vmem>>, %arg12: memref<8x128xf32, #tpu.memory_space<vmem>>) attributes {dimension_semantics = [#tpu.dimension_semantics<parallel>, #tpu.dimension_semantics<arbitrary>], iteration_bounds = array<i64: 1, 1>, scalar_prefetch = 0 : i64, scratch_operands = 4 : i64, tpu.core_type = #tpu.core_type<tc>, window_params = [{transform_indices = @transform_0, window_bounds = array<i64: 8, 8, 128>}, {pipeline_mode = #tpu.pipeline_mode<synchronous>, transform_indices = @transform_1, window_bounds = array<i64: 128, 512>}, {pipeline_mode = #tpu.pipeline_mode<synchronous>, transform_indices = @transform_2, window_bounds = array<i64: 128, 512>}, {pipeline_mode = #tpu.pipeline_mode<synchronous>, transform_indices = @transform_3, window_bounds = array<i64: 1, 512>}, {transform_indices = @transform_4, window_bounds = array<i64: 8, 8, 128>}, {transform_indices = @transform_5, window_bounds = array<i64: 8, 128>}, {transform_indices = @transform_6, window_bounds = array<i64: 8, 128>}]} {
    %c0_i32 = arith.constant 0 : i32
    %0 = arith.cmpi eq, %arg1, %c0_i32 : i32
    %1 = arith.extui %0 : i1 to i32
    %c0_i32_0 = arith.constant 0 : i32
    %2 = arith.cmpi ne, %1, %c0_i32_0 : i32
    scf.if %2 {
      %cst_77 = arith.constant 0.000000e+00 : f32
      %231 = vector.broadcast %cst_77 : f32 to vector<8x128xf32>
      %c0_78 = arith.constant 0 : index
      %c0_79 = arith.constant 0 : index
      %232 = vector.load %arg11[%c0_78, %c0_79] : memref<8x128xf32, #tpu.memory_space<vmem>>, vector<8x128xf32>
      tpu.vector_store %arg11[%c0_78, %c0_79], %231 {strides = array<i32>} : memref<8x128xf32, #tpu.memory_space<vmem>>, vector<8x128xf32>,
      %cst_80 = arith.constant 0.000000e+00 : f32
      %233 = vector.broadcast %cst_80 : f32 to vector<8x128xf32>
      %c0_81 = arith.constant 0 : index
      %c0_82 = arith.constant 0 : index
      %234 = vector.load %arg12[%c0_81, %c0_82] : memref<8x128xf32, #tpu.memory_space<vmem>>, vector<8x128xf32>
      tpu.vector_store %arg12[%c0_81, %c0_82], %233 {strides = array<i32>} : memref<8x128xf32, #tpu.memory_space<vmem>>, vector<8x128xf32>,
    } else {
    }
    %c0 = arith.constant 0 : index
    %c0_1 = arith.constant 0 : index
    %c0_2 = arith.constant 0 : index
    %3 = vector.load %arg2[%c0, %c0_1, %c0_2] : memref<8x8x128xbf16, #tpu.memory_space<vmem>>, vector<8x8x128xbf16>
    %4 = vector.shape_cast %3 : vector<8x8x128xbf16> to vector<64x128xbf16>
    %c0_3 = arith.constant 0 : index
    %c0_4 = arith.constant 0 : index
    %5 = vector.load %arg3[%c0_3, %c0_4] : memref<128x512xbf16, #tpu.memory_space<vmem>>, vector<128x512xbf16>
    %cst = arith.constant dense<0.000000e+00> : vector<64x512xf32>
    %6 = tpu.matmul %4, %5, %cst {dimension_numbers = #tpu.dot_dimension_numbers<[1], [0], [0], [1], [0, 0, 1, 1], [], []>} : vector<64x128xbf16>, vector<128x512xbf16>, vector<64x512xf32> -> vector<64x512xf32>
    %c0_5 = arith.constant 0 : index
    %c0_6 = arith.constant 0 : index
    %7 = vector.load %arg5[%c0_5, %c0_6] : memref<1x512xf32, #tpu.memory_space<vmem>>, vector<1x512xf32>
    %8 = vector.broadcast %7 : vector<1x512xf32> to vector<64x512xf32>
    %9 = arith.addf %6, %8 : vector<64x512xf32>
    %10 = vector.shape_cast %9 : vector<64x512xf32> to vector<8x8x512xf32>
    %c0_7 = arith.constant 0 : index
    %c0_8 = arith.constant 0 : index
    %c0_9 = arith.constant 0 : index
    %11 = vector.load %arg9[%c0_7, %c0_8, %c0_9] : memref<8x8x512xf32, #tpu.memory_space<vmem>>, vector<8x8x512xf32>
    tpu.vector_store %arg9[%c0_7, %c0_8, %c0_9], %10 {strides = array<i32>} : memref<8x8x512xf32, #tpu.memory_space<vmem>>, vector<8x8x512xf32>,
    %c0_10 = arith.constant 0 : index
    %c0_11 = arith.constant 0 : index
    %12 = vector.load %arg4[%c0_10, %c0_11] : memref<128x512xbf16, #tpu.memory_space<vmem>>, vector<128x512xbf16>
    %c0_12 = arith.constant 0 : index
    %c0_13 = arith.constant 0 : index
    %13 = vector.load %arg11[%c0_12, %c0_13] : memref<8x128xf32, #tpu.memory_space<vmem>>, vector<8x128xf32>
    %c0_14 = arith.constant 0 : index
    %c0_15 = arith.constant 0 : index
    %14 = vector.load %arg12[%c0_14, %c0_15] : memref<8x128xf32, #tpu.memory_space<vmem>>, vector<8x128xf32>
    %c0_i32_16 = arith.constant 0 : i32
    %15 = arith.index_cast %c0_i32_16 : i32 to index
    %c0_17 = arith.constant 0 : index
    %c0_18 = arith.constant 0 : index
    %16 = vector.load %arg9[%15, %c0_17, %c0_18] : memref<8x8x512xf32, #tpu.memory_space<vmem>>, vector<1x8x512xf32>
    %17 = vector.shape_cast %16 : vector<1x8x512xf32> to vector<8x512xf32>
    %18 = arith.truncf %13 : vector<8x128xf32> to vector<8x128xbf16>
    %cst_19 = arith.constant dense<0.000000e+00> : vector<8x512xf32>
    %19 = tpu.matmul %18, %12, %cst_19 {dimension_numbers = #tpu.dot_dimension_numbers<[1], [0], [0], [1], [0, 0, 1, 1], [], []>} : vector<8x128xbf16>, vector<128x512xbf16>, vector<8x512xf32> -> vector<8x512xf32>
    %20 = arith.addf %17, %19 : vector<8x512xf32>
    %21 = vector.extract_strided_slice %20 {offsets = [0, 0], sizes = [8, 384], strides = [1, 1]} : vector<8x512xf32> to vector<8x384xf32>
    %22 = arith.negf %21 : vector<8x384xf32>
    %23 = math.exp %22 : vector<8x384xf32>
    %cst_20 = arith.constant 1.000000e+00 : f32
    %24 = vector.broadcast %cst_20 : f32 to vector<8x384xf32>
    %25 = arith.addf %24, %23 : vector<8x384xf32>
    %26 = arith.divf %24, %25 : vector<8x384xf32>
    %27 = vector.extract_strided_slice %26 {offsets = [0, 0], sizes = [8, 128], strides = [1, 1]} : vector<8x384xf32> to vector<8x128xf32>
    %28 = vector.extract_strided_slice %26 {offsets = [0, 128], sizes = [8, 128], strides = [1, 1]} : vector<8x384xf32> to vector<8x128xf32>
    %29 = vector.extract_strided_slice %26 {offsets = [0, 256], sizes = [8, 128], strides = [1, 1]} : vector<8x384xf32> to vector<8x128xf32>
    %30 = vector.extract_strided_slice %20 {offsets = [0, 384], sizes = [8, 128], strides = [1, 1]} : vector<8x512xf32> to vector<8x128xf32>
    %31 = math.tanh %30 : vector<8x128xf32>
    %32 = arith.mulf %28, %14 : vector<8x128xf32>
    %33 = arith.mulf %27, %31 : vector<8x128xf32>
    %34 = arith.addf %32, %33 : vector<8x128xf32>
    %35 = math.tanh %34 : vector<8x128xf32>
    %36 = arith.mulf %29, %35 : vector<8x128xf32>
    %37 = arith.index_cast %c0_i32_16 : i32 to index
    %c0_21 = arith.constant 0 : index
    %c0_22 = arith.constant 0 : index
    %38 = vector.load %arg10[%37, %c0_21, %c0_22] : memref<8x8x128xf32, #tpu.memory_space<vmem>>, vector<1x8x128xf32>
    %39 = vector.shape_cast %38 : vector<1x8x128xf32> to vector<8x128xf32>
    %40 = vector.shape_cast %36 : vector<8x128xf32> to vector<1x8x128xf32>
    tpu.vector_store %arg10[%37, %c0_21, %c0_22], %40 {strides = array<i32>} : memref<8x8x128xf32, #tpu.memory_space<vmem>>, vector<1x8x128xf32>,
    %c1_i32 = arith.constant 1 : i32
    %41 = arith.index_cast %c1_i32 : i32 to index
    %c0_23 = arith.constant 0 : index
    %c0_24 = arith.constant 0 : index
    %42 = vector.load %arg9[%41, %c0_23, %c0_24] : memref<8x8x512xf32, #tpu.memory_space<vmem>>, vector<1x8x512xf32>
    %43 = vector.shape_cast %42 : vector<1x8x512xf32> to vector<8x512xf32>
    %44 = arith.truncf %36 : vector<8x128xf32> to vector<8x128xbf16>
    %cst_25 = arith.constant dense<0.000000e+00> : vector<8x512xf32>
    %45 = tpu.matmul %44, %12, %cst_25 {dimension_numbers = #tpu.dot_dimension_numbers<[1], [0], [0], [1], [0, 0, 1, 1], [], []>} : vector<8x128xbf16>, vector<128x512xbf16>, vector<8x512xf32> -> vector<8x512xf32>
    %46 = arith.addf %43, %45 : vector<8x512xf32>
    %47 = vector.extract_strided_slice %46 {offsets = [0, 0], sizes = [8, 384], strides = [1, 1]} : vector<8x512xf32> to vector<8x384xf32>
    %48 = arith.negf %47 : vector<8x384xf32>
    %49 = math.exp %48 : vector<8x384xf32>
    %cst_26 = arith.constant 1.000000e+00 : f32
    %50 = vector.broadcast %cst_26 : f32 to vector<8x384xf32>
    %51 = arith.addf %50, %49 : vector<8x384xf32>
    %52 = arith.divf %50, %51 : vector<8x384xf32>
    %53 = vector.extract_strided_slice %52 {offsets = [0, 0], sizes = [8, 128], strides = [1, 1]} : vector<8x384xf32> to vector<8x128xf32>
    %54 = vector.extract_strided_slice %52 {offsets = [0, 128], sizes = [8, 128], strides = [1, 1]} : vector<8x384xf32> to vector<8x128xf32>
    %55 = vector.extract_strided_slice %52 {offsets = [0, 256], sizes = [8, 128], strides = [1, 1]} : vector<8x384xf32> to vector<8x128xf32>
    %56 = vector.extract_strided_slice %46 {offsets = [0, 384], sizes = [8, 128], strides = [1, 1]} : vector<8x512xf32> to vector<8x128xf32>
    %57 = math.tanh %56 : vector<8x128xf32>
    %58 = arith.mulf %54, %34 : vector<8x128xf32>
    %59 = arith.mulf %53, %57 : vector<8x128xf32>
    %60 = arith.addf %58, %59 : vector<8x128xf32>
    %61 = math.tanh %60 : vector<8x128xf32>
    %62 = arith.mulf %55, %61 : vector<8x128xf32>
    %63 = arith.index_cast %c1_i32 : i32 to index
    %c0_27 = arith.constant 0 : index
    %c0_28 = arith.constant 0 : index
    %64 = vector.load %arg10[%63, %c0_27, %c0_28] : memref<8x8x128xf32, #tpu.memory_space<vmem>>, vector<1x8x128xf32>
    %65 = vector.shape_cast %64 : vector<1x8x128xf32> to vector<8x128xf32>
    %66 = vector.shape_cast %62 : vector<8x128xf32> to vector<1x8x128xf32>
    tpu.vector_store %arg10[%63, %c0_27, %c0_28], %66 {strides = array<i32>} : memref<8x8x128xf32, #tpu.memory_space<vmem>>, vector<1x8x128xf32>,
    %c2_i32 = arith.constant 2 : i32
    %67 = arith.index_cast %c2_i32 : i32 to index
    %c0_29 = arith.constant 0 : index
    %c0_30 = arith.constant 0 : index
    %68 = vector.load %arg9[%67, %c0_29, %c0_30] : memref<8x8x512xf32, #tpu.memory_space<vmem>>, vector<1x8x512xf32>
    %69 = vector.shape_cast %68 : vector<1x8x512xf32> to vector<8x512xf32>
    %70 = arith.truncf %62 : vector<8x128xf32> to vector<8x128xbf16>
    %cst_31 = arith.constant dense<0.000000e+00> : vector<8x512xf32>
    %71 = tpu.matmul %70, %12, %cst_31 {dimension_numbers = #tpu.dot_dimension_numbers<[1], [0], [0], [1], [0, 0, 1, 1], [], []>} : vector<8x128xbf16>, vector<128x512xbf16>, vector<8x512xf32> -> vector<8x512xf32>
    %72 = arith.addf %69, %71 : vector<8x512xf32>
    %73 = vector.extract_strided_slice %72 {offsets = [0, 0], sizes = [8, 384], strides = [1, 1]} : vector<8x512xf32> to vector<8x384xf32>
    %74 = arith.negf %73 : vector<8x384xf32>
    %75 = math.exp %74 : vector<8x384xf32>
    %cst_32 = arith.constant 1.000000e+00 : f32
    %76 = vector.broadcast %cst_32 : f32 to vector<8x384xf32>
    %77 = arith.addf %76, %75 : vector<8x384xf32>
    %78 = arith.divf %76, %77 : vector<8x384xf32>
    %79 = vector.extract_strided_slice %78 {offsets = [0, 0], sizes = [8, 128], strides = [1, 1]} : vector<8x384xf32> to vector<8x128xf32>
    %80 = vector.extract_strided_slice %78 {offsets = [0, 128], sizes = [8, 128], strides = [1, 1]} : vector<8x384xf32> to vector<8x128xf32>
    %81 = vector.extract_strided_slice %78 {offsets = [0, 256], sizes = [8, 128], strides = [1, 1]} : vector<8x384xf32> to vector<8x128xf32>
    %82 = vector.extract_strided_slice %72 {offsets = [0, 384], sizes = [8, 128], strides = [1, 1]} : vector<8x512xf32> to vector<8x128xf32>
    %83 = math.tanh %82 : vector<8x128xf32>
    %84 = arith.mulf %80, %60 : vector<8x128xf32>
    %85 = arith.mulf %79, %83 : vector<8x128xf32>
    %86 = arith.addf %84, %85 : vector<8x128xf32>
    %87 = math.tanh %86 : vector<8x128xf32>
    %88 = arith.mulf %81, %87 : vector<8x128xf32>
    %89 = arith.index_cast %c2_i32 : i32 to index
    %c0_33 = arith.constant 0 : index
    %c0_34 = arith.constant 0 : index
    %90 = vector.load %arg10[%89, %c0_33, %c0_34] : memref<8x8x128xf32, #tpu.memory_space<vmem>>, vector<1x8x128xf32>
    %91 = vector.shape_cast %90 : vector<1x8x128xf32> to vector<8x128xf32>
    %92 = vector.shape_cast %88 : vector<8x128xf32> to vector<1x8x128xf32>
    tpu.vector_store %arg10[%89, %c0_33, %c0_34], %92 {strides = array<i32>} : memref<8x8x128xf32, #tpu.memory_space<vmem>>, vector<1x8x128xf32>,
    %c3_i32 = arith.constant 3 : i32
    %93 = arith.index_cast %c3_i32 : i32 to index
    %c0_35 = arith.constant 0 : index
    %c0_36 = arith.constant 0 : index
    %94 = vector.load %arg9[%93, %c0_35, %c0_36] : memref<8x8x512xf32, #tpu.memory_space<vmem>>, vector<1x8x512xf32>
    %95 = vector.shape_cast %94 : vector<1x8x512xf32> to vector<8x512xf32>
    %96 = arith.truncf %88 : vector<8x128xf32> to vector<8x128xbf16>
    %cst_37 = arith.constant dense<0.000000e+00> : vector<8x512xf32>
    %97 = tpu.matmul %96, %12, %cst_37 {dimension_numbers = #tpu.dot_dimension_numbers<[1], [0], [0], [1], [0, 0, 1, 1], [], []>} : vector<8x128xbf16>, vector<128x512xbf16>, vector<8x512xf32> -> vector<8x512xf32>
    %98 = arith.addf %95, %97 : vector<8x512xf32>
    %99 = vector.extract_strided_slice %98 {offsets = [0, 0], sizes = [8, 384], strides = [1, 1]} : vector<8x512xf32> to vector<8x384xf32>
    %100 = arith.negf %99 : vector<8x384xf32>
    %101 = math.exp %100 : vector<8x384xf32>
    %cst_38 = arith.constant 1.000000e+00 : f32
    %102 = vector.broadcast %cst_38 : f32 to vector<8x384xf32>
    %103 = arith.addf %102, %101 : vector<8x384xf32>
    %104 = arith.divf %102, %103 : vector<8x384xf32>
    %105 = vector.extract_strided_slice %104 {offsets = [0, 0], sizes = [8, 128], strides = [1, 1]} : vector<8x384xf32> to vector<8x128xf32>
    %106 = vector.extract_strided_slice %104 {offsets = [0, 128], sizes = [8, 128], strides = [1, 1]} : vector<8x384xf32> to vector<8x128xf32>
    %107 = vector.extract_strided_slice %104 {offsets = [0, 256], sizes = [8, 128], strides = [1, 1]} : vector<8x384xf32> to vector<8x128xf32>
    %108 = vector.extract_strided_slice %98 {offsets = [0, 384], sizes = [8, 128], strides = [1, 1]} : vector<8x512xf32> to vector<8x128xf32>
    %109 = math.tanh %108 : vector<8x128xf32>
    %110 = arith.mulf %106, %86 : vector<8x128xf32>
    %111 = arith.mulf %105, %109 : vector<8x128xf32>
    %112 = arith.addf %110, %111 : vector<8x128xf32>
    %113 = math.tanh %112 : vector<8x128xf32>
    %114 = arith.mulf %107, %113 : vector<8x128xf32>
    %115 = arith.index_cast %c3_i32 : i32 to index
    %c0_39 = arith.constant 0 : index
    %c0_40 = arith.constant 0 : index
    %116 = vector.load %arg10[%115, %c0_39, %c0_40] : memref<8x8x128xf32, #tpu.memory_space<vmem>>, vector<1x8x128xf32>
    %117 = vector.shape_cast %116 : vector<1x8x128xf32> to vector<8x128xf32>
    %118 = vector.shape_cast %114 : vector<8x128xf32> to vector<1x8x128xf32>
    tpu.vector_store %arg10[%115, %c0_39, %c0_40], %118 {strides = array<i32>} : memref<8x8x128xf32, #tpu.memory_space<vmem>>, vector<1x8x128xf32>,
    %c4_i32 = arith.constant 4 : i32
    %119 = arith.index_cast %c4_i32 : i32 to index
    %c0_41 = arith.constant 0 : index
    %c0_42 = arith.constant 0 : index
    %120 = vector.load %arg9[%119, %c0_41, %c0_42] : memref<8x8x512xf32, #tpu.memory_space<vmem>>, vector<1x8x512xf32>
    %121 = vector.shape_cast %120 : vector<1x8x512xf32> to vector<8x512xf32>
    %122 = arith.truncf %114 : vector<8x128xf32> to vector<8x128xbf16>
    %cst_43 = arith.constant dense<0.000000e+00> : vector<8x512xf32>
    %123 = tpu.matmul %122, %12, %cst_43 {dimension_numbers = #tpu.dot_dimension_numbers<[1], [0], [0], [1], [0, 0, 1, 1], [], []>} : vector<8x128xbf16>, vector<128x512xbf16>, vector<8x512xf32> -> vector<8x512xf32>
    %124 = arith.addf %121, %123 : vector<8x512xf32>
    %125 = vector.extract_strided_slice %124 {offsets = [0, 0], sizes = [8, 384], strides = [1, 1]} : vector<8x512xf32> to vector<8x384xf32>
    %126 = arith.negf %125 : vector<8x384xf32>
    %127 = math.exp %126 : vector<8x384xf32>
    %cst_44 = arith.constant 1.000000e+00 : f32
    %128 = vector.broadcast %cst_44 : f32 to vector<8x384xf32>
    %129 = arith.addf %128, %127 : vector<8x384xf32>
    %130 = arith.divf %128, %129 : vector<8x384xf32>
    %131 = vector.extract_strided_slice %130 {offsets = [0, 0], sizes = [8, 128], strides = [1, 1]} : vector<8x384xf32> to vector<8x128xf32>
    %132 = vector.extract_strided_slice %130 {offsets = [0, 128], sizes = [8, 128], strides = [1, 1]} : vector<8x384xf32> to vector<8x128xf32>
    %133 = vector.extract_strided_slice %130 {offsets = [0, 256], sizes = [8, 128], strides = [1, 1]} : vector<8x384xf32> to vector<8x128xf32>
    %134 = vector.extract_strided_slice %124 {offsets = [0, 384], sizes = [8, 128], strides = [1, 1]} : vector<8x512xf32> to vector<8x128xf32>
    %135 = math.tanh %134 : vector<8x128xf32>
    %136 = arith.mulf %132, %112 : vector<8x128xf32>
    %137 = arith.mulf %131, %135 : vector<8x128xf32>
    %138 = arith.addf %136, %137 : vector<8x128xf32>
    %139 = math.tanh %138 : vector<8x128xf32>
    %140 = arith.mulf %133, %139 : vector<8x128xf32>
    %141 = arith.index_cast %c4_i32 : i32 to index
    %c0_45 = arith.constant 0 : index
    %c0_46 = arith.constant 0 : index
    %142 = vector.load %arg10[%141, %c0_45, %c0_46] : memref<8x8x128xf32, #tpu.memory_space<vmem>>, vector<1x8x128xf32>
    %143 = vector.shape_cast %142 : vector<1x8x128xf32> to vector<8x128xf32>
    %144 = vector.shape_cast %140 : vector<8x128xf32> to vector<1x8x128xf32>
    tpu.vector_store %arg10[%141, %c0_45, %c0_46], %144 {strides = array<i32>} : memref<8x8x128xf32, #tpu.memory_space<vmem>>, vector<1x8x128xf32>,
    %c5_i32 = arith.constant 5 : i32
    %145 = arith.index_cast %c5_i32 : i32 to index
    %c0_47 = arith.constant 0 : index
    %c0_48 = arith.constant 0 : index
    %146 = vector.load %arg9[%145, %c0_47, %c0_48] : memref<8x8x512xf32, #tpu.memory_space<vmem>>, vector<1x8x512xf32>
    %147 = vector.shape_cast %146 : vector<1x8x512xf32> to vector<8x512xf32>
    %148 = arith.truncf %140 : vector<8x128xf32> to vector<8x128xbf16>
    %cst_49 = arith.constant dense<0.000000e+00> : vector<8x512xf32>
    %149 = tpu.matmul %148, %12, %cst_49 {dimension_numbers = #tpu.dot_dimension_numbers<[1], [0], [0], [1], [0, 0, 1, 1], [], []>} : vector<8x128xbf16>, vector<128x512xbf16>, vector<8x512xf32> -> vector<8x512xf32>
    %150 = arith.addf %147, %149 : vector<8x512xf32>
    %151 = vector.extract_strided_slice %150 {offsets = [0, 0], sizes = [8, 384], strides = [1, 1]} : vector<8x512xf32> to vector<8x384xf32>
    %152 = arith.negf %151 : vector<8x384xf32>
    %153 = math.exp %152 : vector<8x384xf32>
    %cst_50 = arith.constant 1.000000e+00 : f32
    %154 = vector.broadcast %cst_50 : f32 to vector<8x384xf32>
    %155 = arith.addf %154, %153 : vector<8x384xf32>
    %156 = arith.divf %154, %155 : vector<8x384xf32>
    %157 = vector.extract_strided_slice %156 {offsets = [0, 0], sizes = [8, 128], strides = [1, 1]} : vector<8x384xf32> to vector<8x128xf32>
    %158 = vector.extract_strided_slice %156 {offsets = [0, 128], sizes = [8, 128], strides = [1, 1]} : vector<8x384xf32> to vector<8x128xf32>
    %159 = vector.extract_strided_slice %156 {offsets = [0, 256], sizes = [8, 128], strides = [1, 1]} : vector<8x384xf32> to vector<8x128xf32>
    %160 = vector.extract_strided_slice %150 {offsets = [0, 384], sizes = [8, 128], strides = [1, 1]} : vector<8x512xf32> to vector<8x128xf32>
    %161 = math.tanh %160 : vector<8x128xf32>
    %162 = arith.mulf %158, %138 : vector<8x128xf32>
    %163 = arith.mulf %157, %161 : vector<8x128xf32>
    %164 = arith.addf %162, %163 : vector<8x128xf32>
    %165 = math.tanh %164 : vector<8x128xf32>
    %166 = arith.mulf %159, %165 : vector<8x128xf32>
    %167 = arith.index_cast %c5_i32 : i32 to index
    %c0_51 = arith.constant 0 : index
    %c0_52 = arith.constant 0 : index
    %168 = vector.load %arg10[%167, %c0_51, %c0_52] : memref<8x8x128xf32, #tpu.memory_space<vmem>>, vector<1x8x128xf32>
    %169 = vector.shape_cast %168 : vector<1x8x128xf32> to vector<8x128xf32>
    %170 = vector.shape_cast %166 : vector<8x128xf32> to vector<1x8x128xf32>
    tpu.vector_store %arg10[%167, %c0_51, %c0_52], %170 {strides = array<i32>} : memref<8x8x128xf32, #tpu.memory_space<vmem>>, vector<1x8x128xf32>,
    %c6_i32 = arith.constant 6 : i32
    %171 = arith.index_cast %c6_i32 : i32 to index
    %c0_53 = arith.constant 0 : index
    %c0_54 = arith.constant 0 : index
    %172 = vector.load %arg9[%171, %c0_53, %c0_54] : memref<8x8x512xf32, #tpu.memory_space<vmem>>, vector<1x8x512xf32>
    %173 = vector.shape_cast %172 : vector<1x8x512xf32> to vector<8x512xf32>
    %174 = arith.truncf %166 : vector<8x128xf32> to vector<8x128xbf16>
    %cst_55 = arith.constant dense<0.000000e+00> : vector<8x512xf32>
    %175 = tpu.matmul %174, %12, %cst_55 {dimension_numbers = #tpu.dot_dimension_numbers<[1], [0], [0], [1], [0, 0, 1, 1], [], []>} : vector<8x128xbf16>, vector<128x512xbf16>, vector<8x512xf32> -> vector<8x512xf32>
    %176 = arith.addf %173, %175 : vector<8x512xf32>
    %177 = vector.extract_strided_slice %176 {offsets = [0, 0], sizes = [8, 384], strides = [1, 1]} : vector<8x512xf32> to vector<8x384xf32>
    %178 = arith.negf %177 : vector<8x384xf32>
    %179 = math.exp %178 : vector<8x384xf32>
    %cst_56 = arith.constant 1.000000e+00 : f32
    %180 = vector.broadcast %cst_56 : f32 to vector<8x384xf32>
    %181 = arith.addf %180, %179 : vector<8x384xf32>
    %182 = arith.divf %180, %181 : vector<8x384xf32>
    %183 = vector.extract_strided_slice %182 {offsets = [0, 0], sizes = [8, 128], strides = [1, 1]} : vector<8x384xf32> to vector<8x128xf32>
    %184 = vector.extract_strided_slice %182 {offsets = [0, 128], sizes = [8, 128], strides = [1, 1]} : vector<8x384xf32> to vector<8x128xf32>
    %185 = vector.extract_strided_slice %182 {offsets = [0, 256], sizes = [8, 128], strides = [1, 1]} : vector<8x384xf32> to vector<8x128xf32>
    %186 = vector.extract_strided_slice %176 {offsets = [0, 384], sizes = [8, 128], strides = [1, 1]} : vector<8x512xf32> to vector<8x128xf32>
    %187 = math.tanh %186 : vector<8x128xf32>
    %188 = arith.mulf %184, %164 : vector<8x128xf32>
    %189 = arith.mulf %183, %187 : vector<8x128xf32>
    %190 = arith.addf %188, %189 : vector<8x128xf32>
    %191 = math.tanh %190 : vector<8x128xf32>
    %192 = arith.mulf %185, %191 : vector<8x128xf32>
    %193 = arith.index_cast %c6_i32 : i32 to index
    %c0_57 = arith.constant 0 : index
    %c0_58 = arith.constant 0 : index
    %194 = vector.load %arg10[%193, %c0_57, %c0_58] : memref<8x8x128xf32, #tpu.memory_space<vmem>>, vector<1x8x128xf32>
    %195 = vector.shape_cast %194 : vector<1x8x128xf32> to vector<8x128xf32>
    %196 = vector.shape_cast %192 : vector<8x128xf32> to vector<1x8x128xf32>
    tpu.vector_store %arg10[%193, %c0_57, %c0_58], %196 {strides = array<i32>} : memref<8x8x128xf32, #tpu.memory_space<vmem>>, vector<1x8x128xf32>,
    %c7_i32 = arith.constant 7 : i32
    %197 = arith.index_cast %c7_i32 : i32 to index
    %c0_59 = arith.constant 0 : index
    %c0_60 = arith.constant 0 : index
    %198 = vector.load %arg9[%197, %c0_59, %c0_60] : memref<8x8x512xf32, #tpu.memory_space<vmem>>, vector<1x8x512xf32>
    %199 = vector.shape_cast %198 : vector<1x8x512xf32> to vector<8x512xf32>
    %200 = arith.truncf %192 : vector<8x128xf32> to vector<8x128xbf16>
    %cst_61 = arith.constant dense<0.000000e+00> : vector<8x512xf32>
    %201 = tpu.matmul %200, %12, %cst_61 {dimension_numbers = #tpu.dot_dimension_numbers<[1], [0], [0], [1], [0, 0, 1, 1], [], []>} : vector<8x128xbf16>, vector<128x512xbf16>, vector<8x512xf32> -> vector<8x512xf32>
    %202 = arith.addf %199, %201 : vector<8x512xf32>
    %203 = vector.extract_strided_slice %202 {offsets = [0, 0], sizes = [8, 384], strides = [1, 1]} : vector<8x512xf32> to vector<8x384xf32>
    %204 = arith.negf %203 : vector<8x384xf32>
    %205 = math.exp %204 : vector<8x384xf32>
    %cst_62 = arith.constant 1.000000e+00 : f32
    %206 = vector.broadcast %cst_62 : f32 to vector<8x384xf32>
    %207 = arith.addf %206, %205 : vector<8x384xf32>
    %208 = arith.divf %206, %207 : vector<8x384xf32>
    %209 = vector.extract_strided_slice %208 {offsets = [0, 0], sizes = [8, 128], strides = [1, 1]} : vector<8x384xf32> to vector<8x128xf32>
    %210 = vector.extract_strided_slice %208 {offsets = [0, 128], sizes = [8, 128], strides = [1, 1]} : vector<8x384xf32> to vector<8x128xf32>
    %211 = vector.extract_strided_slice %208 {offsets = [0, 256], sizes = [8, 128], strides = [1, 1]} : vector<8x384xf32> to vector<8x128xf32>
    %212 = vector.extract_strided_slice %202 {offsets = [0, 384], sizes = [8, 128], strides = [1, 1]} : vector<8x512xf32> to vector<8x128xf32>
    %213 = math.tanh %212 : vector<8x128xf32>
    %214 = arith.mulf %210, %190 : vector<8x128xf32>
    %215 = arith.mulf %209, %213 : vector<8x128xf32>
    %216 = arith.addf %214, %215 : vector<8x128xf32>
    %217 = math.tanh %216 : vector<8x128xf32>
    %218 = arith.mulf %211, %217 : vector<8x128xf32>
    %219 = arith.index_cast %c7_i32 : i32 to index
    %c0_63 = arith.constant 0 : index
    %c0_64 = arith.constant 0 : index
    %220 = vector.load %arg10[%219, %c0_63, %c0_64] : memref<8x8x128xf32, #tpu.memory_space<vmem>>, vector<1x8x128xf32>
    %221 = vector.shape_cast %220 : vector<1x8x128xf32> to vector<8x128xf32>
    %222 = vector.shape_cast %218 : vector<8x128xf32> to vector<1x8x128xf32>
    tpu.vector_store %arg10[%219, %c0_63, %c0_64], %222 {strides = array<i32>} : memref<8x8x128xf32, #tpu.memory_space<vmem>>, vector<1x8x128xf32>,
    %c8_i32 = arith.constant 8 : i32
    %c0_65 = arith.constant 0 : index
    %c0_66 = arith.constant 0 : index
    %223 = vector.load %arg11[%c0_65, %c0_66] : memref<8x128xf32, #tpu.memory_space<vmem>>, vector<8x128xf32>
    tpu.vector_store %arg11[%c0_65, %c0_66], %218 {strides = array<i32>} : memref<8x128xf32, #tpu.memory_space<vmem>>, vector<8x128xf32>,
    %c0_67 = arith.constant 0 : index
    %c0_68 = arith.constant 0 : index
    %224 = vector.load %arg12[%c0_67, %c0_68] : memref<8x128xf32, #tpu.memory_space<vmem>>, vector<8x128xf32>
    tpu.vector_store %arg12[%c0_67, %c0_68], %216 {strides = array<i32>} : memref<8x128xf32, #tpu.memory_space<vmem>>, vector<8x128xf32>,
    %c0_69 = arith.constant 0 : index
    %c0_70 = arith.constant 0 : index
    %c0_71 = arith.constant 0 : index
    %225 = vector.load %arg10[%c0_69, %c0_70, %c0_71] : memref<8x8x128xf32, #tpu.memory_space<vmem>>, vector<8x8x128xf32>
    %226 = arith.truncf %225 : vector<8x8x128xf32> to vector<8x8x128xbf16>
    %c0_72 = arith.constant 0 : index
    %c0_73 = arith.constant 0 : index
    %c0_74 = arith.constant 0 : index
    %227 = vector.load %arg6[%c0_72, %c0_73, %c0_74] : memref<8x8x128xbf16, #tpu.memory_space<vmem>>, vector<8x8x128xbf16>
    tpu.vector_store %arg6[%c0_72, %c0_73, %c0_74], %226 {strides = array<i32>} : memref<8x8x128xbf16, #tpu.memory_space<vmem>>, vector<8x8x128xbf16>,
    %c0_i32_75 = arith.constant 0 : i32
    %228 = arith.cmpi eq, %arg1, %c0_i32_75 : i32
    %229 = arith.extui %228 : i1 to i32
    %c0_i32_76 = arith.constant 0 : i32
    %230 = arith.cmpi ne, %229, %c0_i32_76 : i32
    scf.if %230 {
      %c0_77 = arith.constant 0 : index
      %c0_78 = arith.constant 0 : index
      %231 = vector.load %arg7[%c0_77, %c0_78] : memref<8x128xf32, #tpu.memory_space<vmem>>, vector<8x128xf32>
      tpu.vector_store %arg7[%c0_77, %c0_78], %218 {strides = array<i32>} : memref<8x128xf32, #tpu.memory_space<vmem>>, vector<8x128xf32>,
      %c0_79 = arith.constant 0 : index
      %c0_80 = arith.constant 0 : index
      %232 = vector.load %arg8[%c0_79, %c0_80] : memref<8x128xf32, #tpu.memory_space<vmem>>, vector<8x128xf32>
      tpu.vector_store %arg8[%c0_79, %c0_80], %216 {strides = array<i32>} : memref<8x128xf32, #tpu.memory_space<vmem>>, vector<8x128xf32>,
    } else {
    }
    return
  }
  func.func @transform_0(%arg0: i32, %arg1: i32) -> (i32, i32, i32) {
    %c0_i32 = arith.constant 0 : i32
    %c0_i32_0 = arith.constant 0 : i32
    return %arg1, %arg0, %c0_i32 : i32, i32, i32
  }
  func.func @transform_1(%arg0: i32, %arg1: i32) -> (i32, i32) {
    %c0_i32 = arith.constant 0 : i32
    %c0_i32_0 = arith.constant 0 : i32
    %c0_i32_1 = arith.constant 0 : i32
    return %c0_i32, %c0_i32_0 : i32, i32
  }
  func.func @transform_2(%arg0: i32, %arg1: i32) -> (i32, i32) {
    %c0_i32 = arith.constant 0 : i32
    %c0_i32_0 = arith.constant 0 : i32
    %c0_i32_1 = arith.constant 0 : i32
    return %c0_i32, %c0_i32_0 : i32, i32
  }
  func.func @transform_3(%arg0: i32, %arg1: i32) -> (i32, i32) {
    %c0_i32 = arith.constant 0 : i32
    %c0_i32_0 = arith.constant 0 : i32
    %c0_i32_1 = arith.constant 0 : i32
    return %c0_i32, %c0_i32_0 : i32, i32
  }
  func.func @transform_4(%arg0: i32, %arg1: i32) -> (i32, i32, i32) {
    %c0_i32 = arith.constant 0 : i32
    %c0_i32_0 = arith.constant 0 : i32
    return %arg1, %arg0, %c0_i32 : i32, i32, i32
  }
  func.func @transform_5(%arg0: i32, %arg1: i32) -> (i32, i32) {
    %c0_i32 = arith.constant 0 : i32
    %c0_i32_0 = arith.constant 0 : i32
    return %arg0, %c0_i32 : i32, i32
  }
  func.func @transform_6(%arg0: i32, %arg1: i32) -> (i32, i32) {
    %c0_i32 = arith.constant 0 : i32
    %c0_i32_0 = arith.constant 0 : i32
    return %arg0, %c0_i32 : i32, i32
  }
}

module attributes {stable_mosaic.version = 11 : i64} {
  func.func @_lstm_chunk_kernel(%arg0: i32, %arg1: i32, %arg2: memref<8x8x128xbf16, #tpu.memory_space<vmem>>, %arg3: memref<128x512xbf16, #tpu.memory_space<vmem>>, %arg4: memref<128x512xbf16, #tpu.memory_space<vmem>>, %arg5: memref<1x512xf32, #tpu.memory_space<vmem>>, %arg6: memref<8x8x128xbf16, #tpu.memory_space<vmem>>, %arg7: memref<8x128xf32, #tpu.memory_space<vmem>>, %arg8: memref<8x128xf32, #tpu.memory_space<vmem>>, %arg9: memref<8x8x512xf32, #tpu.memory_space<vmem>>, %arg10: memref<8x8x128xf32, #tpu.memory_space<vmem>>, %arg11: memref<8x128xf32, #tpu.memory_space<vmem>>, %arg12: memref<8x128xf32, #tpu.memory_space<vmem>>) attributes {dimension_semantics = [#tpu.dimension_semantics<parallel>, #tpu.dimension_semantics<arbitrary>], iteration_bounds = array<i64: 1, 1>, scalar_prefetch = 0 : i64, scratch_operands = 4 : i64, tpu.core_type = #tpu.core_type<tc>, window_params = [{transform_indices = @transform_0, window_bounds = array<i64: 8, 8, 128>}, {pipeline_mode = #tpu.pipeline_mode<synchronous>, transform_indices = @transform_1, window_bounds = array<i64: 128, 512>}, {pipeline_mode = #tpu.pipeline_mode<synchronous>, transform_indices = @transform_2, window_bounds = array<i64: 128, 512>}, {pipeline_mode = #tpu.pipeline_mode<synchronous>, transform_indices = @transform_3, window_bounds = array<i64: 1, 512>}, {transform_indices = @transform_4, window_bounds = array<i64: 8, 8, 128>}, {transform_indices = @transform_5, window_bounds = array<i64: 8, 128>}, {transform_indices = @transform_6, window_bounds = array<i64: 8, 128>}]} {
    %c0_i32 = arith.constant 0 : i32
    %0 = arith.cmpi eq, %arg1, %c0_i32 : i32
    %1 = arith.extui %0 : i1 to i32
    %c0_i32_0 = arith.constant 0 : i32
    %2 = arith.cmpi ne, %1, %c0_i32_0 : i32
    scf.if %2 {
      %cst_77 = arith.constant 0.000000e+00 : f32
      %231 = vector.broadcast %cst_77 : f32 to vector<8x128xf32>
      %c0_78 = arith.constant 0 : index
      %c0_79 = arith.constant 0 : index
      %232 = vector.load %arg11[%c0_78, %c0_79] : memref<8x128xf32, #tpu.memory_space<vmem>>, vector<8x128xf32>
      tpu.vector_store %arg11[%c0_78, %c0_79], %231 {strides = array<i32>} : memref<8x128xf32, #tpu.memory_space<vmem>>, vector<8x128xf32>,
      %cst_80 = arith.constant 0.000000e+00 : f32
      %233 = vector.broadcast %cst_80 : f32 to vector<8x128xf32>
      %c0_81 = arith.constant 0 : index
      %c0_82 = arith.constant 0 : index
      %234 = vector.load %arg12[%c0_81, %c0_82] : memref<8x128xf32, #tpu.memory_space<vmem>>, vector<8x128xf32>
      tpu.vector_store %arg12[%c0_81, %c0_82], %233 {strides = array<i32>} : memref<8x128xf32, #tpu.memory_space<vmem>>, vector<8x128xf32>,
    } else {
    }
    %c0 = arith.constant 0 : index
    %c0_1 = arith.constant 0 : index
    %c0_2 = arith.constant 0 : index
    %3 = vector.load %arg2[%c0, %c0_1, %c0_2] : memref<8x8x128xbf16, #tpu.memory_space<vmem>>, vector<8x8x128xbf16>
    %4 = vector.shape_cast %3 : vector<8x8x128xbf16> to vector<64x128xbf16>
    %c0_3 = arith.constant 0 : index
    %c0_4 = arith.constant 0 : index
    %5 = vector.load %arg3[%c0_3, %c0_4] : memref<128x512xbf16, #tpu.memory_space<vmem>>, vector<128x512xbf16>
    %cst = arith.constant dense<0.000000e+00> : vector<64x512xf32>
    %6 = tpu.matmul %4, %5, %cst {dimension_numbers = #tpu.dot_dimension_numbers<[1], [0], [0], [1], [0, 0, 1, 1], [], []>} : vector<64x128xbf16>, vector<128x512xbf16>, vector<64x512xf32> -> vector<64x512xf32>
    %c0_5 = arith.constant 0 : index
    %c0_6 = arith.constant 0 : index
    %7 = vector.load %arg5[%c0_5, %c0_6] : memref<1x512xf32, #tpu.memory_space<vmem>>, vector<1x512xf32>
    %8 = vector.broadcast %7 : vector<1x512xf32> to vector<64x512xf32>
    %9 = arith.addf %6, %8 : vector<64x512xf32>
    %10 = vector.shape_cast %9 : vector<64x512xf32> to vector<8x8x512xf32>
    %c0_7 = arith.constant 0 : index
    %c0_8 = arith.constant 0 : index
    %c0_9 = arith.constant 0 : index
    %11 = vector.load %arg9[%c0_7, %c0_8, %c0_9] : memref<8x8x512xf32, #tpu.memory_space<vmem>>, vector<8x8x512xf32>
    tpu.vector_store %arg9[%c0_7, %c0_8, %c0_9], %10 {strides = array<i32>} : memref<8x8x512xf32, #tpu.memory_space<vmem>>, vector<8x8x512xf32>,
    %c0_10 = arith.constant 0 : index
    %c0_11 = arith.constant 0 : index
    %12 = vector.load %arg4[%c0_10, %c0_11] : memref<128x512xbf16, #tpu.memory_space<vmem>>, vector<128x512xbf16>
    %c0_12 = arith.constant 0 : index
    %c0_13 = arith.constant 0 : index
    %13 = vector.load %arg11[%c0_12, %c0_13] : memref<8x128xf32, #tpu.memory_space<vmem>>, vector<8x128xf32>
    %c0_14 = arith.constant 0 : index
    %c0_15 = arith.constant 0 : index
    %14 = vector.load %arg12[%c0_14, %c0_15] : memref<8x128xf32, #tpu.memory_space<vmem>>, vector<8x128xf32>
    %c0_i32_16 = arith.constant 0 : i32
    %15 = arith.index_cast %c0_i32_16 : i32 to index
    %c0_17 = arith.constant 0 : index
    %c0_18 = arith.constant 0 : index
    %16 = vector.load %arg9[%15, %c0_17, %c0_18] : memref<8x8x512xf32, #tpu.memory_space<vmem>>, vector<1x8x512xf32>
    %17 = vector.shape_cast %16 : vector<1x8x512xf32> to vector<8x512xf32>
    %18 = arith.truncf %13 : vector<8x128xf32> to vector<8x128xbf16>
    %cst_19 = arith.constant dense<0.000000e+00> : vector<8x512xf32>
    %19 = tpu.matmul %18, %12, %cst_19 {dimension_numbers = #tpu.dot_dimension_numbers<[1], [0], [0], [1], [0, 0, 1, 1], [], []>} : vector<8x128xbf16>, vector<128x512xbf16>, vector<8x512xf32> -> vector<8x512xf32>
    %20 = arith.addf %17, %19 : vector<8x512xf32>
    %21 = vector.extract_strided_slice %20 {offsets = [0, 0], sizes = [8, 384], strides = [1, 1]} : vector<8x512xf32> to vector<8x384xf32>
    %22 = arith.negf %21 : vector<8x384xf32>
    %23 = math.exp %22 : vector<8x384xf32>
    %cst_20 = arith.constant 1.000000e+00 : f32
    %24 = vector.broadcast %cst_20 : f32 to vector<8x384xf32>
    %25 = arith.addf %24, %23 : vector<8x384xf32>
    %26 = arith.divf %24, %25 : vector<8x384xf32>
    %27 = vector.extract_strided_slice %26 {offsets = [0, 0], sizes = [8, 128], strides = [1, 1]} : vector<8x384xf32> to vector<8x128xf32>
    %28 = vector.extract_strided_slice %26 {offsets = [0, 128], sizes = [8, 128], strides = [1, 1]} : vector<8x384xf32> to vector<8x128xf32>
    %29 = vector.extract_strided_slice %26 {offsets = [0, 256], sizes = [8, 128], strides = [1, 1]} : vector<8x384xf32> to vector<8x128xf32>
    %30 = vector.extract_strided_slice %20 {offsets = [0, 384], sizes = [8, 128], strides = [1, 1]} : vector<8x512xf32> to vector<8x128xf32>
    %31 = math.tanh %30 : vector<8x128xf32>
    %32 = arith.mulf %28, %14 : vector<8x128xf32>
    %33 = arith.mulf %27, %31 : vector<8x128xf32>
    %34 = arith.addf %32, %33 : vector<8x128xf32>
    %35 = math.tanh %34 : vector<8x128xf32>
    %36 = arith.mulf %29, %35 : vector<8x128xf32>
    %37 = arith.index_cast %c0_i32_16 : i32 to index
    %c0_21 = arith.constant 0 : index
    %c0_22 = arith.constant 0 : index
    %38 = vector.load %arg10[%37, %c0_21, %c0_22] : memref<8x8x128xf32, #tpu.memory_space<vmem>>, vector<1x8x128xf32>
    %39 = vector.shape_cast %38 : vector<1x8x128xf32> to vector<8x128xf32>
    %40 = vector.shape_cast %36 : vector<8x128xf32> to vector<1x8x128xf32>
    tpu.vector_store %arg10[%37, %c0_21, %c0_22], %40 {strides = array<i32>} : memref<8x8x128xf32, #tpu.memory_space<vmem>>, vector<1x8x128xf32>,
    %c1_i32 = arith.constant 1 : i32
    %41 = arith.index_cast %c1_i32 : i32 to index
    %c0_23 = arith.constant 0 : index
    %c0_24 = arith.constant 0 : index
    %42 = vector.load %arg9[%41, %c0_23, %c0_24] : memref<8x8x512xf32, #tpu.memory_space<vmem>>, vector<1x8x512xf32>
    %43 = vector.shape_cast %42 : vector<1x8x512xf32> to vector<8x512xf32>
    %44 = arith.truncf %36 : vector<8x128xf32> to vector<8x128xbf16>
    %cst_25 = arith.constant dense<0.000000e+00> : vector<8x512xf32>
    %45 = tpu.matmul %44, %12, %cst_25 {dimension_numbers = #tpu.dot_dimension_numbers<[1], [0], [0], [1], [0, 0, 1, 1], [], []>} : vector<8x128xbf16>, vector<128x512xbf16>, vector<8x512xf32> -> vector<8x512xf32>
    %46 = arith.addf %43, %45 : vector<8x512xf32>
    %47 = vector.extract_strided_slice %46 {offsets = [0, 0], sizes = [8, 384], strides = [1, 1]} : vector<8x512xf32> to vector<8x384xf32>
    %48 = arith.negf %47 : vector<8x384xf32>
    %49 = math.exp %48 : vector<8x384xf32>
    %cst_26 = arith.constant 1.000000e+00 : f32
    %50 = vector.broadcast %cst_26 : f32 to vector<8x384xf32>
    %51 = arith.addf %50, %49 : vector<8x384xf32>
    %52 = arith.divf %50, %51 : vector<8x384xf32>
    %53 = vector.extract_strided_slice %52 {offsets = [0, 0], sizes = [8, 128], strides = [1, 1]} : vector<8x384xf32> to vector<8x128xf32>
    %54 = vector.extract_strided_slice %52 {offsets = [0, 128], sizes = [8, 128], strides = [1, 1]} : vector<8x384xf32> to vector<8x128xf32>
    %55 = vector.extract_strided_slice %52 {offsets = [0, 256], sizes = [8, 128], strides = [1, 1]} : vector<8x384xf32> to vector<8x128xf32>
    %56 = vector.extract_strided_slice %46 {offsets = [0, 384], sizes = [8, 128], strides = [1, 1]} : vector<8x512xf32> to vector<8x128xf32>
    %57 = math.tanh %56 : vector<8x128xf32>
    %58 = arith.mulf %54, %34 : vector<8x128xf32>
    %59 = arith.mulf %53, %57 : vector<8x128xf32>
    %60 = arith.addf %58, %59 : vector<8x128xf32>
    %61 = math.tanh %60 : vector<8x128xf32>
    %62 = arith.mulf %55, %61 : vector<8x128xf32>
    %63 = arith.index_cast %c1_i32 : i32 to index
    %c0_27 = arith.constant 0 : index
    %c0_28 = arith.constant 0 : index
    %64 = vector.load %arg10[%63, %c0_27, %c0_28] : memref<8x8x128xf32, #tpu.memory_space<vmem>>, vector<1x8x128xf32>
    %65 = vector.shape_cast %64 : vector<1x8x128xf32> to vector<8x128xf32>
    %66 = vector.shape_cast %62 : vector<8x128xf32> to vector<1x8x128xf32>
    tpu.vector_store %arg10[%63, %c0_27, %c0_28], %66 {strides = array<i32>} : memref<8x8x128xf32, #tpu.memory_space<vmem>>, vector<1x8x128xf32>,
    %c2_i32 = arith.constant 2 : i32
    %67 = arith.index_cast %c2_i32 : i32 to index
    %c0_29 = arith.constant 0 : index
    %c0_30 = arith.constant 0 : index
    %68 = vector.load %arg9[%67, %c0_29, %c0_30] : memref<8x8x512xf32, #tpu.memory_space<vmem>>, vector<1x8x512xf32>
    %69 = vector.shape_cast %68 : vector<1x8x512xf32> to vector<8x512xf32>
    %70 = arith.truncf %62 : vector<8x128xf32> to vector<8x128xbf16>
    %cst_31 = arith.constant dense<0.000000e+00> : vector<8x512xf32>
    %71 = tpu.matmul %70, %12, %cst_31 {dimension_numbers = #tpu.dot_dimension_numbers<[1], [0], [0], [1], [0, 0, 1, 1], [], []>} : vector<8x128xbf16>, vector<128x512xbf16>, vector<8x512xf32> -> vector<8x512xf32>
    %72 = arith.addf %69, %71 : vector<8x512xf32>
    %73 = vector.extract_strided_slice %72 {offsets = [0, 0], sizes = [8, 384], strides = [1, 1]} : vector<8x512xf32> to vector<8x384xf32>
    %74 = arith.negf %73 : vector<8x384xf32>
    %75 = math.exp %74 : vector<8x384xf32>
    %cst_32 = arith.constant 1.000000e+00 : f32
    %76 = vector.broadcast %cst_32 : f32 to vector<8x384xf32>
    %77 = arith.addf %76, %75 : vector<8x384xf32>
    %78 = arith.divf %76, %77 : vector<8x384xf32>
    %79 = vector.extract_strided_slice %78 {offsets = [0, 0], sizes = [8, 128], strides = [1, 1]} : vector<8x384xf32> to vector<8x128xf32>
    %80 = vector.extract_strided_slice %78 {offsets = [0, 128], sizes = [8, 128], strides = [1, 1]} : vector<8x384xf32> to vector<8x128xf32>
    %81 = vector.extract_strided_slice %78 {offsets = [0, 256], sizes = [8, 128], strides = [1, 1]} : vector<8x384xf32> to vector<8x128xf32>
    %82 = vector.extract_strided_slice %72 {offsets = [0, 384], sizes = [8, 128], strides = [1, 1]} : vector<8x512xf32> to vector<8x128xf32>
    %83 = math.tanh %82 : vector<8x128xf32>
    %84 = arith.mulf %80, %60 : vector<8x128xf32>
    %85 = arith.mulf %79, %83 : vector<8x128xf32>
    %86 = arith.addf %84, %85 : vector<8x128xf32>
    %87 = math.tanh %86 : vector<8x128xf32>
    %88 = arith.mulf %81, %87 : vector<8x128xf32>
    %89 = arith.index_cast %c2_i32 : i32 to index
    %c0_33 = arith.constant 0 : index
    %c0_34 = arith.constant 0 : index
    %90 = vector.load %arg10[%89, %c0_33, %c0_34] : memref<8x8x128xf32, #tpu.memory_space<vmem>>, vector<1x8x128xf32>
    %91 = vector.shape_cast %90 : vector<1x8x128xf32> to vector<8x128xf32>
    %92 = vector.shape_cast %88 : vector<8x128xf32> to vector<1x8x128xf32>
    tpu.vector_store %arg10[%89, %c0_33, %c0_34], %92 {strides = array<i32>} : memref<8x8x128xf32, #tpu.memory_space<vmem>>, vector<1x8x128xf32>,
    %c3_i32 = arith.constant 3 : i32
    %93 = arith.index_cast %c3_i32 : i32 to index
    %c0_35 = arith.constant 0 : index
    %c0_36 = arith.constant 0 : index
    %94 = vector.load %arg9[%93, %c0_35, %c0_36] : memref<8x8x512xf32, #tpu.memory_space<vmem>>, vector<1x8x512xf32>
    %95 = vector.shape_cast %94 : vector<1x8x512xf32> to vector<8x512xf32>
    %96 = arith.truncf %88 : vector<8x128xf32> to vector<8x128xbf16>
    %cst_37 = arith.constant dense<0.000000e+00> : vector<8x512xf32>
    %97 = tpu.matmul %96, %12, %cst_37 {dimension_numbers = #tpu.dot_dimension_numbers<[1], [0], [0], [1], [0, 0, 1, 1], [], []>} : vector<8x128xbf16>, vector<128x512xbf16>, vector<8x512xf32> -> vector<8x512xf32>
    %98 = arith.addf %95, %97 : vector<8x512xf32>
    %99 = vector.extract_strided_slice %98 {offsets = [0, 0], sizes = [8, 384], strides = [1, 1]} : vector<8x512xf32> to vector<8x384xf32>
    %100 = arith.negf %99 : vector<8x384xf32>
    %101 = math.exp %100 : vector<8x384xf32>
    %cst_38 = arith.constant 1.000000e+00 : f32
    %102 = vector.broadcast %cst_38 : f32 to vector<8x384xf32>
    %103 = arith.addf %102, %101 : vector<8x384xf32>
    %104 = arith.divf %102, %103 : vector<8x384xf32>
    %105 = vector.extract_strided_slice %104 {offsets = [0, 0], sizes = [8, 128], strides = [1, 1]} : vector<8x384xf32> to vector<8x128xf32>
    %106 = vector.extract_strided_slice %104 {offsets = [0, 128], sizes = [8, 128], strides = [1, 1]} : vector<8x384xf32> to vector<8x128xf32>
    %107 = vector.extract_strided_slice %104 {offsets = [0, 256], sizes = [8, 128], strides = [1, 1]} : vector<8x384xf32> to vector<8x128xf32>
    %108 = vector.extract_strided_slice %98 {offsets = [0, 384], sizes = [8, 128], strides = [1, 1]} : vector<8x512xf32> to vector<8x128xf32>
    %109 = math.tanh %108 : vector<8x128xf32>
    %110 = arith.mulf %106, %86 : vector<8x128xf32>
    %111 = arith.mulf %105, %109 : vector<8x128xf32>
    %112 = arith.addf %110, %111 : vector<8x128xf32>
    %113 = math.tanh %112 : vector<8x128xf32>
    %114 = arith.mulf %107, %113 : vector<8x128xf32>
    %115 = arith.index_cast %c3_i32 : i32 to index
    %c0_39 = arith.constant 0 : index
    %c0_40 = arith.constant 0 : index
    %116 = vector.load %arg10[%115, %c0_39, %c0_40] : memref<8x8x128xf32, #tpu.memory_space<vmem>>, vector<1x8x128xf32>
    %117 = vector.shape_cast %116 : vector<1x8x128xf32> to vector<8x128xf32>
    %118 = vector.shape_cast %114 : vector<8x128xf32> to vector<1x8x128xf32>
    tpu.vector_store %arg10[%115, %c0_39, %c0_40], %118 {strides = array<i32>} : memref<8x8x128xf32, #tpu.memory_space<vmem>>, vector<1x8x128xf32>,
    %c4_i32 = arith.constant 4 : i32
    %119 = arith.index_cast %c4_i32 : i32 to index
    %c0_41 = arith.constant 0 : index
    %c0_42 = arith.constant 0 : index
    %120 = vector.load %arg9[%119, %c0_41, %c0_42] : memref<8x8x512xf32, #tpu.memory_space<vmem>>, vector<1x8x512xf32>
    %121 = vector.shape_cast %120 : vector<1x8x512xf32> to vector<8x512xf32>
    %122 = arith.truncf %114 : vector<8x128xf32> to vector<8x128xbf16>
    %cst_43 = arith.constant dense<0.000000e+00> : vector<8x512xf32>
    %123 = tpu.matmul %122, %12, %cst_43 {dimension_numbers = #tpu.dot_dimension_numbers<[1], [0], [0], [1], [0, 0, 1, 1], [], []>} : vector<8x128xbf16>, vector<128x512xbf16>, vector<8x512xf32> -> vector<8x512xf32>
    %124 = arith.addf %121, %123 : vector<8x512xf32>
    %125 = vector.extract_strided_slice %124 {offsets = [0, 0], sizes = [8, 384], strides = [1, 1]} : vector<8x512xf32> to vector<8x384xf32>
    %126 = arith.negf %125 : vector<8x384xf32>
    %127 = math.exp %126 : vector<8x384xf32>
    %cst_44 = arith.constant 1.000000e+00 : f32
    %128 = vector.broadcast %cst_44 : f32 to vector<8x384xf32>
    %129 = arith.addf %128, %127 : vector<8x384xf32>
    %130 = arith.divf %128, %129 : vector<8x384xf32>
    %131 = vector.extract_strided_slice %130 {offsets = [0, 0], sizes = [8, 128], strides = [1, 1]} : vector<8x384xf32> to vector<8x128xf32>
    %132 = vector.extract_strided_slice %130 {offsets = [0, 128], sizes = [8, 128], strides = [1, 1]} : vector<8x384xf32> to vector<8x128xf32>
    %133 = vector.extract_strided_slice %130 {offsets = [0, 256], sizes = [8, 128], strides = [1, 1]} : vector<8x384xf32> to vector<8x128xf32>
    %134 = vector.extract_strided_slice %124 {offsets = [0, 384], sizes = [8, 128], strides = [1, 1]} : vector<8x512xf32> to vector<8x128xf32>
    %135 = math.tanh %134 : vector<8x128xf32>
    %136 = arith.mulf %132, %112 : vector<8x128xf32>
    %137 = arith.mulf %131, %135 : vector<8x128xf32>
    %138 = arith.addf %136, %137 : vector<8x128xf32>
    %139 = math.tanh %138 : vector<8x128xf32>
    %140 = arith.mulf %133, %139 : vector<8x128xf32>
    %141 = arith.index_cast %c4_i32 : i32 to index
    %c0_45 = arith.constant 0 : index
    %c0_46 = arith.constant 0 : index
    %142 = vector.load %arg10[%141, %c0_45, %c0_46] : memref<8x8x128xf32, #tpu.memory_space<vmem>>, vector<1x8x128xf32>
    %143 = vector.shape_cast %142 : vector<1x8x128xf32> to vector<8x128xf32>
    %144 = vector.shape_cast %140 : vector<8x128xf32> to vector<1x8x128xf32>
    tpu.vector_store %arg10[%141, %c0_45, %c0_46], %144 {strides = array<i32>} : memref<8x8x128xf32, #tpu.memory_space<vmem>>, vector<1x8x128xf32>,
    %c5_i32 = arith.constant 5 : i32
    %145 = arith.index_cast %c5_i32 : i32 to index
    %c0_47 = arith.constant 0 : index
    %c0_48 = arith.constant 0 : index
    %146 = vector.load %arg9[%145, %c0_47, %c0_48] : memref<8x8x512xf32, #tpu.memory_space<vmem>>, vector<1x8x512xf32>
    %147 = vector.shape_cast %146 : vector<1x8x512xf32> to vector<8x512xf32>
    %148 = arith.truncf %140 : vector<8x128xf32> to vector<8x128xbf16>
    %cst_49 = arith.constant dense<0.000000e+00> : vector<8x512xf32>
    %149 = tpu.matmul %148, %12, %cst_49 {dimension_numbers = #tpu.dot_dimension_numbers<[1], [0], [0], [1], [0, 0, 1, 1], [], []>} : vector<8x128xbf16>, vector<128x512xbf16>, vector<8x512xf32> -> vector<8x512xf32>
    %150 = arith.addf %147, %149 : vector<8x512xf32>
    %151 = vector.extract_strided_slice %150 {offsets = [0, 0], sizes = [8, 384], strides = [1, 1]} : vector<8x512xf32> to vector<8x384xf32>
    %152 = arith.negf %151 : vector<8x384xf32>
    %153 = math.exp %152 : vector<8x384xf32>
    %cst_50 = arith.constant 1.000000e+00 : f32
    %154 = vector.broadcast %cst_50 : f32 to vector<8x384xf32>
    %155 = arith.addf %154, %153 : vector<8x384xf32>
    %156 = arith.divf %154, %155 : vector<8x384xf32>
    %157 = vector.extract_strided_slice %156 {offsets = [0, 0], sizes = [8, 128], strides = [1, 1]} : vector<8x384xf32> to vector<8x128xf32>
    %158 = vector.extract_strided_slice %156 {offsets = [0, 128], sizes = [8, 128], strides = [1, 1]} : vector<8x384xf32> to vector<8x128xf32>
    %159 = vector.extract_strided_slice %156 {offsets = [0, 256], sizes = [8, 128], strides = [1, 1]} : vector<8x384xf32> to vector<8x128xf32>
    %160 = vector.extract_strided_slice %150 {offsets = [0, 384], sizes = [8, 128], strides = [1, 1]} : vector<8x512xf32> to vector<8x128xf32>
    %161 = math.tanh %160 : vector<8x128xf32>
    %162 = arith.mulf %158, %138 : vector<8x128xf32>
    %163 = arith.mulf %157, %161 : vector<8x128xf32>
    %164 = arith.addf %162, %163 : vector<8x128xf32>
    %165 = math.tanh %164 : vector<8x128xf32>
    %166 = arith.mulf %159, %165 : vector<8x128xf32>
    %167 = arith.index_cast %c5_i32 : i32 to index
    %c0_51 = arith.constant 0 : index
    %c0_52 = arith.constant 0 : index
    %168 = vector.load %arg10[%167, %c0_51, %c0_52] : memref<8x8x128xf32, #tpu.memory_space<vmem>>, vector<1x8x128xf32>
    %169 = vector.shape_cast %168 : vector<1x8x128xf32> to vector<8x128xf32>
    %170 = vector.shape_cast %166 : vector<8x128xf32> to vector<1x8x128xf32>
    tpu.vector_store %arg10[%167, %c0_51, %c0_52], %170 {strides = array<i32>} : memref<8x8x128xf32, #tpu.memory_space<vmem>>, vector<1x8x128xf32>,
    %c6_i32 = arith.constant 6 : i32
    %171 = arith.index_cast %c6_i32 : i32 to index
    %c0_53 = arith.constant 0 : index
    %c0_54 = arith.constant 0 : index
    %172 = vector.load %arg9[%171, %c0_53, %c0_54] : memref<8x8x512xf32, #tpu.memory_space<vmem>>, vector<1x8x512xf32>
    %173 = vector.shape_cast %172 : vector<1x8x512xf32> to vector<8x512xf32>
    %174 = arith.truncf %166 : vector<8x128xf32> to vector<8x128xbf16>
    %cst_55 = arith.constant dense<0.000000e+00> : vector<8x512xf32>
    %175 = tpu.matmul %174, %12, %cst_55 {dimension_numbers = #tpu.dot_dimension_numbers<[1], [0], [0], [1], [0, 0, 1, 1], [], []>} : vector<8x128xbf16>, vector<128x512xbf16>, vector<8x512xf32> -> vector<8x512xf32>
    %176 = arith.addf %173, %175 : vector<8x512xf32>
    %177 = vector.extract_strided_slice %176 {offsets = [0, 0], sizes = [8, 384], strides = [1, 1]} : vector<8x512xf32> to vector<8x384xf32>
    %178 = arith.negf %177 : vector<8x384xf32>
    %179 = math.exp %178 : vector<8x384xf32>
    %cst_56 = arith.constant 1.000000e+00 : f32
    %180 = vector.broadcast %cst_56 : f32 to vector<8x384xf32>
    %181 = arith.addf %180, %179 : vector<8x384xf32>
    %182 = arith.divf %180, %181 : vector<8x384xf32>
    %183 = vector.extract_strided_slice %182 {offsets = [0, 0], sizes = [8, 128], strides = [1, 1]} : vector<8x384xf32> to vector<8x128xf32>
    %184 = vector.extract_strided_slice %182 {offsets = [0, 128], sizes = [8, 128], strides = [1, 1]} : vector<8x384xf32> to vector<8x128xf32>
    %185 = vector.extract_strided_slice %182 {offsets = [0, 256], sizes = [8, 128], strides = [1, 1]} : vector<8x384xf32> to vector<8x128xf32>
    %186 = vector.extract_strided_slice %176 {offsets = [0, 384], sizes = [8, 128], strides = [1, 1]} : vector<8x512xf32> to vector<8x128xf32>
    %187 = math.tanh %186 : vector<8x128xf32>
    %188 = arith.mulf %184, %164 : vector<8x128xf32>
    %189 = arith.mulf %183, %187 : vector<8x128xf32>
    %190 = arith.addf %188, %189 : vector<8x128xf32>
    %191 = math.tanh %190 : vector<8x128xf32>
    %192 = arith.mulf %185, %191 : vector<8x128xf32>
    %193 = arith.index_cast %c6_i32 : i32 to index
    %c0_57 = arith.constant 0 : index
    %c0_58 = arith.constant 0 : index
    %194 = vector.load %arg10[%193, %c0_57, %c0_58] : memref<8x8x128xf32, #tpu.memory_space<vmem>>, vector<1x8x128xf32>
    %195 = vector.shape_cast %194 : vector<1x8x128xf32> to vector<8x128xf32>
    %196 = vector.shape_cast %192 : vector<8x128xf32> to vector<1x8x128xf32>
    tpu.vector_store %arg10[%193, %c0_57, %c0_58], %196 {strides = array<i32>} : memref<8x8x128xf32, #tpu.memory_space<vmem>>, vector<1x8x128xf32>,
    %c7_i32 = arith.constant 7 : i32
    %197 = arith.index_cast %c7_i32 : i32 to index
    %c0_59 = arith.constant 0 : index
    %c0_60 = arith.constant 0 : index
    %198 = vector.load %arg9[%197, %c0_59, %c0_60] : memref<8x8x512xf32, #tpu.memory_space<vmem>>, vector<1x8x512xf32>
    %199 = vector.shape_cast %198 : vector<1x8x512xf32> to vector<8x512xf32>
    %200 = arith.truncf %192 : vector<8x128xf32> to vector<8x128xbf16>
    %cst_61 = arith.constant dense<0.000000e+00> : vector<8x512xf32>
    %201 = tpu.matmul %200, %12, %cst_61 {dimension_numbers = #tpu.dot_dimension_numbers<[1], [0], [0], [1], [0, 0, 1, 1], [], []>} : vector<8x128xbf16>, vector<128x512xbf16>, vector<8x512xf32> -> vector<8x512xf32>
    %202 = arith.addf %199, %201 : vector<8x512xf32>
    %203 = vector.extract_strided_slice %202 {offsets = [0, 0], sizes = [8, 384], strides = [1, 1]} : vector<8x512xf32> to vector<8x384xf32>
    %204 = arith.negf %203 : vector<8x384xf32>
    %205 = math.exp %204 : vector<8x384xf32>
    %cst_62 = arith.constant 1.000000e+00 : f32
    %206 = vector.broadcast %cst_62 : f32 to vector<8x384xf32>
    %207 = arith.addf %206, %205 : vector<8x384xf32>
    %208 = arith.divf %206, %207 : vector<8x384xf32>
    %209 = vector.extract_strided_slice %208 {offsets = [0, 0], sizes = [8, 128], strides = [1, 1]} : vector<8x384xf32> to vector<8x128xf32>
    %210 = vector.extract_strided_slice %208 {offsets = [0, 128], sizes = [8, 128], strides = [1, 1]} : vector<8x384xf32> to vector<8x128xf32>
    %211 = vector.extract_strided_slice %208 {offsets = [0, 256], sizes = [8, 128], strides = [1, 1]} : vector<8x384xf32> to vector<8x128xf32>
    %212 = vector.extract_strided_slice %202 {offsets = [0, 384], sizes = [8, 128], strides = [1, 1]} : vector<8x512xf32> to vector<8x128xf32>
    %213 = math.tanh %212 : vector<8x128xf32>
    %214 = arith.mulf %210, %190 : vector<8x128xf32>
    %215 = arith.mulf %209, %213 : vector<8x128xf32>
    %216 = arith.addf %214, %215 : vector<8x128xf32>
    %217 = math.tanh %216 : vector<8x128xf32>
    %218 = arith.mulf %211, %217 : vector<8x128xf32>
    %219 = arith.index_cast %c7_i32 : i32 to index
    %c0_63 = arith.constant 0 : index
    %c0_64 = arith.constant 0 : index
    %220 = vector.load %arg10[%219, %c0_63, %c0_64] : memref<8x8x128xf32, #tpu.memory_space<vmem>>, vector<1x8x128xf32>
    %221 = vector.shape_cast %220 : vector<1x8x128xf32> to vector<8x128xf32>
    %222 = vector.shape_cast %218 : vector<8x128xf32> to vector<1x8x128xf32>
    tpu.vector_store %arg10[%219, %c0_63, %c0_64], %222 {strides = array<i32>} : memref<8x8x128xf32, #tpu.memory_space<vmem>>, vector<1x8x128xf32>,
    %c8_i32 = arith.constant 8 : i32
    %c0_65 = arith.constant 0 : index
    %c0_66 = arith.constant 0 : index
    %223 = vector.load %arg11[%c0_65, %c0_66] : memref<8x128xf32, #tpu.memory_space<vmem>>, vector<8x128xf32>
    tpu.vector_store %arg11[%c0_65, %c0_66], %218 {strides = array<i32>} : memref<8x128xf32, #tpu.memory_space<vmem>>, vector<8x128xf32>,
    %c0_67 = arith.constant 0 : index
    %c0_68 = arith.constant 0 : index
    %224 = vector.load %arg12[%c0_67, %c0_68] : memref<8x128xf32, #tpu.memory_space<vmem>>, vector<8x128xf32>
    tpu.vector_store %arg12[%c0_67, %c0_68], %216 {strides = array<i32>} : memref<8x128xf32, #tpu.memory_space<vmem>>, vector<8x128xf32>,
    %c0_69 = arith.constant 0 : index
    %c0_70 = arith.constant 0 : index
    %c0_71 = arith.constant 0 : index
    %225 = vector.load %arg10[%c0_69, %c0_70, %c0_71] : memref<8x8x128xf32, #tpu.memory_space<vmem>>, vector<8x8x128xf32>
    %226 = arith.truncf %225 : vector<8x8x128xf32> to vector<8x8x128xbf16>
    %c0_72 = arith.constant 0 : index
    %c0_73 = arith.constant 0 : index
    %c0_74 = arith.constant 0 : index
    %227 = vector.load %arg6[%c0_72, %c0_73, %c0_74] : memref<8x8x128xbf16, #tpu.memory_space<vmem>>, vector<8x8x128xbf16>
    tpu.vector_store %arg6[%c0_72, %c0_73, %c0_74], %226 {strides = array<i32>} : memref<8x8x128xbf16, #tpu.memory_space<vmem>>, vector<8x8x128xbf16>,
    %c0_i32_75 = arith.constant 0 : i32
    %228 = arith.cmpi eq, %arg1, %c0_i32_75 : i32
    %229 = arith.extui %228 : i1 to i32
    %c0_i32_76 = arith.constant 0 : i32
    %230 = arith.cmpi ne, %229, %c0_i32_76 : i32
    scf.if %230 {
      %c0_77 = arith.constant 0 : index
      %c0_78 = arith.constant 0 : index
      %231 = vector.load %arg7[%c0_77, %c0_78] : memref<8x128xf32, #tpu.memory_space<vmem>>, vector<8x128xf32>
      tpu.vector_store %arg7[%c0_77, %c0_78], %218 {strides = array<i32>} : memref<8x128xf32, #tpu.memory_space<vmem>>, vector<8x128xf32>,
      %c0_79 = arith.constant 0 : index
      %c0_80 = arith.constant 0 : index
      %232 = vector.load %arg8[%c0_79, %c0_80] : memref<8x128xf32, #tpu.memory_space<vmem>>, vector<8x128xf32>
      tpu.vector_store %arg8[%c0_79, %c0_80], %216 {strides = array<i32>} : memref<8x128xf32, #tpu.memory_space<vmem>>, vector<8x128xf32>,
    } else {
    }
    return
  }
  func.func @transform_0(%arg0: i32, %arg1: i32) -> (i32, i32, i32) {
    %c0_i32 = arith.constant 0 : i32
    %c0_i32_0 = arith.constant 0 : i32
    return %arg1, %arg0, %c0_i32 : i32, i32, i32
  }
  func.func @transform_1(%arg0: i32, %arg1: i32) -> (i32, i32) {
    %c0_i32 = arith.constant 0 : i32
    %c0_i32_0 = arith.constant 0 : i32
    %c0_i32_1 = arith.constant 0 : i32
    return %c0_i32, %c0_i32_0 : i32, i32
  }
  func.func @transform_2(%arg0: i32, %arg1: i32) -> (i32, i32) {
    %c0_i32 = arith.constant 0 : i32
    %c0_i32_0 = arith.constant 0 : i32
    %c0_i32_1 = arith.constant 0 : i32
    return %c0_i32, %c0_i32_0 : i32, i32
  }
  func.func @transform_3(%arg0: i32, %arg1: i32) -> (i32, i32) {
    %c0_i32 = arith.constant 0 : i32
    %c0_i32_0 = arith.constant 0 : i32
    %c0_i32_1 = arith.constant 0 : i32
    return %c0_i32, %c0_i32_0 : i32, i32
  }
  func.func @transform_4(%arg0: i32, %arg1: i32) -> (i32, i32, i32) {
    %c0_i32 = arith.constant 0 : i32
    %c0_i32_0 = arith.constant 0 : i32
    return %arg1, %arg0, %c0_i32 : i32, i32, i32
  }
  func.func @transform_5(%arg0: i32, %arg1: i32) -> (i32, i32) {
    %c0_i32 = arith.constant 0 : i32
    %c0_i32_0 = arith.constant 0 : i32
    return %arg0, %c0_i32 : i32, i32
  }
  func.func @transform_6(%arg0: i32, %arg1: i32) -> (i32, i32) {
    %c0_i32 = arith.constant 0 : i32
    %c0_i32_0 = arith.constant 0 : i32
    return %arg0, %c0_i32 : i32, i32
  }
}

</mosaic_0001>

<bundles_post_ra>
// kernel: tpu_custom_call.1
= control target key start
LH: loop header
LB: loop body
LE: loop exit
PB: predicated region body
PF: predicated region fallthrough
CT: control target
= control target key end

     0   :  { %12 = vsyncpa [#allocation7], 0  ;;  %s2828_s0 = inlined_call_operand.hbm [shape: bf16[8,8,128], index: 0, kind: input, shape index: {}]   ;;  %s2829_s1 = inlined_call_operand.hbm [shape: bf16[128,512], index: 1, kind: input, shape index: {}]   ;;  %s2830_s2 = inlined_call_operand.hbm [shape: bf16[128,512], index: 2, kind: input, shape index: {}]   ;;  %s2831_s3 = inlined_call_operand.vmem [shape: f32[1,512], index: 3, kind: input, shape index: {}]   ;;  %s2832_s4 = inlined_call_operand.hbm [shape: bf16[8,8,128], index: 4, kind: output, shape index: {0}]   ;;  %s2833_s5 = inlined_call_operand.hbm [shape: f32[8,128], index: 5, kind: output, shape index: {1}]   ;;  %s2834_s6 = inlined_call_operand.hbm [shape: f32[8,128], index: 6, kind: output, shape index: {2}]  }
   0x1   :  { %13 = vsyncpa [#allocation10], 0 }
   0x2   :  { %14 = vsyncpa [#allocation8], 0 }
   0x3   :  { %15 = vsyncpa [#allocation14], 0  ;;  %s2221_s21 = smov [#allocation9]  }
   0x4   :  { %s33_s22 = sshll.u32 %s2221_s21, 4  ;;  %s34_s22 = int_to_ptr.vmem [resolvable:$true] %s33_s22 }
   0x5   :  { %s2101_s23 = scalar_lea.vmem %s34_s22, 4096  ;;  %p2106_p1 = scmp.lt.s32.totalorder %s34_s22, %s34_s22 }
   0x6   :  { %p2102_p0 = scmp.ne.s32.totalorder %s34_s22, %s2101_s23  ;;  %p2107_p2 = scmp.lt.s32.totalorder %s2101_s23, %s2101_s23 }
   0x8   :  { %p2108_p3 = por %p2107_p2, %p2106_p1 }
   0xa   :  { %p2109_p4 = pnand %p2108_p3, %p2102_p0 }
   0xc   :  { %2112 = shalt.err (!%p2109_p4)
}
   0xd   :  { %s2222_s24 = smov 256   ;;  %s2223_s25 = smov 16  }
   0xe   :  { %39 = dma.hbm_to_vmem [thread:$0]  %s2829_s1, 4096, %s34_s22, [#allocation10], %s2222_s24, %s2222_s24, %s2223_s25  }
   0xf   :  { %s2224_s28 = smov [#allocation6]  }
  0x10   :  { %s21_s29 = sshll.u32 %s2224_s28, 4  ;;  %s22_s29 = int_to_ptr.vmem [resolvable:$true] %s21_s29 }
  0x11   :  { %s2121_s30 = scalar_lea.vmem %s22_s29, 512  ;;  %p2126_p6 = scmp.lt.s32.totalorder %s22_s29, %s22_s29 }
  0x12   :  { %p2122_p5 = scmp.ne.s32.totalorder %s22_s29, %s2121_s30  ;;  %p2127_p7 = scmp.lt.s32.totalorder %s2121_s30, %s2121_s30 }
  0x14   :  { %p2128_p8 = por %p2127_p7, %p2126_p6 }
  0x16   :  { %p2129_p9 = pnand %p2128_p8, %p2122_p5 }
  0x18   :  { %2132 = shalt.err (!%p2129_p9)
}
  0x19   :  { %s2225_s7 = smov 64   ;;  %s2226_s8 = smov 4  }
  0x1a   :  { %27 = dma.hbm_to_vmem [thread:$0]  %s2828_s0, 512, %s22_s29, [#allocation7], %s2225_s7, %s2225_s7, %s2226_s8  }
  0x1b   :  { %s2227_s1 = smov [#allocation11]  }
  0x1c   :  { %s45_s11 = sshll.u32 %s2227_s1, 4  ;;  %s46_s11 = int_to_ptr.vmem [resolvable:$true] %s45_s11 }
  0x1d   :  { %s2141_s12 = scalar_lea.vmem %s46_s11, 4096  ;;  %p2146_p11 = scmp.lt.s32.totalorder %s46_s11, %s46_s11 }
  0x1e   :  { %p2142_p10 = scmp.ne.s32.totalorder %s46_s11, %s2141_s12  ;;  %p2147_p12 = scmp.lt.s32.totalorder %s2141_s12, %s2141_s12 }
  0x20   :  { %p2148_p13 = por %p2147_p12, %p2146_p11 }
  0x22   :  { %p2149_p0 = pnand %p2148_p13, %p2142_p10 }
  0x24   :  { %2152 = shalt.err (!%p2149_p0)
}
  0x25   :  { %51 = dma.hbm_to_vmem [thread:$0]  %s2830_s2, 4096, %s46_s11, [#allocation10], %s2222_s24, %s2222_s24, %s2223_s25  }
  0x26   :  { %2213 = dma.done.wait [#allocation7], 512  }
  0x27   :  { %2214 = vsyncadd [#allocation7], 4294966784 }
  0x28   :  { %2215 = dma.done.wait [#allocation10], 8192  }
  0x29   :  { %2216 = vsyncadd [#allocation10], 4294959104  ;;  %v2835_v0 = vmov 0   ;;  %v1833_v1 = vld [vmem:[#allocation9 + $0xe4] ss:$16 sps:$4 sm:$0xff]   ;;  %v1894_v44 = vld [vmem:[#allocation6 + $0x8] sm:$0xff]  }
  0x2a   :  { %348 = vmatprep.mubr.bf16.mxu0 %v2835_v0  ;;  %421 = vmatprep.mubr.bf16.mxu1 %v2835_v0  ;;  %v1835_v2 = vld [vmem:[#allocation9 + $0xec] ss:$16 sps:$4 sm:$0xff]   ;;  %v1837_v3 = vld [vmem:[#allocation9 + $0xe0] ss:$16 sps:$4 sm:$0xff]   ;;  %v1838_v4 = vld [vmem:[#allocation9 + $0xe8] ss:$16 sps:$4 sm:$0xff]  }
  0x2b   :  { %316 = vmatprep.subr.bf16.mxu0 %v1833_v1  ;;  %389 = vmatprep.subr.bf16.mxu1 %v1835_v2  ;;  %v1839_v5 = vld [vmem:[#allocation9 + $0xc4] ss:$16 sps:$4 sm:$0xff]   ;;  %v1841_v6 = vld [vmem:[#allocation9 + $0xcc] ss:$16 sps:$4 sm:$0xff]   ;;  %v1843_v7 = vld [vmem:[#allocation9 + $0xc0] ss:$16 sps:$4 sm:$0xff]  }
  0x2c   :  { %317 = vmatpush1.bf16.msra.mxu0 %v1837_v3  ;;  %390 = vmatpush1.bf16.msra.mxu1 %v1838_v4  ;;  %v1844_v8 = vld [vmem:[#allocation9 + $0xc8] ss:$16 sps:$4 sm:$0xff]   ;;  %v1845_v9 = vld [vmem:[#allocation9 + $0xa4] ss:$16 sps:$4 sm:$0xff]   ;;  %v1847_v10 = vld [vmem:[#allocation9 + $0xac] ss:$16 sps:$4 sm:$0xff]  }
  0x2d   :  { %318 = vmatprep.subr.bf16.mxu0 %v1839_v5  ;;  %391 = vmatprep.subr.bf16.mxu1 %v1841_v6  ;;  %v1849_v11 = vld [vmem:[#allocation9 + $0xa0] ss:$16 sps:$4 sm:$0xff]   ;;  %v1850_v12 = vld [vmem:[#allocation9 + $0xa8] ss:$16 sps:$4 sm:$0xff]   ;;  %v1851_v13 = vld [vmem:[#allocation9 + $0x84] ss:$16 sps:$4 sm:$0xff]  }
  0x2e   :  { %v1853_v14 = vld [vmem:[#allocation9 + $0x8c] ss:$16 sps:$4 sm:$0xff]   ;;  %v1855_v15 = vld [vmem:[#allocation9 + $0x80] ss:$16 sps:$4 sm:$0xff]   ;;  %v1856_v16 = vld [vmem:[#allocation9 + $0x88] ss:$16 sps:$4 sm:$0xff]  }
  0x2f   :  { %v1857_v17 = vld [vmem:[#allocation9 + $0x64] ss:$16 sps:$4 sm:$0xff]   ;;  %v1859_v18 = vld [vmem:[#allocation9 + $0x6c] ss:$16 sps:$4 sm:$0xff]   ;;  %v1861_v19 = vld [vmem:[#allocation9 + $0x60] ss:$16 sps:$4 sm:$0xff]  }
  0x30   :  { %319 = vmatpush1.bf16.msra.mxu0 %v1843_v7  ;;  %392 = vmatpush1.bf16.msra.mxu1 %v1844_v8  ;;  %v1862_v20 = vld [vmem:[#allocation9 + $0x68] ss:$16 sps:$4 sm:$0xff]   ;;  %v1863_v21 = vld [vmem:[#allocation9 + $0x44] ss:$16 sps:$4 sm:$0xff]   ;;  %v1865_v22 = vld [vmem:[#allocation9 + $0x4c] ss:$16 sps:$4 sm:$0xff]   ;;  %v112_v7 = vlaneseq }
  0x31   :  { %320 = vmatprep.subr.bf16.mxu0 %v1845_v9  ;;  %393 = vmatprep.subr.bf16.mxu1 %v1847_v10  ;;  %v1867_v23 = vld [vmem:[#allocation9 + $0x40] ss:$16 sps:$4 sm:$0xff]   ;;  %v1868_v24 = vld [vmem:[#allocation9 + $0x48] ss:$16 sps:$4 sm:$0xff]   ;;  %v1869_v25 = vld [vmem:[#allocation9 + $0x24] ss:$16 sps:$4 sm:$0xff]  }
  0x32   :  { %v1871_v26 = vld [vmem:[#allocation9 + $0x2c] ss:$16 sps:$4 sm:$0xff]   ;;  %v1873_v27 = vld [vmem:[#allocation9 + $0x20] ss:$16 sps:$4 sm:$0xff]   ;;  %v1874_v28 = vld [vmem:[#allocation9 + $0x28] ss:$16 sps:$4 sm:$0xff]  }
  0x33   :  { %v1875_v29 = vld [vmem:[#allocation9 + $0x4] ss:$16 sps:$4 sm:$0xff]   ;;  %v1877_v30 = vld [vmem:[#allocation9 + $0xc] ss:$16 sps:$4 sm:$0xff]   ;;  %v1879_v31 = vld [vmem:[#allocation9] ss:$16 sps:$4 sm:$0xff]  }
  0x34   :  { %321 = vmatpush1.bf16.msra.mxu0 %v1849_v11  ;;  %394 = vmatpush1.bf16.msra.mxu1 %v1850_v12  ;;  %v1880_v32 = vld [vmem:[#allocation9 + $0x8] ss:$16 sps:$4 sm:$0xff]   ;;  %v2282_v33 = vld [vmem:[#allocation11 + $0xe4] ss:$16 sps:$4 sm:$0xff]   ;;  %v2284_v34 = vld [vmem:[#allocation11 + $0xec] ss:$16 sps:$4 sm:$0xff]  }
  0x35   :  { %322 = vmatprep.subr.bf16.mxu0 %v1851_v13  ;;  %395 = vmatprep.subr.bf16.mxu1 %v1853_v14  ;;  %v1881_v35 = vld [vmem:[#allocation6] sm:$0xff]   ;;  %v2288_v37 = vld [vmem:[#allocation11 + $0xe8] ss:$16 sps:$4 sm:$0xff]   ;;  %v2294_v39 = vld [vmem:[#allocation11 + $0xcc] ss:$16 sps:$4 sm:$0xff]   ;;  %v2229_v6 = vmov 0.0|0.0  }
  0x36   :  { %v2286_v36 = vld [vmem:[#allocation11 + $0xe0] ss:$16 sps:$4 sm:$0xff]   ;;  %v2292_v38 = vld [vmem:[#allocation11 + $0xc4] ss:$16 sps:$4 sm:$0xff]   ;;  %v2300_v41 = vld [vmem:[#allocation11 + $0xc8] ss:$16 sps:$4 sm:$0xff]  }
  0x37   :  { %v2296_v40 = vld [vmem:[#allocation11 + $0xc0] ss:$16 sps:$4 sm:$0xff]   ;;  %v2304_v42 = vld [vmem:[#allocation11 + $0xa4] ss:$16 sps:$4 sm:$0xff]   ;;  %v2306_v43 = vld [vmem:[#allocation11 + $0xac] ss:$16 sps:$4 sm:$0xff]  }
  0x38   :  { %323 = vmatpush1.bf16.msra.mxu0 %v1855_v15  ;;  %396 = vmatpush1.bf16.msra.mxu1 %v1856_v16  ;;  %v2310_v45 = vld [vmem:[#allocation11 + $0xa0] ss:$16 sps:$4 sm:$0xff]   ;;  %v2312_v46 = vld [vmem:[#allocation11 + $0xa8] ss:$16 sps:$4 sm:$0xff]   ;;  %v2316_v47 = vld [vmem:[#allocation11 + $0x84] ss:$16 sps:$4 sm:$0xff]  }
  0x39   :  { %324 = vmatprep.subr.bf16.mxu0 %v1857_v17  ;;  %397 = vmatprep.subr.bf16.mxu1 %v1859_v18  ;;  %v2320_v48 = vld [vmem:[#allocation11 + $0x8c] ss:$16 sps:$4 sm:$0xff]   ;;  %v2322_v49 = vld [vmem:[#allocation11 + $0x80] ss:$16 sps:$4 sm:$0xff]   ;;  %v2324_v50 = vld [vmem:[#allocation11 + $0x88] ss:$16 sps:$4 sm:$0xff]  }
  0x3a   :  { %v2328_v51 = vld [vmem:[#allocation11 + $0x64] ss:$16 sps:$4 sm:$0xff]   ;;  %v2332_v52 = vld [vmem:[#allocation11 + $0x6c] ss:$16 sps:$4 sm:$0xff]   ;;  %v2338_v54 = vld [vmem:[#allocation11 + $0x60] ss:$16 sps:$4 sm:$0xff]  }
  0x3b   :  { %v1907_v53 = vld [vmem:[#allocation6 + $0x10] sm:$0xff]   ;;  %v2340_v55 = vld [vmem:[#allocation11 + $0x68] ss:$16 sps:$4 sm:$0xff]   ;;  %v2346_v57 = vld [vmem:[#allocation11 + $0x4c] ss:$16 sps:$4 sm:$0xff]   ;;  %v113_v8 = vshrl.u32 %v112_v7, 7 }
  0x3c   :  { %325 = vmatpush1.bf16.msra.mxu0 %v1861_v19  ;;  %398 = vmatpush1.bf16.msra.mxu1 %v1862_v20  ;;  %v2344_v56 = vld [vmem:[#allocation11 + $0x44] ss:$16 sps:$4 sm:$0xff]   ;;  %v2350_v58 = vld [vmem:[#allocation11 + $0x40] ss:$16 sps:$4 sm:$0xff]   ;;  %v2352_v59 = vld [vmem:[#allocation11 + $0x48] ss:$16 sps:$4 sm:$0xff]  }
  0x3d   :  { %326 = vmatprep.subr.bf16.mxu0 %v1863_v21  ;;  %399 = vmatprep.subr.bf16.mxu1 %v1865_v22  ;;  %v2356_v60 = vld [vmem:[#allocation11 + $0x24] ss:$16 sps:$4 sm:$0xff]   ;;  %v2358_v61 = vld [vmem:[#allocation11 + $0x2c] ss:$16 sps:$4 sm:$0xff]   ;;  %v2364_v63 = vld [vmem:[#allocation11 + $0x20] ss:$16 sps:$4 sm:$0xff]  }
  0x3e   :  { %v1920_v62 = vld [vmem:[#allocation6 + $0x18] sm:$0xff]   ;;  %v2370_v2 = vld [vmem:[#allocation11 + $0x4] ss:$16 sps:$4 sm:$0xff]   ;;  %v2376_v4 = vld [vmem:[#allocation11] ss:$16 sps:$4 sm:$0xff]   ;;  %v122_v9 = vsub.s32 2, %v113_v8 }
  0x3f   :  { %v2366_v1 = vld [vmem:[#allocation11 + $0x28] ss:$16 sps:$4 sm:$0xff]   ;;  %v2372_v3 = vld [vmem:[#allocation11 + $0xc] ss:$16 sps:$4 sm:$0xff]   ;;  %v114_v10 = vsub.s32 0, %v113_v8  ;;  %v126_v11 = vsub.s32 3, %v113_v8 }
  0x40   :  { %327 = vmatpush1.bf16.msra.mxu0 %v1867_v23  ;;  %400 = vmatpush1.bf16.msra.mxu1 %v1868_v24  ;;  %v2378_v5 = vld [vmem:[#allocation11 + $0x8] ss:$16 sps:$4 sm:$0xff]   ;;  %v110_v12 = vld [vmem:[%s2831_s3] sm:$0xf]  ;;  %v118_v16 = vsub.s32 1, %v113_v8  ;;  %s2230_s3 = smov [#allocation13]  }
  0x41   :  { %328 = vmatprep.subr.bf16.mxu0 %v1869_v25  ;;  %401 = vmatprep.subr.bf16.mxu1 %v1871_v26  ;;  %v2429_v15 = vrot.slane %v110_v12, %v122_v9  ;;  %v115_v19 = vrot.slane %v110_v12, %v114_v10  ;;  %v2435_v20 = vrot.slane %v110_v12, %v126_v11  ;;  %s1679_s15 = sshll.u32 %s2230_s3, 4  ;;  %s2231_s16 = smov [#allocation15]   ;;  %s1680_s15 = int_to_ptr.vmem [resolvable:$true] %s1679_s15 }
  0x42   :  { %v119_v23 = vrot.slane %v110_v12, %v118_v16  ;;  %s1689_s17 = sshll.u32 %s2231_s16, 4  ;;  %s2232_s18 = smov [#allocation12]   ;;  %s1690_s17 = int_to_ptr.vmem [resolvable:$true] %s1689_s17 }
  0x43   :  { %s1666_s19 = sshll.u32 %s2232_s18, 4  ;;  %s2153_s20 = scalar_lea.vmem %s1680_s15, 128  ;;  %s1667_s19 = int_to_ptr.vmem [resolvable:$true] %s1666_s19 }
  0x44   :  { %329 = vmatpush1.bf16.msra.mxu0 %v1873_v27  ;;  %402 = vmatpush1.bf16.msra.mxu1 %v1874_v28  ;;  %p2154_p1 = scmp.ne.s32.totalorder %s1680_s15, %s2153_s20  ;;  %p2158_p2 = scmp.lt.s32.totalorder %s1680_s15, %s1680_s15 }
  0x45   :  { %330 = vmatprep.subr.bf16.mxu0 %v1875_v29  ;;  %403 = vmatprep.subr.bf16.mxu1 %v1877_v30  ;;  %p2159_p3 = scmp.lt.s32.totalorder %s2153_s20, %s2153_s20 }
  0x47   :  { %p2160_p4 = por %p2159_p3, %p2158_p2 }
  0x48   :  { %331 = vmatpush1.bf16.msra.mxu0 %v1879_v31  ;;  %404 = vmatpush1.bf16.msra.mxu1 %v1880_v32 }
  0x49   :  { %693 = vmatprep.subr.bf16.mxu0 %v2282_v33  ;;  %734 = vmatprep.subr.bf16.mxu1 %v2284_v34  ;;  %p2161_p5 = pnand %p2160_p4, %p2154_p1 }
  0x4b   :  { %349 = vmatmul.mubr.bf16.vlgmr.msra.gmra.mxu0 %v1881_v35  ;;  %422 = vmatmul.mubr.bf16.vlgmr.msra.gmra.mxu1 %v1881_v35 }
  0x4c   :  { %694 = vmatpush1.bf16.msra.mxu0 %v2286_v36  ;;  %735 = vmatpush1.bf16.msra.mxu1 %v2288_v37 }
  0x4d   :  { %695 = vmatprep.subr.bf16.mxu0 %v2292_v38  ;;  %736 = vmatprep.subr.bf16.mxu1 %v2294_v39 }
  0x4e   :  { %358 = vmatprep.mubr.bf16.mxu0 %v2835_v0  ;;  %431 = vmatprep.mubr.bf16.mxu1 %v2835_v0 }
  0x50   :  { %696 = vmatpush1.bf16.msra.mxu0 %v2296_v40  ;;  %737 = vmatpush1.bf16.msra.mxu1 %v2300_v41 }
  0x51   :  { %697 = vmatprep.subr.bf16.mxu0 %v2304_v42  ;;  %738 = vmatprep.subr.bf16.mxu1 %v2306_v43 }
  0x53   :  { %359 = vmatmul.mubr.bf16.gmra.mxu0 %v1894_v44  ;;  %432 = vmatmul.mubr.bf16.gmra.mxu1 %v1894_v44 }
  0x54   :  { %698 = vmatpush1.bf16.msra.mxu0 %v2310_v45  ;;  %739 = vmatpush1.bf16.msra.mxu1 %v2312_v46 }
  0x55   :  { %699 = vmatprep.subr.bf16.mxu0 %v2316_v47  ;;  %740 = vmatprep.subr.bf16.mxu1 %v2320_v48 }
  0x56   :  { %368 = vmatprep.mubr.bf16.mxu0 %v2835_v0  ;;  %441 = vmatprep.mubr.bf16.mxu1 %v2835_v0 }
  0x58   :  { %700 = vmatpush1.bf16.msra.mxu0 %v2322_v49  ;;  %741 = vmatpush1.bf16.msra.mxu1 %v2324_v50 }
  0x59   :  { %701 = vmatprep.subr.bf16.mxu0 %v2328_v51  ;;  %742 = vmatprep.subr.bf16.mxu1 %v2332_v52 }
  0x5b   :  { %369 = vmatmul.mubr.bf16.gmra.mxu0 %v1907_v53  ;;  %442 = vmatmul.mubr.bf16.gmra.mxu1 %v1907_v53 }
  0x5c   :  { %702 = vmatpush1.bf16.msra.mxu0 %v2338_v54  ;;  %743 = vmatpush1.bf16.msra.mxu1 %v2340_v55 }
  0x5d   :  { %703 = vmatprep.subr.bf16.mxu0 %v2344_v56  ;;  %744 = vmatprep.subr.bf16.mxu1 %v2346_v57 }
  0x5e   :  { %378 = vmatprep.mubr.bf16.mxu0 %v2835_v0  ;;  %451 = vmatprep.mubr.bf16.mxu1 %v2835_v0 }
  0x60   :  { %704 = vmatpush1.bf16.msra.mxu0 %v2350_v58  ;;  %745 = vmatpush1.bf16.msra.mxu1 %v2352_v59 }
  0x61   :  { %705 = vmatprep.subr.bf16.mxu0 %v2356_v60  ;;  %746 = vmatprep.subr.bf16.mxu1 %v2358_v61 }
  0x63   :  { %379 = vmatmul.mubr.bf16.gmra.mxu0 %v1920_v62  ;;  %452 = vmatmul.mubr.bf16.gmra.mxu1 %v1920_v62 }
  0x64   :  { %706 = vmatpush1.bf16.msra.mxu0 %v2364_v63  ;;  %747 = vmatpush1.bf16.msra.mxu1 %v2366_v1 }
  0x65   :  { %707 = vmatprep.subr.bf16.mxu0 %v2370_v2  ;;  %748 = vmatprep.subr.bf16.mxu1 %v2372_v3 }
  0x66   :  { %725 = vmatprep.mubr.bf16.mxu0 %v2835_v0  ;;  %766 = vmatprep.mubr.bf16.mxu1 %v2835_v0 }
  0x68   :  { %708 = vmatpush1.bf16.msra.mxu0 %v2376_v4  ;;  %749 = vmatpush1.bf16.msra.mxu1 %v2378_v5 }
  0x69   :  { %810 = vmatprep.subr.bf16.mxu0 %v2282_v33  ;;  %851 = vmatprep.subr.bf16.mxu1 %v2284_v34 }
  0x6b   :  { %726 = vmatmul.mubr.bf16.vlgmr.msra.gmra.mxu0 %v2229_v6  ;;  %767 = vmatmul.mubr.bf16.vlgmr.msra.gmra.mxu1 %v2229_v6 }
  0x6c   :  { %811 = vmatpush1.bf16.msra.mxu0 %v2286_v36  ;;  %852 = vmatpush1.bf16.msra.mxu1 %v2288_v37 }
  0x6d   :  { %812 = vmatprep.subr.bf16.mxu0 %v2292_v38  ;;  %853 = vmatprep.subr.bf16.mxu1 %v2294_v39 }
  0x6e   :  { %842 = vmatprep.mubr.bf16.mxu0 %v2835_v0  ;;  %883 = vmatprep.mubr.bf16.mxu1 %v2835_v0 }
  0x70   :  { %813 = vmatpush1.bf16.msra.mxu0 %v2296_v40  ;;  %854 = vmatpush1.bf16.msra.mxu1 %v2300_v41 }
  0x71   :  { %814 = vmatprep.subr.bf16.mxu0 %v2304_v42  ;;  %855 = vmatprep.subr.bf16.mxu1 %v2306_v43 }
  0x74   :  { %815 = vmatpush1.bf16.msra.mxu0 %v2310_v45  ;;  %856 = vmatpush1.bf16.msra.mxu1 %v2312_v46 }
  0x75   :  { %816 = vmatprep.subr.bf16.mxu0 %v2316_v47  ;;  %857 = vmatprep.subr.bf16.mxu1 %v2320_v48 }
  0x78   :  { %817 = vmatpush1.bf16.msra.mxu0 %v2322_v49  ;;  %858 = vmatpush1.bf16.msra.mxu1 %v2324_v50 }
  0x79   :  { %818 = vmatprep.subr.bf16.mxu0 %v2328_v51  ;;  %859 = vmatprep.subr.bf16.mxu1 %v2332_v52 }
  0x7c   :  { %819 = vmatpush1.bf16.msra.mxu0 %v2338_v54  ;;  %860 = vmatpush1.bf16.msra.mxu1 %v2340_v55 }
  0x7d   :  { %820 = vmatprep.subr.bf16.mxu0 %v2344_v56  ;;  %861 = vmatprep.subr.bf16.mxu1 %v2346_v57 }
  0x80   :  { %821 = vmatpush1.bf16.msra.mxu0 %v2350_v58  ;;  %862 = vmatpush1.bf16.msra.mxu1 %v2352_v59 }
  0x81   :  { %822 = vmatprep.subr.bf16.mxu0 %v2356_v60  ;;  %863 = vmatprep.subr.bf16.mxu1 %v2358_v61 }
  0x84   :  { %823 = vmatpush1.bf16.msra.mxu0 %v2364_v63  ;;  %864 = vmatpush1.bf16.msra.mxu1 %v2366_v1 }
  0x85   :  { %824 = vmatprep.subr.bf16.mxu0 %v2370_v2  ;;  %865 = vmatprep.subr.bf16.mxu1 %v2372_v3 }
  0x88   :  { %825 = vmatpush1.bf16.msra.mxu0 %v2376_v4  ;;  %866 = vmatpush1.bf16.msra.mxu1 %v2378_v5 }
  0x89   :  { %928 = vmatprep.subr.bf16.mxu0 %v2282_v33  ;;  %969 = vmatprep.subr.bf16.mxu1 %v2284_v34 }
 0x10b   :  { %v2425_v13 = vpop.f32.mrf.mxu0  ;;  %v2427_v14 = vpop.f32.mrf.mxu1 }
 0x10d   :  { %v2431_v17 = vpop.f32.mrf.mxu0  ;;  %v2433_v18 = vpop.f32.mrf.mxu1 }
 0x10f   :  { %v354_v21 = vpop.f32.mrf.mxu0  ;;  %v427_v22 = vpop.f32.mrf.mxu1 }
 0x110   :  { %v2437_v24 = vadd.f32 %v354_v21, %v115_v19  ;;  %v2440_v25 = vadd.f32 %v427_v22, %v2429_v15 }
 0x111   :  { %v356_v26 = vpop.f32.mrf.mxu0  ;;  %v429_v27 = vpop.f32.mrf.mxu1 }
 0x112   :  { %v2442_v28 = vadd.f32 %v356_v26, %v119_v23  ;;  %v2445_v29 = vadd.f32 %v429_v27, %v2435_v20 }
 0x113   :  { %v360_v30 = vpop.f32.mrf.mxu0  ;;  %v433_v31 = vpop.f32.mrf.mxu1 }
 0x114   :  { %v2447_v32 = vadd.f32 %v360_v30, %v115_v19  ;;  %v2450_v35 = vadd.f32 %v433_v31, %v2429_v15 }
 0x115   :  { %v362_v44 = vpop.f32.mrf.mxu0  ;;  %v435_v53 = vpop.f32.mrf.mxu1 }
 0x116   :  { %v2452_v62 = vadd.f32 %v362_v44, %v119_v23  ;;  %v2455_v6 = vadd.f32 %v435_v53, %v2435_v20 }
 0x117   :  { %v364_v7 = vpop.f32.mrf.mxu0  ;;  %v437_v8 = vpop.f32.mrf.mxu1 }
 0x118   :  { %2837 = vst [vmem:[#allocation20_spill] sm:$0xff] %v2455_v6  ;;  %v2457_v9 = vadd.f32 %v364_v7, %v115_v19  ;;  %v2460_v10 = vadd.f32 %v437_v8, %v2429_v15 }
 0x119   :  { %v366_v11 = vpop.f32.mrf.mxu0  ;;  %v439_v12 = vpop.f32.mrf.mxu1 }
 0x11a   :  { %2838 = vst [vmem:[#allocation21_spill] sm:$0xff] %v2457_v9  ;;  %2839 = vst [vmem:[#allocation22_spill] sm:$0xff] %v2460_v10  ;;  %v2462_v16 = vadd.f32 %v366_v11, %v119_v23  ;;  %v2465_v21 = vadd.f32 %v439_v12, %v2435_v20 }
 0x11b   :  { %v370_v22 = vpop.f32.mrf.mxu0  ;;  %v443_v26 = vpop.f32.mrf.mxu1 }
 0x11c   :  { %2840 = vst [vmem:[#allocation23_spill] sm:$0xff] %v2462_v16  ;;  %2841 = vst [vmem:[#allocation24_spill] sm:$0xff] %v2465_v21  ;;  %v2467_v27 = vadd.f32 %v370_v22, %v115_v19  ;;  %v2470_v30 = vadd.f32 %v443_v26, %v2429_v15 }
 0x11d   :  { %v372_v31 = vpop.f32.mrf.mxu0  ;;  %v445_v44 = vpop.f32.mrf.mxu1 }
 0x11e   :  { %2842 = vst [vmem:[#allocation25_spill] sm:$0xff] %v2467_v27  ;;  %2843 = vst [vmem:[#allocation26_spill] sm:$0xff] %v2470_v30  ;;  %v2472_v53 = vadd.f32 %v372_v31, %v119_v23  ;;  %v2475_v7 = vadd.f32 %v445_v44, %v2435_v20 }
 0x11f   :  { %v374_v8 = vpop.f32.mrf.mxu0  ;;  %v447_v11 = vpop.f32.mrf.mxu1 }
 0x120   :  { %2844 = vst [vmem:[#allocation27_spill] sm:$0xff] %v2472_v53  ;;  %2845 = vst [vmem:[#allocation28_spill] sm:$0xff] %v2475_v7  ;;  %v2477_v0 = vadd.f32 %v374_v8, %v115_v19  ;;  %v2480_v12 = vadd.f32 %v447_v11, %v2429_v15 }
 0x121   :  { %v376_v21 = vpop.f32.mrf.mxu0  ;;  %v449_v22 = vpop.f32.mrf.mxu1 }
 0x122   :  { %2846 = vst [vmem:[#allocation29_spill] sm:$0xff] %v2477_v0  ;;  %2847 = vst [vmem:[#allocation30_spill] sm:$0xff] %v2480_v12  ;;  %v2482_v27 = vadd.f32 %v376_v21, %v119_v23  ;;  %v2485_v26 = vadd.f32 %v449_v22, %v2435_v20 }
 0x123   :  { %v380_v30 = vpop.f32.mrf.mxu0  ;;  %v453_v31 = vpop.f32.mrf.mxu1 }
 0x124   :  { %2848 = vst [vmem:[#allocation31_spill] sm:$0xff] %v2482_v27  ;;  %2849 = vst [vmem:[#allocation32_spill] sm:$0xff] %v2485_v26  ;;  %v2487_v53 = vadd.f32 %v380_v30, %v115_v19  ;;  %v2490_v44 = vadd.f32 %v453_v31, %v2429_v15 }
 0x125   :  { %v382_v7 = vpop.f32.mrf.mxu0  ;;  %v455_v8 = vpop.f32.mrf.mxu1 }
 0x126   :  { %2850 = vst [vmem:[#allocation33_spill] sm:$0xff] %v2487_v53  ;;  %2851 = vst [vmem:[#allocation34_spill] sm:$0xff] %v2490_v44  ;;  %v2492_v0 = vadd.f32 %v382_v7, %v119_v23  ;;  %v2495_v11 = vadd.f32 %v455_v8, %v2435_v20  ;;  %v351_v53 = vadd.f32 %v2425_v13, %v115_v19 }
 0x127   :  { %v384_v12 = vpop.f32.mrf.mxu0  ;;  %v457_v21 = vpop.f32.mrf.mxu1  ;;  %v353_v8 = vadd.f32 %v2431_v17, %v119_v23 }
 0x128   :  { %2852 = vst [vmem:[#allocation35_spill] sm:$0xff] %v2492_v0  ;;  %2853 = vst [vmem:[#allocation36_spill] sm:$0xff] %v2495_v11  ;;  %v2497_v27 = vadd.f32 %v384_v12, %v115_v19  ;;  %v2500_v22 = vadd.f32 %v457_v21, %v2429_v15  ;;  %v424_v19 = vadd.f32 %v2427_v14, %v2429_v15 }
 0x129   :  { %v386_v26 = vpop.f32.mrf.mxu0  ;;  %v459_v30 = vpop.f32.mrf.mxu1 }
 0x12a   :  { %2854 = vst [vmem:[#allocation37_spill] sm:$0xff] %v2497_v27  ;;  %2855 = vst [vmem:[#allocation38_spill] sm:$0xff] %v2500_v22  ;;  %v2503_v31 = vadd.f32 %v386_v26, %v119_v23  ;;  %v2506_v44 = vadd.f32 %v459_v30, %v2435_v20  ;;  %v426_v30 = vadd.f32 %v2433_v18, %v2435_v20 }
 0x12b   :  { %v727_v7 = vpop.f32.mrf.mxu0  ;;  %v768_v0 = vpop.f32.mrf.mxu1 }
 0x12c   :  { %v775_v11 = vadd.f32 %v727_v7, %v351_v53  ;;  %v777_v26 = vadd.f32 %v768_v0, %v424_v19 }
 0x12d   :  { %v729_v10 = vpop.f32.mrf.mxu0  ;;  %v770_v12 = vpop.f32.mrf.mxu1 }
 0x12e   :  { %v1774_v27 = vmul.f32 -1.442695, %v775_v11  ;;  %v776_v16 = vadd.f32 %v729_v10, %v353_v8  ;;  %v1776_v17 = vmul.f32 -1.442695, %v777_v26  ;;  %v778_v53 = vadd.f32 %v770_v12, %v426_v30 }
 0x12f   :  { %v731_v21 = vpop.f32.mrf.mxu0  ;;  %v772_v22 = vpop.f32.mrf.mxu1 }
 0x130   :  { %1933 = vpow2.f32 %v1774_v27  ;;  %v1775_v9 = vmul.f32 -1.442695, %v776_v16  ;;  %v2856_v21 = vmov 0  }
 0x131   :  { %v732_v6 = vpop.f32.mrf.mxu0  ;;  %v773_v13 = vpop.f32.mrf.mxu1 }
 0x132   :  { %1935 = vpow2.f32 %v1775_v9 }
 0x133   :  { %1937 = vpow2.f32 %v1776_v17 }
 0x13d   :  { %v1934_v23 = vpop.eup %1933 }
 0x13e   :  { %v788_v7 = vadd.f32 1.0, %v1934_v23 }
 0x13f   :  { %v1936_v11 = vpop.eup %1935 }
 0x140   :  { %1939 = vrcp.f32 %v788_v7  ;;  %v789_v10 = vadd.f32 1.0, %v1936_v11  ;;  %v1938_v6 = vpop.eup %1937 }
 0x141   :  { %1941 = vtanh.f32 %v778_v53  ;;  %v790_v22 = vadd.f32 1.0, %v1938_v6 }
 0x142   :  { %1943 = vrcp.f32 %v789_v10 }
 0x143   :  { %1945 = vrcp.f32 %v790_v22 }
 0x14d   :  { %v1940_v16 = vpop.eup %1939 }
 0x14e   :  { %v1942_v9 = vpop.eup %1941 }
 0x14f   :  { %v1944_v27 = vpop.eup %1943  ;;  %v799_v0 = vmul.f32 %v1942_v9, %v1940_v16 }
 0x150   :  { %v798_v14 = vmul.f32 0.0, %v1944_v27  ;;  %v1946_v18 = vpop.eup %1945 }
 0x152   :  { %v2513_v15 = vadd.f32 %v799_v0, %v798_v14 }
 0x154   :  { %1947 = vtanh.f32 %v2513_v15 }
 0x161   :  { %v1948_v20 = vpop.eup %1947 }
 0x162   :  { %v2516_v8 = vmul.f32 %v1948_v20, %v1946_v18 }
 0x164   :  { %v809_v12 = vpack.c.bf16 %v2516_v8, %v2516_v8 }
 0x166   :  { %843 = vmatmul.mubr.bf16.vlgmr.msra.gmra.mxu0 %v809_v12  ;;  %884 = vmatmul.mubr.bf16.vlgmr.msra.gmra.mxu1 %v809_v12 }
 0x167   :  { %929 = vmatpush1.bf16.msra.mxu0 %v2286_v36  ;;  %970 = vmatpush1.bf16.msra.mxu1 %v2288_v37 }
 0x168   :  { %930 = vmatprep.subr.bf16.mxu0 %v2292_v38  ;;  %971 = vmatprep.subr.bf16.mxu1 %v2294_v39 }
 0x169   :  { %960 = vmatprep.mubr.bf16.mxu0 %v2856_v21  ;;  %1001 = vmatprep.mubr.bf16.mxu1 %v2856_v21 }
 0x16b   :  { %931 = vmatpush1.bf16.msra.mxu0 %v2296_v40  ;;  %972 = vmatpush1.bf16.msra.mxu1 %v2300_v41 }
 0x16c   :  { %932 = vmatprep.subr.bf16.mxu0 %v2304_v42  ;;  %973 = vmatprep.subr.bf16.mxu1 %v2306_v43 }
 0x16f   :  { %933 = vmatpush1.bf16.msra.mxu0 %v2310_v45  ;;  %974 = vmatpush1.bf16.msra.mxu1 %v2312_v46 }
 0x170   :  { %934 = vmatprep.subr.bf16.mxu0 %v2316_v47  ;;  %975 = vmatprep.subr.bf16.mxu1 %v2320_v48 }
 0x173   :  { %935 = vmatpush1.bf16.msra.mxu0 %v2322_v49  ;;  %976 = vmatpush1.bf16.msra.mxu1 %v2324_v50 }
 0x174   :  { %936 = vmatprep.subr.bf16.mxu0 %v2328_v51  ;;  %977 = vmatprep.subr.bf16.mxu1 %v2332_v52 }
 0x177   :  { %937 = vmatpush1.bf16.msra.mxu0 %v2338_v54  ;;  %978 = vmatpush1.bf16.msra.mxu1 %v2340_v55 }
 0x178   :  { %938 = vmatprep.subr.bf16.mxu0 %v2344_v56  ;;  %979 = vmatprep.subr.bf16.mxu1 %v2346_v57 }
 0x17b   :  { %939 = vmatpush1.bf16.msra.mxu0 %v2350_v58  ;;  %980 = vmatpush1.bf16.msra.mxu1 %v2352_v59 }
 0x17c   :  { %940 = vmatprep.subr.bf16.mxu0 %v2356_v60  ;;  %981 = vmatprep.subr.bf16.mxu1 %v2358_v61 }
 0x17f   :  { %941 = vmatpush1.bf16.msra.mxu0 %v2364_v63  ;;  %982 = vmatpush1.bf16.msra.mxu1 %v2366_v1 }
 0x180   :  { %942 = vmatprep.subr.bf16.mxu0 %v2370_v2  ;;  %983 = vmatprep.subr.bf16.mxu1 %v2372_v3 }
 0x183   :  { %943 = vmatpush1.bf16.msra.mxu0 %v2376_v4  ;;  %984 = vmatpush1.bf16.msra.mxu1 %v2378_v5 }
 0x184   :  { %1046 = vmatprep.subr.bf16.mxu0 %v2282_v33  ;;  %1087 = vmatprep.subr.bf16.mxu1 %v2284_v34 }
 0x226   :  { %v844_v13 = vpop.f32.mrf.mxu0  ;;  %v885_v19 = vpop.f32.mrf.mxu1 }
 0x227   :  { %v892_v26 = vadd.f32 %v844_v13, %v2437_v24  ;;  %v894_v9 = vadd.f32 %v885_v19, %v2440_v25 }
 0x228   :  { %v846_v30 = vpop.f32.mrf.mxu0  ;;  %v887_v17 = vpop.f32.mrf.mxu1 }
 0x229   :  { %v1777_v23 = vmul.f32 -1.442695, %v892_v26  ;;  %v893_v53 = vadd.f32 %v846_v30, %v2442_v28  ;;  %v1779_v27 = vmul.f32 -1.442695, %v894_v9  ;;  %v895_v22 = vadd.f32 %v887_v17, %v2445_v29 }
 0x22a   :  { %v848_v7 = vpop.f32.mrf.mxu0  ;;  %v889_v11 = vpop.f32.mrf.mxu1 }
 0x22b   :  { %1949 = vpow2.f32 %v1777_v23  ;;  %v1778_v10 = vmul.f32 -1.442695, %v893_v53 }
 0x22c   :  { %v849_v6 = vpop.f32.mrf.mxu0  ;;  %v890_v16 = vpop.f32.mrf.mxu1 }
 0x22d   :  { %1951 = vpow2.f32 %v1778_v10 }
 0x22e   :  { %1953 = vpow2.f32 %v1779_v27 }
 0x22f   :  { %1955 = vtanh.f32 %v895_v22 }
 0x238   :  { %v1950_v14 = vpop.eup %1949 }
 0x239   :  { %v905_v0 = vadd.f32 1.0, %v1950_v14 }
 0x23a   :  { %v1952_v24 = vpop.eup %1951 }
 0x23b   :  { %1957 = vrcp.f32 %v905_v0  ;;  %v906_v18 = vadd.f32 1.0, %v1952_v24  ;;  %v1954_v28 = vpop.eup %1953 }
 0x23c   :  { %v1956_v20 = vpop.eup %1955  ;;  %v907_v30 = vadd.f32 1.0, %v1954_v28 }
 0x23d   :  { %1959 = vrcp.f32 %v906_v18 }
 0x23e   :  { %1961 = vrcp.f32 %v907_v30 }
 0x248   :  { %v1958_v12 = vpop.eup %1957 }
 0x249   :  { %v916_v13 = vmul.f32 %v1958_v12, %v1956_v20  ;;  %v2857_v20 = vld [vmem:[#allocation20_spill] sm:$0xff] }
 0x24a   :  { %v1960_v26 = vpop.eup %1959 }
 0x24b   :  { %v915_v23 = vmul.f32 %v1960_v26, %v2513_v15  ;;  %v1962_v29 = vpop.eup %1961 }
 0x24d   :  { %v2559_v25 = vadd.f32 %v916_v13, %v915_v23 }
 0x24f   :  { %1963 = vtanh.f32 %v2559_v25 }
 0x25c   :  { %v1964_v19 = vpop.eup %1963 }
 0x25d   :  { %v919_v17 = vmul.f32 %v1964_v19, %v1962_v29 }
 0x25f   :  { %v927_v53 = vpack.c.bf16 %v919_v17, %v919_v17  ;;  %v1801_v7 = vpack.c.bf16 %v919_v17, %v2516_v8 }
 0x261   :  { %961 = vmatmul.mubr.bf16.vlgmr.msra.gmra.mxu0 %v927_v53  ;;  %1002 = vmatmul.mubr.bf16.vlgmr.msra.gmra.mxu1 %v927_v53  ;;  %1802 = vst [vmem:[#allocation12] sm:$0xff] %v1801_v7  }
 0x262   :  { %1047 = vmatpush1.bf16.msra.mxu0 %v2286_v36  ;;  %1088 = vmatpush1.bf16.msra.mxu1 %v2288_v37 }
 0x263   :  { %1048 = vmatprep.subr.bf16.mxu0 %v2292_v38  ;;  %1089 = vmatprep.subr.bf16.mxu1 %v2294_v39 }
 0x264   :  { %1078 = vmatprep.mubr.bf16.mxu0 %v2856_v21  ;;  %1119 = vmatprep.mubr.bf16.mxu1 %v2856_v21 }
 0x266   :  { %1049 = vmatpush1.bf16.msra.mxu0 %v2296_v40  ;;  %1090 = vmatpush1.bf16.msra.mxu1 %v2300_v41 }
 0x267   :  { %1050 = vmatprep.subr.bf16.mxu0 %v2304_v42  ;;  %1091 = vmatprep.subr.bf16.mxu1 %v2306_v43 }
 0x26a   :  { %1051 = vmatpush1.bf16.msra.mxu0 %v2310_v45  ;;  %1092 = vmatpush1.bf16.msra.mxu1 %v2312_v46 }
 0x26b   :  { %1052 = vmatprep.subr.bf16.mxu0 %v2316_v47  ;;  %1093 = vmatprep.subr.bf16.mxu1 %v2320_v48 }
 0x26e   :  { %1053 = vmatpush1.bf16.msra.mxu0 %v2322_v49  ;;  %1094 = vmatpush1.bf16.msra.mxu1 %v2324_v50 }
 0x26f   :  { %1054 = vmatprep.subr.bf16.mxu0 %v2328_v51  ;;  %1095 = vmatprep.subr.bf16.mxu1 %v2332_v52 }
 0x272   :  { %1055 = vmatpush1.bf16.msra.mxu0 %v2338_v54  ;;  %1096 = vmatpush1.bf16.msra.mxu1 %v2340_v55 }
 0x273   :  { %1056 = vmatprep.subr.bf16.mxu0 %v2344_v56  ;;  %1097 = vmatprep.subr.bf16.mxu1 %v2346_v57 }
 0x276   :  { %1057 = vmatpush1.bf16.msra.mxu0 %v2350_v58  ;;  %1098 = vmatpush1.bf16.msra.mxu1 %v2352_v59 }
 0x277   :  { %1058 = vmatprep.subr.bf16.mxu0 %v2356_v60  ;;  %1099 = vmatprep.subr.bf16.mxu1 %v2358_v61 }
 0x27a   :  { %1059 = vmatpush1.bf16.msra.mxu0 %v2364_v63  ;;  %1100 = vmatpush1.bf16.msra.mxu1 %v2366_v1 }
 0x27b   :  { %1060 = vmatprep.subr.bf16.mxu0 %v2370_v2  ;;  %1101 = vmatprep.subr.bf16.mxu1 %v2372_v3 }
 0x27e   :  { %1061 = vmatpush1.bf16.msra.mxu0 %v2376_v4  ;;  %1102 = vmatpush1.bf16.msra.mxu1 %v2378_v5 }
 0x27f   :  { %1164 = vmatprep.subr.bf16.mxu0 %v2282_v33  ;;  %1205 = vmatprep.subr.bf16.mxu1 %v2284_v34 }
 0x321   :  { %v962_v15 = vpop.f32.mrf.mxu0  ;;  %v1003_v8 = vpop.f32.mrf.mxu1 }
 0x322   :  { %v1010_v11 = vadd.f32 %v962_v15, %v2447_v32  ;;  %v1012_v18 = vadd.f32 %v1003_v8, %v2450_v35 }
 0x323   :  { %v964_v10 = vpop.f32.mrf.mxu0  ;;  %v1005_v6 = vpop.f32.mrf.mxu1 }
 0x324   :  { %v1780_v16 = vmul.f32 -1.442695, %v1010_v11  ;;  %v1011_v9 = vadd.f32 %v964_v10, %v2452_v62  ;;  %v1782_v28 = vmul.f32 -1.442695, %v1012_v18  ;;  %v1013_v12 = vadd.f32 %v1005_v6, %v2857_v20 }
 0x325   :  { %v966_v27 = vpop.f32.mrf.mxu0  ;;  %v1007_v22 = vpop.f32.mrf.mxu1 }
 0x326   :  { %1965 = vpow2.f32 %v1780_v16  ;;  %v1781_v14 = vmul.f32 -1.442695, %v1011_v9  ;;  %v2858_v16 = vld [vmem:[#allocation21_spill] sm:$0xff] }
 0x327   :  { %v967_v0 = vpop.f32.mrf.mxu0  ;;  %v1008_v24 = vpop.f32.mrf.mxu1 }
 0x328   :  { %1967 = vpow2.f32 %v1781_v14  ;;  %v2859_v0 = vld [vmem:[#allocation23_spill] sm:$0xff] }
 0x329   :  { %1969 = vpow2.f32 %v1782_v28 }
 0x32a   :  { %1971 = vtanh.f32 %v1013_v12 }
 0x333   :  { %v1966_v13 = vpop.eup %1965 }
 0x334   :  { %v1023_v26 = vadd.f32 1.0, %v1966_v13 }
 0x335   :  { %v1968_v32 = vpop.eup %1967 }
 0x336   :  { %1973 = vrcp.f32 %v1023_v26  ;;  %v1024_v30 = vadd.f32 1.0, %v1968_v32  ;;  %v1970_v62 = vpop.eup %1969  ;;  %v2860_v26 = vld [vmem:[#allocation22_spill] sm:$0xff] }
 0x337   :  { %v1972_v23 = vpop.eup %1971  ;;  %v1025_v53 = vadd.f32 1.0, %v1970_v62 }
 0x338   :  { %1975 = vrcp.f32 %v1024_v30 }
 0x339   :  { %1977 = vrcp.f32 %v1025_v53 }
 0x343   :  { %v1974_v29 = vpop.eup %1973 }
 0x344   :  { %v1034_v19 = vmul.f32 %v1974_v29, %v1972_v23 }
 0x345   :  { %v1976_v17 = vpop.eup %1975 }
 0x346   :  { %v1033_v7 = vmul.f32 %v1976_v17, %v2559_v25  ;;  %v1978_v15 = vpop.eup %1977 }
 0x348   :  { %v2602_v35 = vadd.f32 %v1034_v19, %v1033_v7 }
 0x34a   :  { %1979 = vtanh.f32 %v2602_v35 }
 0x357   :  { %v1980_v8 = vpop.eup %1979 }
 0x358   :  { %v2605_v11 = vmul.f32 %v1980_v8, %v1978_v15 }
 0x35a   :  { %v1045_v10 = vpack.c.bf16 %v2605_v11, %v2605_v11 }
 0x35c   :  { %1079 = vmatmul.mubr.bf16.vlgmr.msra.gmra.mxu0 %v1045_v10  ;;  %1120 = vmatmul.mubr.bf16.vlgmr.msra.gmra.mxu1 %v1045_v10 }
 0x35d   :  { %1165 = vmatpush1.bf16.msra.mxu0 %v2286_v36  ;;  %1206 = vmatpush1.bf16.msra.mxu1 %v2288_v37 }
 0x35e   :  { %1166 = vmatprep.subr.bf16.mxu0 %v2292_v38  ;;  %1207 = vmatprep.subr.bf16.mxu1 %v2294_v39 }
 0x35f   :  { %1196 = vmatprep.mubr.bf16.mxu0 %v2856_v21  ;;  %1237 = vmatprep.mubr.bf16.mxu1 %v2856_v21 }
 0x361   :  { %1167 = vmatpush1.bf16.msra.mxu0 %v2296_v40  ;;  %1208 = vmatpush1.bf16.msra.mxu1 %v2300_v41 }
 0x362   :  { %1168 = vmatprep.subr.bf16.mxu0 %v2304_v42  ;;  %1209 = vmatprep.subr.bf16.mxu1 %v2306_v43 }
 0x365   :  { %1169 = vmatpush1.bf16.msra.mxu0 %v2310_v45  ;;  %1210 = vmatpush1.bf16.msra.mxu1 %v2312_v46 }
 0x366   :  { %1170 = vmatprep.subr.bf16.mxu0 %v2316_v47  ;;  %1211 = vmatprep.subr.bf16.mxu1 %v2320_v48 }
 0x369   :  { %1171 = vmatpush1.bf16.msra.mxu0 %v2322_v49  ;;  %1212 = vmatpush1.bf16.msra.mxu1 %v2324_v50 }
 0x36a   :  { %1172 = vmatprep.subr.bf16.mxu0 %v2328_v51  ;;  %1213 = vmatprep.subr.bf16.mxu1 %v2332_v52 }
 0x36d   :  { %1173 = vmatpush1.bf16.msra.mxu0 %v2338_v54  ;;  %1214 = vmatpush1.bf16.msra.mxu1 %v2340_v55 }
 0x36e   :  { %1174 = vmatprep.subr.bf16.mxu0 %v2344_v56  ;;  %1215 = vmatprep.subr.bf16.mxu1 %v2346_v57 }
 0x371   :  { %1175 = vmatpush1.bf16.msra.mxu0 %v2350_v58  ;;  %1216 = vmatpush1.bf16.msra.mxu1 %v2352_v59 }
 0x372   :  { %1176 = vmatprep.subr.bf16.mxu0 %v2356_v60  ;;  %1217 = vmatprep.subr.bf16.mxu1 %v2358_v61 }
 0x375   :  { %1177 = vmatpush1.bf16.msra.mxu0 %v2364_v63  ;;  %1218 = vmatpush1.bf16.msra.mxu1 %v2366_v1 }
 0x376   :  { %1178 = vmatprep.subr.bf16.mxu0 %v2370_v2  ;;  %1219 = vmatprep.subr.bf16.mxu1 %v2372_v3 }
 0x379   :  { %1179 = vmatpush1.bf16.msra.mxu0 %v2376_v4  ;;  %1220 = vmatpush1.bf16.msra.mxu1 %v2378_v5 }
 0x37a   :  { %1282 = vmatprep.subr.bf16.mxu0 %v2282_v33  ;;  %1323 = vmatprep.subr.bf16.mxu1 %v2284_v34  ;;  %v2861_v34 = vld [vmem:[#allocation24_spill] sm:$0xff] }
 0x41c   :  { %v1080_v25 = vpop.f32.mrf.mxu0  ;;  %v1121_v6 = vpop.f32.mrf.mxu1 }
 0x41d   :  { %v1128_v9 = vadd.f32 %v1080_v25, %v2858_v16  ;;  %v1130_v33 = vadd.f32 %v1121_v6, %v2860_v26 }
 0x41e   :  { %v1082_v27 = vpop.f32.mrf.mxu0  ;;  %v1123_v22 = vpop.f32.mrf.mxu1 }
 0x41f   :  { %v1783_v14 = vmul.f32 -1.442695, %v1128_v9  ;;  %v1129_v24 = vadd.f32 %v1082_v27, %v2859_v0  ;;  %v1785_v32 = vmul.f32 -1.442695, %v1130_v33  ;;  %v1131_v30 = vadd.f32 %v1123_v22, %v2861_v34 }
 0x420   :  { %v1084_v18 = vpop.f32.mrf.mxu0  ;;  %v1125_v28 = vpop.f32.mrf.mxu1 }
 0x421   :  { %1981 = vpow2.f32 %v1783_v14  ;;  %v1784_v20 = vmul.f32 -1.442695, %v1129_v24 }
 0x422   :  { %v1085_v12 = vpop.f32.mrf.mxu0  ;;  %v1126_v13 = vpop.f32.mrf.mxu1 }
 0x423   :  { %1983 = vpow2.f32 %v1784_v20 }
 0x424   :  { %1985 = vpow2.f32 %v1785_v32 }
 0x425   :  { %1987 = vtanh.f32 %v1131_v30 }
 0x42e   :  { %v1982_v62 = vpop.eup %1981 }
 0x42f   :  { %v1141_v23 = vadd.f32 1.0, %v1982_v62 }
 0x430   :  { %v1984_v29 = vpop.eup %1983 }
 0x431   :  { %1989 = vrcp.f32 %v1141_v23  ;;  %v1142_v19 = vadd.f32 1.0, %v1984_v29  ;;  %v1986_v17 = vpop.eup %1985 }
 0x432   :  { %v1988_v53 = vpop.eup %1987  ;;  %v1143_v10 = vadd.f32 1.0, %v1986_v17  ;;  %v2705_v17 = vld [vmem:[#allocation11 + $0xe8] ss:$16 sps:$4 sm:$0xff]  }
 0x433   :  { %1991 = vrcp.f32 %v1142_v19  ;;  %v2702_v19 = vld [vmem:[#allocation11 + $0xe0] ss:$16 sps:$4 sm:$0xff]  }
 0x434   :  { %1993 = vrcp.f32 %v1143_v10  ;;  %v2722_v10 = vld [vmem:[#allocation11 + $0xa4] ss:$16 sps:$4 sm:$0xff]  }
 0x43e   :  { %v1990_v7 = vpop.eup %1989 }
 0x43f   :  { %v1152_v15 = vmul.f32 %v1990_v7, %v1988_v53  ;;  %v2708_v53 = vld [vmem:[#allocation11 + $0xc4] ss:$16 sps:$4 sm:$0xff]   ;;  %v2711_v7 = vld [vmem:[#allocation11 + $0xcc] ss:$16 sps:$4 sm:$0xff]  }
 0x440   :  { %v1992_v8 = vpop.eup %1991 }
 0x441   :  { %v1151_v25 = vmul.f32 %v1992_v8, %v2602_v35  ;;  %v1994_v16 = vpop.eup %1993  ;;  %v2719_v8 = vld [vmem:[#allocation11 + $0xc8] ss:$16 sps:$4 sm:$0xff]  }
 0x443   :  { %v2648_v6 = vadd.f32 %v1152_v15, %v1151_v25  ;;  %v2716_v15 = vld [vmem:[#allocation11 + $0xc0] ss:$16 sps:$4 sm:$0xff]   ;;  %v2725_v25 = vld [vmem:[#allocation11 + $0xac] ss:$16 sps:$4 sm:$0xff]  }
 0x445   :  { %1995 = vtanh.f32 %v2648_v6 }
 0x452   :  { %v1996_v9 = vpop.eup %1995 }
 0x453   :  { %v1155_v27 = vmul.f32 %v1996_v9, %v1994_v16  ;;  %v2731_v16 = vld [vmem:[#allocation11 + $0xa8] ss:$16 sps:$4 sm:$0xff]   ;;  %v2734_v9 = vld [vmem:[#allocation11 + $0x84] ss:$16 sps:$4 sm:$0xff]  }
 0x455   :  { %v1163_v22 = vpack.c.bf16 %v1155_v27, %v1155_v27  ;;  %v1806_v14 = vpack.c.bf16 %v1155_v27, %v2605_v11  ;;  %v2737_v27 = vld [vmem:[#allocation11 + $0x8c] ss:$16 sps:$4 sm:$0xff]  }
 0x457   :  { %1197 = vmatmul.mubr.bf16.vlgmr.msra.gmra.mxu0 %v1163_v22  ;;  %1238 = vmatmul.mubr.bf16.vlgmr.msra.gmra.mxu1 %v1163_v22  ;;  %1818 = vst [vmem:[#allocation12 + $0x8] sm:$0xff] %v1806_v14   ;;  %v2740_v22 = vld [vmem:[#allocation11 + $0x80] ss:$16 sps:$4 sm:$0xff]   ;;  %v2743_v14 = vld [vmem:[#allocation11 + $0x88] ss:$16 sps:$4 sm:$0xff]  }
 0x458   :  { %1283 = vmatpush1.bf16.msra.mxu0 %v2286_v36  ;;  %1324 = vmatpush1.bf16.msra.mxu1 %v2288_v37  ;;  %v2684_v36 = vld [vmem:[#allocation11 + $0xe4] ss:$16 sps:$4 sm:$0xff]   ;;  %v2687_v37 = vld [vmem:[#allocation11 + $0xec] ss:$16 sps:$4 sm:$0xff]  }
 0x459   :  { %1284 = vmatprep.subr.bf16.mxu0 %v2292_v38  ;;  %1325 = vmatprep.subr.bf16.mxu1 %v2294_v39 }
 0x45a   :  { %1314 = vmatprep.mubr.bf16.mxu0 %v2856_v21  ;;  %1355 = vmatprep.mubr.bf16.mxu1 %v2856_v21 }
 0x45c   :  { %1285 = vmatpush1.bf16.msra.mxu0 %v2296_v40  ;;  %1326 = vmatpush1.bf16.msra.mxu1 %v2300_v41  ;;  %v2862_v40 = vld [vmem:[#allocation25_spill] sm:$0xff] }
 0x45d   :  { %1286 = vmatprep.subr.bf16.mxu0 %v2304_v42  ;;  %1327 = vmatprep.subr.bf16.mxu1 %v2306_v43 }
 0x460   :  { %1287 = vmatpush1.bf16.msra.mxu0 %v2310_v45  ;;  %1328 = vmatpush1.bf16.msra.mxu1 %v2312_v46  ;;  %v2863_v46 = vld [vmem:[#allocation27_spill] sm:$0xff] }
 0x461   :  { %1288 = vmatprep.subr.bf16.mxu0 %v2316_v47  ;;  %1329 = vmatprep.subr.bf16.mxu1 %v2320_v48 }
 0x464   :  { %1289 = vmatpush1.bf16.msra.mxu0 %v2322_v49  ;;  %1330 = vmatpush1.bf16.msra.mxu1 %v2324_v50 }
 0x465   :  { %1290 = vmatprep.subr.bf16.mxu0 %v2328_v51  ;;  %1331 = vmatprep.subr.bf16.mxu1 %v2332_v52 }
 0x468   :  { %1291 = vmatpush1.bf16.msra.mxu0 %v2338_v54  ;;  %1332 = vmatpush1.bf16.msra.mxu1 %v2340_v55  ;;  %v2864_v54 = vld [vmem:[#allocation26_spill] sm:$0xff] }
 0x469   :  { %1292 = vmatprep.subr.bf16.mxu0 %v2344_v56  ;;  %1333 = vmatprep.subr.bf16.mxu1 %v2346_v57  ;;  %v2865_v57 = vld [vmem:[#allocation28_spill] sm:$0xff] }
 0x46c   :  { %1293 = vmatpush1.bf16.msra.mxu0 %v2350_v58  ;;  %1334 = vmatpush1.bf16.msra.mxu1 %v2352_v59 }
 0x46d   :  { %1294 = vmatprep.subr.bf16.mxu0 %v2356_v60  ;;  %1335 = vmatprep.subr.bf16.mxu1 %v2358_v61 }
 0x470   :  { %1295 = vmatpush1.bf16.msra.mxu0 %v2364_v63  ;;  %1336 = vmatpush1.bf16.msra.mxu1 %v2366_v1 }
 0x471   :  { %1296 = vmatprep.subr.bf16.mxu0 %v2370_v2  ;;  %1337 = vmatprep.subr.bf16.mxu1 %v2372_v3 }
 0x474   :  { %1297 = vmatpush1.bf16.msra.mxu0 %v2376_v4  ;;  %1338 = vmatpush1.bf16.msra.mxu1 %v2378_v5 }
 0x475   :  { %1400 = vmatprep.subr.bf16.mxu0 %v2684_v36  ;;  %1441 = vmatprep.subr.bf16.mxu1 %v2687_v37 }
 0x517   :  { %v1198_v38 = vpop.f32.mrf.mxu0  ;;  %v1239_v39 = vpop.f32.mrf.mxu1 }
 0x518   :  { %v1246_v41 = vadd.f32 %v1198_v38, %v2862_v40  ;;  %v1248_v55 = vadd.f32 %v1239_v39, %v2864_v54  ;;  %v2746_v38 = vld [vmem:[#allocation11 + $0x64] ss:$16 sps:$4 sm:$0xff]   ;;  %v2749_v39 = vld [vmem:[#allocation11 + $0x6c] ss:$16 sps:$4 sm:$0xff]   ;;  %v2752_v40 = vld [vmem:[#allocation11 + $0x60] ss:$16 sps:$4 sm:$0xff]  }
 0x519   :  { %v1200_v42 = vpop.f32.mrf.mxu0  ;;  %v1241_v43 = vpop.f32.mrf.mxu1 }
 0x51a   :  { %v1786_v45 = vmul.f32 -1.442695, %v1246_v41  ;;  %v1247_v47 = vadd.f32 %v1200_v42, %v2863_v46  ;;  %v1788_v56 = vmul.f32 -1.442695, %v1248_v55  ;;  %v1249_v35 = vadd.f32 %v1241_v43, %v2865_v57  ;;  %v2755_v41 = vld [vmem:[#allocation11 + $0x68] ss:$16 sps:$4 sm:$0xff]  }
 0x51b   :  { %v1202_v48 = vpop.f32.mrf.mxu0  ;;  %v1243_v49 = vpop.f32.mrf.mxu1  ;;  %v2758_v42 = vld [vmem:[#allocation11 + $0x44] ss:$16 sps:$4 sm:$0xff]   ;;  %v2761_v43 = vld [vmem:[#allocation11 + $0x4c] ss:$16 sps:$4 sm:$0xff]  }
 0x51c   :  { %1997 = vpow2.f32 %v1786_v45  ;;  %v1787_v50 = vmul.f32 -1.442695, %v1247_v47 }
 0x51d   :  { %v1203_v51 = vpop.f32.mrf.mxu0  ;;  %v1244_v52 = vpop.f32.mrf.mxu1 }
 0x51e   :  { %1999 = vpow2.f32 %v1787_v50 }
 0x51f   :  { %2001 = vpow2.f32 %v1788_v56 }
 0x520   :  { %2003 = vtanh.f32 %v1249_v35 }
 0x529   :  { %v1998_v11 = vpop.eup %1997 }
 0x52a   :  { %v1259_v0 = vadd.f32 1.0, %v1998_v11 }
 0x52b   :  { %v2000_v24 = vpop.eup %1999 }
 0x52c   :  { %2005 = vrcp.f32 %v1259_v0  ;;  %v1260_v18 = vadd.f32 1.0, %v2000_v24  ;;  %v2002_v28 = vpop.eup %2001 }
 0x52d   :  { %v2004_v20 = vpop.eup %2003  ;;  %v1261_v33 = vadd.f32 1.0, %v2002_v28 }
 0x52e   :  { %2007 = vrcp.f32 %v1260_v18 }
 0x52f   :  { %2009 = vrcp.f32 %v1261_v33 }
 0x539   :  { %v2006_v12 = vpop.eup %2005 }
 0x53a   :  { %v1270_v13 = vmul.f32 %v2006_v12, %v2004_v20 }
 0x53b   :  { %v2008_v26 = vpop.eup %2007 }
 0x53c   :  { %v1269_v32 = vmul.f32 %v2008_v26, %v2648_v6  ;;  %v2010_v30 = vpop.eup %2009  ;;  %v2728_v6 = vld [vmem:[#allocation11 + $0xa0] ss:$16 sps:$4 sm:$0xff]  }
 0x53e   :  { %v2695_v34 = vadd.f32 %v1270_v13, %v1269_v32 }
 0x540   :  { %2011 = vtanh.f32 %v2695_v34 }
 0x54d   :  { %v2012_v62 = vpop.eup %2011 }
 0x54e   :  { %v2698_v23 = vmul.f32 %v2012_v62, %v2010_v30  ;;  %v2085_v30 = vld [vmem:[#allocation11 + $0x24] ss:$16 sps:$4 sm:$0xff]   ;;  %v2086_v62 = vld [vmem:[#allocation11 + $0x2c] ss:$16 sps:$4 sm:$0xff]  }
 0x550   :  { %v1281_v29 = vpack.c.bf16 %v2698_v23, %v2698_v23 }
 0x552   :  { %1315 = vmatmul.mubr.bf16.vlgmr.msra.gmra.mxu0 %v1281_v29  ;;  %1356 = vmatmul.mubr.bf16.vlgmr.msra.gmra.mxu1 %v1281_v29  ;;  %v2088_v29 = vld [vmem:[#allocation11 + $0x28] ss:$16 sps:$4 sm:$0xff]  }
 0x553   :  { %1401 = vmatpush1.bf16.msra.mxu0 %v2702_v19  ;;  %1442 = vmatpush1.bf16.msra.mxu1 %v2705_v17 }
 0x554   :  { %1402 = vmatprep.subr.bf16.mxu0 %v2708_v53  ;;  %1443 = vmatprep.subr.bf16.mxu1 %v2711_v7 }
 0x555   :  { %1432 = vmatprep.mubr.bf16.mxu0 %v2856_v21  ;;  %1473 = vmatprep.mubr.bf16.mxu1 %v2856_v21 }
 0x557   :  { %1403 = vmatpush1.bf16.msra.mxu0 %v2716_v15  ;;  %1444 = vmatpush1.bf16.msra.mxu1 %v2719_v8 }
 0x558   :  { %1404 = vmatprep.subr.bf16.mxu0 %v2722_v10  ;;  %1445 = vmatprep.subr.bf16.mxu1 %v2725_v25 }
 0x55b   :  { %1405 = vmatpush1.bf16.msra.mxu0 %v2728_v6  ;;  %1446 = vmatpush1.bf16.msra.mxu1 %v2731_v16 }
 0x55c   :  { %1406 = vmatprep.subr.bf16.mxu0 %v2734_v9  ;;  %1447 = vmatprep.subr.bf16.mxu1 %v2737_v27 }
 0x55f   :  { %1407 = vmatpush1.bf16.msra.mxu0 %v2740_v22  ;;  %1448 = vmatpush1.bf16.msra.mxu1 %v2743_v14 }
 0x560   :  { %1408 = vmatprep.subr.bf16.mxu0 %v2746_v38  ;;  %1449 = vmatprep.subr.bf16.mxu1 %v2749_v39 }
 0x563   :  { %1409 = vmatpush1.bf16.msra.mxu0 %v2752_v40  ;;  %1450 = vmatpush1.bf16.msra.mxu1 %v2755_v41 }
 0x564   :  { %1410 = vmatprep.subr.bf16.mxu0 %v2758_v42  ;;  %1451 = vmatprep.subr.bf16.mxu1 %v2761_v43 }
 0x567   :  { %1411 = vmatpush1.bf16.msra.mxu0 %v2350_v58  ;;  %1452 = vmatpush1.bf16.msra.mxu1 %v2352_v59 }
 0x568   :  { %1412 = vmatprep.subr.bf16.mxu0 %v2356_v60  ;;  %1453 = vmatprep.subr.bf16.mxu1 %v2358_v61  ;;  %v2866_v60 = vld [vmem:[#allocation29_spill] sm:$0xff] }
 0x56b   :  { %1413 = vmatpush1.bf16.msra.mxu0 %v2364_v63  ;;  %1454 = vmatpush1.bf16.msra.mxu1 %v2366_v1  ;;  %v2867_v1 = vld [vmem:[#allocation31_spill] sm:$0xff] }
 0x56c   :  { %1414 = vmatprep.subr.bf16.mxu0 %v2370_v2  ;;  %1455 = vmatprep.subr.bf16.mxu1 %v2372_v3 }
 0x56f   :  { %1415 = vmatpush1.bf16.msra.mxu0 %v2376_v4  ;;  %1456 = vmatpush1.bf16.msra.mxu1 %v2378_v5  ;;  %v2868_v5 = vld [vmem:[#allocation30_spill] sm:$0xff] }
 0x570   :  { %1518 = vmatprep.subr.bf16.mxu0 %v2684_v36  ;;  %1559 = vmatprep.subr.bf16.mxu1 %v2687_v37  ;;  %v2869_v37 = vld [vmem:[#allocation32_spill] sm:$0xff] }
 0x612   :  { %v1316_v58 = vpop.f32.mrf.mxu0  ;;  %v1357_v59 = vpop.f32.mrf.mxu1 }
 0x613   :  { %v1364_v61 = vadd.f32 %v1316_v58, %v2866_v60  ;;  %v1366_v36 = vadd.f32 %v1357_v59, %v2868_v5  ;;  %v2873_v59 = vld [vmem:[#allocation36_spill] sm:$0xff] }
 0x614   :  { %v1318_v45 = vpop.f32.mrf.mxu0  ;;  %v1359_v63 = vpop.f32.mrf.mxu1 }
 0x615   :  { %v1789_v46 = vmul.f32 -1.442695, %v1364_v61  ;;  %v1365_v47 = vadd.f32 %v1318_v45, %v2867_v1  ;;  %v1791_v50 = vmul.f32 -1.442695, %v1366_v36  ;;  %v1367_v51 = vadd.f32 %v1359_v63, %v2869_v37 }
 0x616   :  { %v1320_v2 = vpop.f32.mrf.mxu0  ;;  %v1361_v48 = vpop.f32.mrf.mxu1 }
 0x617   :  { %2013 = vpow2.f32 %v1789_v46  ;;  %v1790_v3 = vmul.f32 -1.442695, %v1365_v47 }
 0x618   :  { %v1321_v4 = vpop.f32.mrf.mxu0  ;;  %v1362_v49 = vpop.f32.mrf.mxu1 }
 0x619   :  { %2015 = vpow2.f32 %v1790_v3 }
 0x61a   :  { %2017 = vpow2.f32 %v1791_v50 }
 0x61b   :  { %2019 = vtanh.f32 %v1367_v51 }
 0x624   :  { %v2014_v52 = vpop.eup %2013 }
 0x625   :  { %v1377_v54 = vadd.f32 1.0, %v2014_v52 }
 0x626   :  { %v2016_v55 = vpop.eup %2015 }
 0x627   :  { %2021 = vrcp.f32 %v1377_v54  ;;  %v1378_v56 = vadd.f32 1.0, %v2016_v55  ;;  %v2018_v57 = vpop.eup %2017  ;;  %v2874_v55 = vld [vmem:[#allocation37_spill] sm:$0xff] }
 0x628   :  { %v2020_v35 = vpop.eup %2019  ;;  %v1379_v18 = vadd.f32 1.0, %v2018_v57 }
 0x629   :  { %2023 = vrcp.f32 %v1378_v56 }
 0x62a   :  { %2025 = vrcp.f32 %v1379_v18 }
 0x634   :  { %v2022_v11 = vpop.eup %2021 }
 0x635   :  { %v1388_v0 = vmul.f32 %v2022_v11, %v2020_v35 }
 0x636   :  { %v2024_v24 = vpop.eup %2023 }
 0x637   :  { %v1387_v28 = vmul.f32 %v2024_v24, %v2695_v34  ;;  %v2026_v12 = vpop.eup %2025  ;;  %v2084_v34 = vld [vmem:[#allocation11 + $0x48] ss:$16 sps:$4 sm:$0xff]  }
 0x639   :  { %v2781_v20 = vadd.f32 %v1388_v0, %v1387_v28 }
 0x63b   :  { %2027 = vtanh.f32 %v2781_v20 }
 0x648   :  { %v2028_v13 = vpop.eup %2027 }
 0x649   :  { %v1391_v26 = vmul.f32 %v2028_v13, %v2026_v12  ;;  %v2875_v13 = vld [vmem:[#allocation38_spill] sm:$0xff] }
 0x64b   :  { %v1399_v33 = vpack.c.bf16 %v1391_v26, %v1391_v26  ;;  %v1811_v32 = vpack.c.bf16 %v1391_v26, %v2698_v23  ;;  %v2087_v23 = vld [vmem:[#allocation11 + $0x20] ss:$16 sps:$4 sm:$0xff]  }
 0x64d   :  { %1433 = vmatmul.mubr.bf16.vlgmr.msra.gmra.mxu0 %v1399_v33  ;;  %1474 = vmatmul.mubr.bf16.vlgmr.msra.gmra.mxu1 %v1399_v33  ;;  %1819 = vst [vmem:[#allocation12 + $0x10] sm:$0xff] %v1811_v32  }
 0x64e   :  { %1519 = vmatpush1.bf16.msra.mxu0 %v2702_v19  ;;  %1560 = vmatpush1.bf16.msra.mxu1 %v2705_v17  ;;  %v2089_v19 = vld [vmem:[#allocation11 + $0x4] ss:$16 sps:$4 sm:$0xff]   ;;  %v2090_v17 = vld [vmem:[#allocation11 + $0xc] ss:$16 sps:$4 sm:$0xff]  }
 0x64f   :  { %1520 = vmatprep.subr.bf16.mxu0 %v2708_v53  ;;  %1561 = vmatprep.subr.bf16.mxu1 %v2711_v7  ;;  %v2091_v53 = vld [vmem:[#allocation11] ss:$16 sps:$4 sm:$0xff]   ;;  %v2092_v7 = vld [vmem:[#allocation11 + $0x8] ss:$16 sps:$4 sm:$0xff]  }
 0x650   :  { %1550 = vmatprep.mubr.bf16.mxu0 %v2856_v21  ;;  %1591 = vmatprep.mubr.bf16.mxu1 %v2856_v21  ;;  %v2083_v21 = vld [vmem:[#allocation11 + $0x40] ss:$16 sps:$4 sm:$0xff]  }
 0x652   :  { %1521 = vmatpush1.bf16.msra.mxu0 %v2716_v15  ;;  %1562 = vmatpush1.bf16.msra.mxu1 %v2719_v8 }
 0x653   :  { %1522 = vmatprep.subr.bf16.mxu0 %v2722_v10  ;;  %1563 = vmatprep.subr.bf16.mxu1 %v2725_v25  ;;  %v2870_v10 = vld [vmem:[#allocation33_spill] sm:$0xff] }
 0x656   :  { %1523 = vmatpush1.bf16.msra.mxu0 %v2728_v6  ;;  %1564 = vmatpush1.bf16.msra.mxu1 %v2731_v16 }
 0x657   :  { %1524 = vmatprep.subr.bf16.mxu0 %v2734_v9  ;;  %1565 = vmatprep.subr.bf16.mxu1 %v2737_v27  ;;  %v2871_v27 = vld [vmem:[#allocation35_spill] sm:$0xff] }
 0x65a   :  { %1525 = vmatpush1.bf16.msra.mxu0 %v2740_v22  ;;  %1566 = vmatpush1.bf16.msra.mxu1 %v2743_v14 }
 0x65b   :  { %1526 = vmatprep.subr.bf16.mxu0 %v2746_v38  ;;  %1567 = vmatprep.subr.bf16.mxu1 %v2749_v39 }
 0x65e   :  { %1527 = vmatpush1.bf16.msra.mxu0 %v2752_v40  ;;  %1568 = vmatpush1.bf16.msra.mxu1 %v2755_v41 }
 0x65f   :  { %1528 = vmatprep.subr.bf16.mxu0 %v2758_v42  ;;  %1569 = vmatprep.subr.bf16.mxu1 %v2761_v43  ;;  %v2872_v42 = vld [vmem:[#allocation34_spill] sm:$0xff] }
 0x662   :  { %1529 = vmatpush1.bf16.msra.mxu0 %v2083_v21  ;;  %1570 = vmatpush1.bf16.msra.mxu1 %v2084_v34 }
 0x663   :  { %1530 = vmatprep.subr.bf16.mxu0 %v2085_v30  ;;  %1571 = vmatprep.subr.bf16.mxu1 %v2086_v62 }
 0x666   :  { %1531 = vmatpush1.bf16.msra.mxu0 %v2087_v23  ;;  %1572 = vmatpush1.bf16.msra.mxu1 %v2088_v29 }
 0x667   :  { %1532 = vmatprep.subr.bf16.mxu0 %v2089_v19  ;;  %1573 = vmatprep.subr.bf16.mxu1 %v2090_v17 }
 0x66a   :  { %1533 = vmatpush1.bf16.msra.mxu0 %v2091_v53  ;;  %1574 = vmatpush1.bf16.msra.mxu1 %v2092_v7 }
 0x70d   :  { %v1434_v15 = vpop.f32.mrf.mxu0  ;;  %v1475_v8 = vpop.f32.mrf.mxu1 }
 0x70e   :  { %v1482_v25 = vadd.f32 %v1434_v15, %v2870_v10  ;;  %v1484_v43 = vadd.f32 %v1475_v8, %v2872_v42 }
 0x70f   :  { %v1436_v6 = vpop.f32.mrf.mxu0  ;;  %v1477_v16 = vpop.f32.mrf.mxu1 }
 0x710   :  { %v1792_v9 = vmul.f32 -1.442695, %v1482_v25  ;;  %v1483_v22 = vadd.f32 %v1436_v6, %v2871_v27  ;;  %v1794_v58 = vmul.f32 -1.442695, %v1484_v43  ;;  %v1485_v60 = vadd.f32 %v1477_v16, %v2873_v59 }
 0x711   :  { %v1438_v14 = vpop.f32.mrf.mxu0  ;;  %v1479_v38 = vpop.f32.mrf.mxu1 }
 0x712   :  { %2029 = vpow2.f32 %v1792_v9  ;;  %v1793_v39 = vmul.f32 -1.442695, %v1483_v22 }
 0x713   :  { %v1439_v40 = vpop.f32.mrf.mxu0  ;;  %v1480_v41 = vpop.f32.mrf.mxu1 }
 0x714   :  { %2031 = vpow2.f32 %v1793_v39 }
 0x715   :  { %2033 = vpow2.f32 %v1794_v58 }
 0x716   :  { %2035 = vtanh.f32 %v1485_v60 }
 0x71f   :  { %v2030_v61 = vpop.eup %2029 }
 0x720   :  { %v1495_v45 = vadd.f32 1.0, %v2030_v61 }
 0x721   :  { %v2032_v63 = vpop.eup %2031 }
 0x722   :  { %2037 = vrcp.f32 %v1495_v45  ;;  %v1496_v46 = vadd.f32 1.0, %v2032_v63  ;;  %v2034_v1 = vpop.eup %2033 }
 0x723   :  { %v2036_v47 = vpop.eup %2035  ;;  %v1497_v4 = vadd.f32 1.0, %v2034_v1 }
 0x724   :  { %2039 = vrcp.f32 %v1496_v46 }
 0x725   :  { %2041 = vrcp.f32 %v1497_v4 }
 0x72f   :  { %v2038_v2 = vpop.eup %2037 }
 0x730   :  { %v1506_v48 = vmul.f32 %v2038_v2, %v2036_v47 }
 0x731   :  { %v2040_v3 = vpop.eup %2039 }
 0x732   :  { %v1505_v49 = vmul.f32 %v2040_v3, %v2781_v20  ;;  %v2042_v36 = vpop.eup %2041 }
 0x734   :  { %v1507_v5 = vadd.f32 %v1506_v48, %v1505_v49 }
 0x736   :  { %2043 = vtanh.f32 %v1507_v5 }
 0x743   :  { %v2044_v50 = vpop.eup %2043 }
 0x744   :  { %v1509_v37 = vmul.f32 %v2044_v50, %v2042_v36 }
 0x746   :  { %v1517_v51 = vpack.c.bf16 %v1509_v37, %v1509_v37 }
 0x748   :  { %1551 = vmatmul.mubr.bf16.vlgmr.msra.gmra.mxu0 %v1517_v51  ;;  %1592 = vmatmul.mubr.bf16.vlgmr.msra.gmra.mxu1 %v1517_v51 }
 0x808   :  { %v1552_v52 = vpop.f32.mrf.mxu0  ;;  %v1593_v54 = vpop.f32.mrf.mxu1 }
 0x809   :  { %v1600_v56 = vadd.f32 %v1552_v52, %v2874_v55  ;;  %v1602_v26 = vadd.f32 %v1593_v54, %v2875_v13 }
 0x80a   :  { %v1554_v57 = vpop.f32.mrf.mxu0  ;;  %v1595_v35 = vpop.f32.mrf.mxu1 }
 0x80b   :  { %v1795_v11 = vmul.f32 -1.442695, %v1600_v56  ;;  %v1601_v0 = vadd.f32 %v1554_v57, %v2503_v31  ;;  %v1797_v33 = vmul.f32 -1.442695, %v1602_v26  ;;  %v1603_v32 = vadd.f32 %v1595_v35, %v2506_v44 }
 0x80c   :  { %v1556_v24 = vpop.f32.mrf.mxu0  ;;  %v1597_v18 = vpop.f32.mrf.mxu1 }
 0x80d   :  { %2045 = vpow2.f32 %v1795_v11  ;;  %v1796_v28 = vmul.f32 -1.442695, %v1601_v0 }
 0x80e   :  { %v1557_v20 = vpop.f32.mrf.mxu0  ;;  %v1598_v12 = vpop.f32.mrf.mxu1 }
 0x80f   :  { %2047 = vpow2.f32 %v1796_v28 }
 0x810   :  { %2049 = vpow2.f32 %v1797_v33 }
 0x811   :  { %2051 = vtanh.f32 %v1603_v32 }
 0x81a   :  { %v2046_v21 = vpop.eup %2045 }
 0x81b   :  { %v1613_v34 = vadd.f32 1.0, %v2046_v21 }
 0x81c   :  { %v2048_v30 = vpop.eup %2047 }
 0x81d   :  { %2053 = vrcp.f32 %v1613_v34  ;;  %v1614_v62 = vadd.f32 1.0, %v2048_v30  ;;  %v2050_v31 = vpop.eup %2049 }
 0x81e   :  { %v2052_v23 = vpop.eup %2051  ;;  %v1615_v53 = vadd.f32 1.0, %v2050_v31 }
 0x81f   :  { %2055 = vrcp.f32 %v1614_v62 }
 0x820   :  { %2057 = vrcp.f32 %v1615_v53 }
 0x82a   :  { %v2054_v29 = vpop.eup %2053 }
 0x82b   :  { %v1624_v19 = vmul.f32 %v2054_v29, %v2052_v23 }
 0x82c   :  { %v2056_v17 = vpop.eup %2055 }
 0x82d   :  { %v1623_v7 = vmul.f32 %v2056_v17, %v1507_v5  ;;  %v2058_v44 = vpop.eup %2057 }
 0x82f   :  { %v1625_v15 = vadd.f32 %v1624_v19, %v1623_v7 }
 0x831   :  { %1660 = vst [vmem:[#allocation15] sm:$0xff] %v1625_v15  ;;  %2059 = vtanh.f32 %v1625_v15 }
 0x83e   :  { %v2060_v8 = vpop.eup %2059 }
 0x83f   :  { %v1627_v10 = vmul.f32 %v2060_v8, %v2058_v44 }
 0x841   :  { %v1816_v25 = vpack.c.bf16 %v1627_v10, %v1509_v37  ;;  %1659 = vst [vmem:[#allocation13] sm:$0xff] %v1627_v10 }
 0x842   :  { %2164 = shalt.err (!%p2161_p5)
}
 0x843   :  { %1682 = dma.vmem_to_hbm [thread:$0]  %s1680_s15, 128, %s2833_s5, [#allocation14]   ;;  %1820 = vst [vmem:[#allocation12 + $0x18] sm:$0xff] %v1816_v25  }
 0x844   :  { %s2173_s23 = scalar_lea.vmem %s1690_s17, 128  ;;  %p2178_p7 = scmp.lt.s32.totalorder %s1690_s17, %s1690_s17 }
 0x845   :  { %p2174_p6 = scmp.ne.s32.totalorder %s1690_s17, %s2173_s23  ;;  %p2179_p8 = scmp.lt.s32.totalorder %s2173_s23, %s2173_s23 }
 0x847   :  { %p2180_p9 = por %p2179_p8, %p2178_p7 }
 0x849   :  { %p2181_p10 = pnand %p2180_p9, %p2174_p6 }
 0x84b   :  { %2184 = shalt.err (!%p2181_p10)
}
 0x84c   :  { %1692 = dma.vmem_to_hbm [thread:$0]  %s1690_s17, 128, %s2834_s6, [#allocation14]  }
 0x84d   :  { %s2193_s26 = scalar_lea.vmem %s1667_s19, 512  ;;  %p2198_p12 = scmp.lt.s32.totalorder %s1667_s19, %s1667_s19 }
 0x84e   :  { %p2194_p11 = scmp.ne.s32.totalorder %s1667_s19, %s2193_s26  ;;  %p2199_p13 = scmp.lt.s32.totalorder %s2193_s26, %s2193_s26 }
 0x850   :  { %p2200_p0 = por %p2199_p13, %p2198_p12 }
 0x852   :  { %p2201_p1 = pnand %p2200_p0, %p2194_p11 }
 0x854   :  { %2204 = shalt.err (!%p2201_p1)
}
 0x855   :  { %1672 = dma.vmem_to_hbm [thread:$0]  %s1667_s19, 512, %s2832_s4, [#allocation8], %s2225_s7, %s2225_s7, %s2226_s8  }
 0x856   :  { %2217 = dma.done.wait [#allocation8], 512  }
 0x857   :  { %2218 = vsyncadd [#allocation8], 4294966784 }
 0x858   :  { %2219 = dma.done.wait [#allocation14], 256  }
 0x859   :  { %2220 = vsyncadd [#allocation14], 4294967040 }
 0x85a   :  { %1702 = vsyncpa [#allocation7], 1 }
 0x85b   :  { %1703 = vsyncpa [#allocation10], 1 }
 0x85c   :  { %1704 = vsyncpa [#allocation8], 1 }
 0x85d   :  { %1705 = vsyncpa [#allocation14], 1 }

// kernel: tpu_custom_call.1
= control target key start
LH: loop header
LB: loop body
LE: loop exit
PB: predicated region body
PF: predicated region fallthrough
CT: control target
= control target key end

     0   :  { %12 = vsyncpa [#allocation7], 0  ;;  %s2828_s0 = inlined_call_operand.hbm [shape: bf16[8,8,128], index: 0, kind: input, shape index: {}]   ;;  %s2829_s1 = inlined_call_operand.hbm [shape: bf16[128,512], index: 1, kind: input, shape index: {}]   ;;  %s2830_s2 = inlined_call_operand.hbm [shape: bf16[128,512], index: 2, kind: input, shape index: {}]   ;;  %s2831_s3 = inlined_call_operand.vmem [shape: f32[1,512], index: 3, kind: input, shape index: {}]   ;;  %s2832_s4 = inlined_call_operand.hbm [shape: bf16[8,8,128], index: 4, kind: output, shape index: {0}]   ;;  %s2833_s5 = inlined_call_operand.hbm [shape: f32[8,128], index: 5, kind: output, shape index: {1}]   ;;  %s2834_s6 = inlined_call_operand.hbm [shape: f32[8,128], index: 6, kind: output, shape index: {2}]  }
   0x1   :  { %13 = vsyncpa [#allocation10], 0 }
   0x2   :  { %14 = vsyncpa [#allocation8], 0 }
   0x3   :  { %15 = vsyncpa [#allocation14], 0  ;;  %s2221_s21 = smov [#allocation9]  }
   0x4   :  { %s33_s22 = sshll.u32 %s2221_s21, 4  ;;  %s34_s22 = int_to_ptr.vmem [resolvable:$true] %s33_s22 }
   0x5   :  { %s2101_s23 = scalar_lea.vmem %s34_s22, 4096  ;;  %p2106_p1 = scmp.lt.s32.totalorder %s34_s22, %s34_s22 }
   0x6   :  { %p2102_p0 = scmp.ne.s32.totalorder %s34_s22, %s2101_s23  ;;  %p2107_p2 = scmp.lt.s32.totalorder %s2101_s23, %s2101_s23 }
   0x8   :  { %p2108_p3 = por %p2107_p2, %p2106_p1 }
   0xa   :  { %p2109_p4 = pnand %p2108_p3, %p2102_p0 }
   0xc   :  { %2112 = shalt.err (!%p2109_p4)
}
   0xd   :  { %s2222_s24 = smov 256   ;;  %s2223_s25 = smov 16  }
   0xe   :  { %39 = dma.hbm_to_vmem [thread:$0]  %s2829_s1, 4096, %s34_s22, [#allocation10], %s2222_s24, %s2222_s24, %s2223_s25  }
   0xf   :  { %s2224_s28 = smov [#allocation6]  }
  0x10   :  { %s21_s29 = sshll.u32 %s2224_s28, 4  ;;  %s22_s29 = int_to_ptr.vmem [resolvable:$true] %s21_s29 }
  0x11   :  { %s2121_s30 = scalar_lea.vmem %s22_s29, 512  ;;  %p2126_p6 = scmp.lt.s32.totalorder %s22_s29, %s22_s29 }
  0x12   :  { %p2122_p5 = scmp.ne.s32.totalorder %s22_s29, %s2121_s30  ;;  %p2127_p7 = scmp.lt.s32.totalorder %s2121_s30, %s2121_s30 }
  0x14   :  { %p2128_p8 = por %p2127_p7, %p2126_p6 }
  0x16   :  { %p2129_p9 = pnand %p2128_p8, %p2122_p5 }
  0x18   :  { %2132 = shalt.err (!%p2129_p9)
}
  0x19   :  { %s2225_s7 = smov 64   ;;  %s2226_s8 = smov 4  }
  0x1a   :  { %27 = dma.hbm_to_vmem [thread:$0]  %s2828_s0, 512, %s22_s29, [#allocation7], %s2225_s7, %s2225_s7, %s2226_s8  }
  0x1b   :  { %s2227_s1 = smov [#allocation11]  }
  0x1c   :  { %s45_s11 = sshll.u32 %s2227_s1, 4  ;;  %s46_s11 = int_to_ptr.vmem [resolvable:$true] %s45_s11 }
  0x1d   :  { %s2141_s12 = scalar_lea.vmem %s46_s11, 4096  ;;  %p2146_p11 = scmp.lt.s32.totalorder %s46_s11, %s46_s11 }
  0x1e   :  { %p2142_p10 = scmp.ne.s32.totalorder %s46_s11, %s2141_s12  ;;  %p2147_p12 = scmp.lt.s32.totalorder %s2141_s12, %s2141_s12 }
  0x20   :  { %p2148_p13 = por %p2147_p12, %p2146_p11 }
  0x22   :  { %p2149_p0 = pnand %p2148_p13, %p2142_p10 }
  0x24   :  { %2152 = shalt.err (!%p2149_p0)
}
  0x25   :  { %51 = dma.hbm_to_vmem [thread:$0]  %s2830_s2, 4096, %s46_s11, [#allocation10], %s2222_s24, %s2222_s24, %s2223_s25  }
  0x26   :  { %2213 = dma.done.wait [#allocation7], 512  }
  0x27   :  { %2214 = vsyncadd [#allocation7], 4294966784 }
  0x28   :  { %2215 = dma.done.wait [#allocation10], 8192  }
  0x29   :  { %2216 = vsyncadd [#allocation10], 4294959104  ;;  %v2835_v0 = vmov 0   ;;  %v1833_v1 = vld [vmem:[#allocation9 + $0xe4] ss:$16 sps:$4 sm:$0xff]   ;;  %v1894_v44 = vld [vmem:[#allocation6 + $0x8] sm:$0xff]  }
  0x2a   :  { %348 = vmatprep.mubr.bf16.mxu0 %v2835_v0  ;;  %421 = vmatprep.mubr.bf16.mxu1 %v2835_v0  ;;  %v1835_v2 = vld [vmem:[#allocation9 + $0xec] ss:$16 sps:$4 sm:$0xff]   ;;  %v1837_v3 = vld [vmem:[#allocation9 + $0xe0] ss:$16 sps:$4 sm:$0xff]   ;;  %v1838_v4 = vld [vmem:[#allocation9 + $0xe8] ss:$16 sps:$4 sm:$0xff]  }
  0x2b   :  { %316 = vmatprep.subr.bf16.mxu0 %v1833_v1  ;;  %389 = vmatprep.subr.bf16.mxu1 %v1835_v2  ;;  %v1839_v5 = vld [vmem:[#allocation9 + $0xc4] ss:$16 sps:$4 sm:$0xff]   ;;  %v1841_v6 = vld [vmem:[#allocation9 + $0xcc] ss:$16 sps:$4 sm:$0xff]   ;;  %v1843_v7 = vld [vmem:[#allocation9 + $0xc0] ss:$16 sps:$4 sm:$0xff]  }
  0x2c   :  { %317 = vmatpush1.bf16.msra.mxu0 %v1837_v3  ;;  %390 = vmatpush1.bf16.msra.mxu1 %v1838_v4  ;;  %v1844_v8 = vld [vmem:[#allocation9 + $0xc8] ss:$16 sps:$4 sm:$0xff]   ;;  %v1845_v9 = vld [vmem:[#allocation9 + $0xa4] ss:$16 sps:$4 sm:$0xff]   ;;  %v1847_v10 = vld [vmem:[#allocation9 + $0xac] ss:$16 sps:$4 sm:$0xff]  }
  0x2d   :  { %318 = vmatprep.subr.bf16.mxu0 %v1839_v5  ;;  %391 = vmatprep.subr.bf16.mxu1 %v1841_v6  ;;  %v1849_v11 = vld [vmem:[#allocation9 + $0xa0] ss:$16 sps:$4 sm:$0xff]   ;;  %v1850_v12 = vld [vmem:[#allocation9 + $0xa8] ss:$16 sps:$4 sm:$0xff]   ;;  %v1851_v13 = vld [vmem:[#allocation9 + $0x84] ss:$16 sps:$4 sm:$0xff]  }
  0x2e   :  { %v1853_v14 = vld [vmem:[#allocation9 + $0x8c] ss:$16 sps:$4 sm:$0xff]   ;;  %v1855_v15 = vld [vmem:[#allocation9 + $0x80] ss:$16 sps:$4 sm:$0xff]   ;;  %v1856_v16 = vld [vmem:[#allocation9 + $0x88] ss:$16 sps:$4 sm:$0xff]  }
  0x2f   :  { %v1857_v17 = vld [vmem:[#allocation9 + $0x64] ss:$16 sps:$4 sm:$0xff]   ;;  %v1859_v18 = vld [vmem:[#allocation9 + $0x6c] ss:$16 sps:$4 sm:$0xff]   ;;  %v1861_v19 = vld [vmem:[#allocation9 + $0x60] ss:$16 sps:$4 sm:$0xff]  }
  0x30   :  { %319 = vmatpush1.bf16.msra.mxu0 %v1843_v7  ;;  %392 = vmatpush1.bf16.msra.mxu1 %v1844_v8  ;;  %v1862_v20 = vld [vmem:[#allocation9 + $0x68] ss:$16 sps:$4 sm:$0xff]   ;;  %v1863_v21 = vld [vmem:[#allocation9 + $0x44] ss:$16 sps:$4 sm:$0xff]   ;;  %v1865_v22 = vld [vmem:[#allocation9 + $0x4c] ss:$16 sps:$4 sm:$0xff]   ;;  %v112_v7 = vlaneseq }
  0x31   :  { %320 = vmatprep.subr.bf16.mxu0 %v1845_v9  ;;  %393 = vmatprep.subr.bf16.mxu1 %v1847_v10  ;;  %v1867_v23 = vld [vmem:[#allocation9 + $0x40] ss:$16 sps:$4 sm:$0xff]   ;;  %v1868_v24 = vld [vmem:[#allocation9 + $0x48] ss:$16 sps:$4 sm:$0xff]   ;;  %v1869_v25 = vld [vmem:[#allocation9 + $0x24] ss:$16 sps:$4 sm:$0xff]  }
  0x32   :  { %v1871_v26 = vld [vmem:[#allocation9 + $0x2c] ss:$16 sps:$4 sm:$0xff]   ;;  %v1873_v27 = vld [vmem:[#allocation9 + $0x20] ss:$16 sps:$4 sm:$0xff]   ;;  %v1874_v28 = vld [vmem:[#allocation9 + $0x28] ss:$16 sps:$4 sm:$0xff]  }
  0x33   :  { %v1875_v29 = vld [vmem:[#allocation9 + $0x4] ss:$16 sps:$4 sm:$0xff]   ;;  %v1877_v30 = vld [vmem:[#allocation9 + $0xc] ss:$16 sps:$4 sm:$0xff]   ;;  %v1879_v31 = vld [vmem:[#allocation9] ss:$16 sps:$4 sm:$0xff]  }
  0x34   :  { %321 = vmatpush1.bf16.msra.mxu0 %v1849_v11  ;;  %394 = vmatpush1.bf16.msra.mxu1 %v1850_v12  ;;  %v1880_v32 = vld [vmem:[#allocation9 + $0x8] ss:$16 sps:$4 sm:$0xff]   ;;  %v2282_v33 = vld [vmem:[#allocation11 + $0xe4] ss:$16 sps:$4 sm:$0xff]   ;;  %v2284_v34 = vld [vmem:[#allocation11 + $0xec] ss:$16 sps:$4 sm:$0xff]  }
  0x35   :  { %322 = vmatprep.subr.bf16.mxu0 %v1851_v13  ;;  %395 = vmatprep.subr.bf16.mxu1 %v1853_v14  ;;  %v1881_v35 = vld [vmem:[#allocation6] sm:$0xff]   ;;  %v2288_v37 = vld [vmem:[#allocation11 + $0xe8] ss:$16 sps:$4 sm:$0xff]   ;;  %v2294_v39 = vld [vmem:[#allocation11 + $0xcc] ss:$16 sps:$4 sm:$0xff]   ;;  %v2229_v6 = vmov 0.0|0.0  }
  0x36   :  { %v2286_v36 = vld [vmem:[#allocation11 + $0xe0] ss:$16 sps:$4 sm:$0xff]   ;;  %v2292_v38 = vld [vmem:[#allocation11 + $0xc4] ss:$16 sps:$4 sm:$0xff]   ;;  %v2300_v41 = vld [vmem:[#allocation11 + $0xc8] ss:$16 sps:$4 sm:$0xff]  }
  0x37   :  { %v2296_v40 = vld [vmem:[#allocation11 + $0xc0] ss:$16 sps:$4 sm:$0xff]   ;;  %v2304_v42 = vld [vmem:[#allocation11 + $0xa4] ss:$16 sps:$4 sm:$0xff]   ;;  %v2306_v43 = vld [vmem:[#allocation11 + $0xac] ss:$16 sps:$4 sm:$0xff]  }
  0x38   :  { %323 = vmatpush1.bf16.msra.mxu0 %v1855_v15  ;;  %396 = vmatpush1.bf16.msra.mxu1 %v1856_v16  ;;  %v2310_v45 = vld [vmem:[#allocation11 + $0xa0] ss:$16 sps:$4 sm:$0xff]   ;;  %v2312_v46 = vld [vmem:[#allocation11 + $0xa8] ss:$16 sps:$4 sm:$0xff]   ;;  %v2316_v47 = vld [vmem:[#allocation11 + $0x84] ss:$16 sps:$4 sm:$0xff]  }
  0x39   :  { %324 = vmatprep.subr.bf16.mxu0 %v1857_v17  ;;  %397 = vmatprep.subr.bf16.mxu1 %v1859_v18  ;;  %v2320_v48 = vld [vmem:[#allocation11 + $0x8c] ss:$16 sps:$4 sm:$0xff]   ;;  %v2322_v49 = vld [vmem:[#allocation11 + $0x80] ss:$16 sps:$4 sm:$0xff]   ;;  %v2324_v50 = vld [vmem:[#allocation11 + $0x88] ss:$16 sps:$4 sm:$0xff]  }
  0x3a   :  { %v2328_v51 = vld [vmem:[#allocation11 + $0x64] ss:$16 sps:$4 sm:$0xff]   ;;  %v2332_v52 = vld [vmem:[#allocation11 + $0x6c] ss:$16 sps:$4 sm:$0xff]   ;;  %v2338_v54 = vld [vmem:[#allocation11 + $0x60] ss:$16 sps:$4 sm:$0xff]  }
  0x3b   :  { %v1907_v53 = vld [vmem:[#allocation6 + $0x10] sm:$0xff]   ;;  %v2340_v55 = vld [vmem:[#allocation11 + $0x68] ss:$16 sps:$4 sm:$0xff]   ;;  %v2346_v57 = vld [vmem:[#allocation11 + $0x4c] ss:$16 sps:$4 sm:$0xff]   ;;  %v113_v8 = vshrl.u32 %v112_v7, 7 }
  0x3c   :  { %325 = vmatpush1.bf16.msra.mxu0 %v1861_v19  ;;  %398 = vmatpush1.bf16.msra.mxu1 %v1862_v20  ;;  %v2344_v56 = vld [vmem:[#allocation11 + $0x44] ss:$16 sps:$4 sm:$0xff]   ;;  %v2350_v58 = vld [vmem:[#allocation11 + $0x40] ss:$16 sps:$4 sm:$0xff]   ;;  %v2352_v59 = vld [vmem:[#allocation11 + $0x48] ss:$16 sps:$4 sm:$0xff]  }
  0x3d   :  { %326 = vmatprep.subr.bf16.mxu0 %v1863_v21  ;;  %399 = vmatprep.subr.bf16.mxu1 %v1865_v22  ;;  %v2356_v60 = vld [vmem:[#allocation11 + $0x24] ss:$16 sps:$4 sm:$0xff]   ;;  %v2358_v61 = vld [vmem:[#allocation11 + $0x2c] ss:$16 sps:$4 sm:$0xff]   ;;  %v2364_v63 = vld [vmem:[#allocation11 + $0x20] ss:$16 sps:$4 sm:$0xff]  }
  0x3e   :  { %v1920_v62 = vld [vmem:[#allocation6 + $0x18] sm:$0xff]   ;;  %v2370_v2 = vld [vmem:[#allocation11 + $0x4] ss:$16 sps:$4 sm:$0xff]   ;;  %v2376_v4 = vld [vmem:[#allocation11] ss:$16 sps:$4 sm:$0xff]   ;;  %v122_v9 = vsub.s32 2, %v113_v8 }
  0x3f   :  { %v2366_v1 = vld [vmem:[#allocation11 + $0x28] ss:$16 sps:$4 sm:$0xff]   ;;  %v2372_v3 = vld [vmem:[#allocation11 + $0xc] ss:$16 sps:$4 sm:$0xff]   ;;  %v114_v10 = vsub.s32 0, %v113_v8  ;;  %v126_v11 = vsub.s32 3, %v113_v8 }
  0x40   :  { %327 = vmatpush1.bf16.msra.mxu0 %v1867_v23  ;;  %400 = vmatpush1.bf16.msra.mxu1 %v1868_v24  ;;  %v2378_v5 = vld [vmem:[#allocation11 + $0x8] ss:$16 sps:$4 sm:$0xff]   ;;  %v110_v12 = vld [vmem:[%s2831_s3] sm:$0xf]  ;;  %v118_v16 = vsub.s32 1, %v113_v8  ;;  %s2230_s3 = smov [#allocation13]  }
  0x41   :  { %328 = vmatprep.subr.bf16.mxu0 %v1869_v25  ;;  %401 = vmatprep.subr.bf16.mxu1 %v1871_v26  ;;  %v2429_v15 = vrot.slane %v110_v12, %v122_v9  ;;  %v115_v19 = vrot.slane %v110_v12, %v114_v10  ;;  %v2435_v20 = vrot.slane %v110_v12, %v126_v11  ;;  %s1679_s15 = sshll.u32 %s2230_s3, 4  ;;  %s2231_s16 = smov [#allocation15]   ;;  %s1680_s15 = int_to_ptr.vmem [resolvable:$true] %s1679_s15 }
  0x42   :  { %v119_v23 = vrot.slane %v110_v12, %v118_v16  ;;  %s1689_s17 = sshll.u32 %s2231_s16, 4  ;;  %s2232_s18 = smov [#allocation12]   ;;  %s1690_s17 = int_to_ptr.vmem [resolvable:$true] %s1689_s17 }
  0x43   :  { %s1666_s19 = sshll.u32 %s2232_s18, 4  ;;  %s2153_s20 = scalar_lea.vmem %s1680_s15, 128  ;;  %s1667_s19 = int_to_ptr.vmem [resolvable:$true] %s1666_s19 }
  0x44   :  { %329 = vmatpush1.bf16.msra.mxu0 %v1873_v27  ;;  %402 = vmatpush1.bf16.msra.mxu1 %v1874_v28  ;;  %p2154_p1 = scmp.ne.s32.totalorder %s1680_s15, %s2153_s20  ;;  %p2158_p2 = scmp.lt.s32.totalorder %s1680_s15, %s1680_s15 }
  0x45   :  { %330 = vmatprep.subr.bf16.mxu0 %v1875_v29  ;;  %403 = vmatprep.subr.bf16.mxu1 %v1877_v30  ;;  %p2159_p3 = scmp.lt.s32.totalorder %s2153_s20, %s2153_s20 }
  0x47   :  { %p2160_p4 = por %p2159_p3, %p2158_p2 }
  0x48   :  { %331 = vmatpush1.bf16.msra.mxu0 %v1879_v31  ;;  %404 = vmatpush1.bf16.msra.mxu1 %v1880_v32 }
  0x49   :  { %693 = vmatprep.subr.bf16.mxu0 %v2282_v33  ;;  %734 = vmatprep.subr.bf16.mxu1 %v2284_v34  ;;  %p2161_p5 = pnand %p2160_p4, %p2154_p1 }
  0x4b   :  { %349 = vmatmul.mubr.bf16.vlgmr.msra.gmra.mxu0 %v1881_v35  ;;  %422 = vmatmul.mubr.bf16.vlgmr.msra.gmra.mxu1 %v1881_v35 }
  0x4c   :  { %694 = vmatpush1.bf16.msra.mxu0 %v2286_v36  ;;  %735 = vmatpush1.bf16.msra.mxu1 %v2288_v37 }
  0x4d   :  { %695 = vmatprep.subr.bf16.mxu0 %v2292_v38  ;;  %736 = vmatprep.subr.bf16.mxu1 %v2294_v39 }
  0x4e   :  { %358 = vmatprep.mubr.bf16.mxu0 %v2835_v0  ;;  %431 = vmatprep.mubr.bf16.mxu1 %v2835_v0 }
  0x50   :  { %696 = vmatpush1.bf16.msra.mxu0 %v2296_v40  ;;  %737 = vmatpush1.bf16.msra.mxu1 %v2300_v41 }
  0x51   :  { %697 = vmatprep.subr.bf16.mxu0 %v2304_v42  ;;  %738 = vmatprep.subr.bf16.mxu1 %v2306_v43 }
  0x53   :  { %359 = vmatmul.mubr.bf16.gmra.mxu0 %v1894_v44  ;;  %432 = vmatmul.mubr.bf16.gmra.mxu1 %v1894_v44 }
  0x54   :  { %698 = vmatpush1.bf16.msra.mxu0 %v2310_v45  ;;  %739 = vmatpush1.bf16.msra.mxu1 %v2312_v46 }
  0x55   :  { %699 = vmatprep.subr.bf16.mxu0 %v2316_v47  ;;  %740 = vmatprep.subr.bf16.mxu1 %v2320_v48 }
  0x56   :  { %368 = vmatprep.mubr.bf16.mxu0 %v2835_v0  ;;  %441 = vmatprep.mubr.bf16.mxu1 %v2835_v0 }
  0x58   :  { %700 = vmatpush1.bf16.msra.mxu0 %v2322_v49  ;;  %741 = vmatpush1.bf16.msra.mxu1 %v2324_v50 }
  0x59   :  { %701 = vmatprep.subr.bf16.mxu0 %v2328_v51  ;;  %742 = vmatprep.subr.bf16.mxu1 %v2332_v52 }
  0x5b   :  { %369 = vmatmul.mubr.bf16.gmra.mxu0 %v1907_v53  ;;  %442 = vmatmul.mubr.bf16.gmra.mxu1 %v1907_v53 }
  0x5c   :  { %702 = vmatpush1.bf16.msra.mxu0 %v2338_v54  ;;  %743 = vmatpush1.bf16.msra.mxu1 %v2340_v55 }
  0x5d   :  { %703 = vmatprep.subr.bf16.mxu0 %v2344_v56  ;;  %744 = vmatprep.subr.bf16.mxu1 %v2346_v57 }
  0x5e   :  { %378 = vmatprep.mubr.bf16.mxu0 %v2835_v0  ;;  %451 = vmatprep.mubr.bf16.mxu1 %v2835_v0 }
  0x60   :  { %704 = vmatpush1.bf16.msra.mxu0 %v2350_v58  ;;  %745 = vmatpush1.bf16.msra.mxu1 %v2352_v59 }
  0x61   :  { %705 = vmatprep.subr.bf16.mxu0 %v2356_v60  ;;  %746 = vmatprep.subr.bf16.mxu1 %v2358_v61 }
  0x63   :  { %379 = vmatmul.mubr.bf16.gmra.mxu0 %v1920_v62  ;;  %452 = vmatmul.mubr.bf16.gmra.mxu1 %v1920_v62 }
  0x64   :  { %706 = vmatpush1.bf16.msra.mxu0 %v2364_v63  ;;  %747 = vmatpush1.bf16.msra.mxu1 %v2366_v1 }
  0x65   :  { %707 = vmatprep.subr.bf16.mxu0 %v2370_v2  ;;  %748 = vmatprep.subr.bf16.mxu1 %v2372_v3 }
  0x66   :  { %725 = vmatprep.mubr.bf16.mxu0 %v2835_v0  ;;  %766 = vmatprep.mubr.bf16.mxu1 %v2835_v0 }
  0x68   :  { %708 = vmatpush1.bf16.msra.mxu0 %v2376_v4  ;;  %749 = vmatpush1.bf16.msra.mxu1 %v2378_v5 }
  0x69   :  { %810 = vmatprep.subr.bf16.mxu0 %v2282_v33  ;;  %851 = vmatprep.subr.bf16.mxu1 %v2284_v34 }
  0x6b   :  { %726 = vmatmul.mubr.bf16.vlgmr.msra.gmra.mxu0 %v2229_v6  ;;  %767 = vmatmul.mubr.bf16.vlgmr.msra.gmra.mxu1 %v2229_v6 }
  0x6c   :  { %811 = vmatpush1.bf16.msra.mxu0 %v2286_v36  ;;  %852 = vmatpush1.bf16.msra.mxu1 %v2288_v37 }
  0x6d   :  { %812 = vmatprep.subr.bf16.mxu0 %v2292_v38  ;;  %853 = vmatprep.subr.bf16.mxu1 %v2294_v39 }
  0x6e   :  { %842 = vmatprep.mubr.bf16.mxu0 %v2835_v0  ;;  %883 = vmatprep.mubr.bf16.mxu1 %v2835_v0 }
  0x70   :  { %813 = vmatpush1.bf16.msra.mxu0 %v2296_v40  ;;  %854 = vmatpush1.bf16.msra.mxu1 %v2300_v41 }
  0x71   :  { %814 = vmatprep.subr.bf16.mxu0 %v2304_v42  ;;  %855 = vmatprep.subr.bf16.mxu1 %v2306_v43 }
  0x74   :  { %815 = vmatpush1.bf16.msra.mxu0 %v2310_v45  ;;  %856 = vmatpush1.bf16.msra.mxu1 %v2312_v46 }
  0x75   :  { %816 = vmatprep.subr.bf16.mxu0 %v2316_v47  ;;  %857 = vmatprep.subr.bf16.mxu1 %v2320_v48 }
  0x78   :  { %817 = vmatpush1.bf16.msra.mxu0 %v2322_v49  ;;  %858 = vmatpush1.bf16.msra.mxu1 %v2324_v50 }
  0x79   :  { %818 = vmatprep.subr.bf16.mxu0 %v2328_v51  ;;  %859 = vmatprep.subr.bf16.mxu1 %v2332_v52 }
  0x7c   :  { %819 = vmatpush1.bf16.msra.mxu0 %v2338_v54  ;;  %860 = vmatpush1.bf16.msra.mxu1 %v2340_v55 }
  0x7d   :  { %820 = vmatprep.subr.bf16.mxu0 %v2344_v56  ;;  %861 = vmatprep.subr.bf16.mxu1 %v2346_v57 }
  0x80   :  { %821 = vmatpush1.bf16.msra.mxu0 %v2350_v58  ;;  %862 = vmatpush1.bf16.msra.mxu1 %v2352_v59 }
  0x81   :  { %822 = vmatprep.subr.bf16.mxu0 %v2356_v60  ;;  %863 = vmatprep.subr.bf16.mxu1 %v2358_v61 }
  0x84   :  { %823 = vmatpush1.bf16.msra.mxu0 %v2364_v63  ;;  %864 = vmatpush1.bf16.msra.mxu1 %v2366_v1 }
  0x85   :  { %824 = vmatprep.subr.bf16.mxu0 %v2370_v2  ;;  %865 = vmatprep.subr.bf16.mxu1 %v2372_v3 }
  0x88   :  { %825 = vmatpush1.bf16.msra.mxu0 %v2376_v4  ;;  %866 = vmatpush1.bf16.msra.mxu1 %v2378_v5 }
  0x89   :  { %928 = vmatprep.subr.bf16.mxu0 %v2282_v33  ;;  %969 = vmatprep.subr.bf16.mxu1 %v2284_v34 }
 0x10b   :  { %v2425_v13 = vpop.f32.mrf.mxu0  ;;  %v2427_v14 = vpop.f32.mrf.mxu1 }
 0x10d   :  { %v2431_v17 = vpop.f32.mrf.mxu0  ;;  %v2433_v18 = vpop.f32.mrf.mxu1 }
 0x10f   :  { %v354_v21 = vpop.f32.mrf.mxu0  ;;  %v427_v22 = vpop.f32.mrf.mxu1 }
 0x110   :  { %v2437_v24 = vadd.f32 %v354_v21, %v115_v19  ;;  %v2440_v25 = vadd.f32 %v427_v22, %v2429_v15 }
 0x111   :  { %v356_v26 = vpop.f32.mrf.mxu0  ;;  %v429_v27 = vpop.f32.mrf.mxu1 }
 0x112   :  { %v2442_v28 = vadd.f32 %v356_v26, %v119_v23  ;;  %v2445_v29 = vadd.f32 %v429_v27, %v2435_v20 }
 0x113   :  { %v360_v30 = vpop.f32.mrf.mxu0  ;;  %v433_v31 = vpop.f32.mrf.mxu1 }
 0x114   :  { %v2447_v32 = vadd.f32 %v360_v30, %v115_v19  ;;  %v2450_v35 = vadd.f32 %v433_v31, %v2429_v15 }
 0x115   :  { %v362_v44 = vpop.f32.mrf.mxu0  ;;  %v435_v53 = vpop.f32.mrf.mxu1 }
 0x116   :  { %v2452_v62 = vadd.f32 %v362_v44, %v119_v23  ;;  %v2455_v6 = vadd.f32 %v435_v53, %v2435_v20 }
 0x117   :  { %v364_v7 = vpop.f32.mrf.mxu0  ;;  %v437_v8 = vpop.f32.mrf.mxu1 }
 0x118   :  { %2837 = vst [vmem:[#allocation20_spill] sm:$0xff] %v2455_v6  ;;  %v2457_v9 = vadd.f32 %v364_v7, %v115_v19  ;;  %v2460_v10 = vadd.f32 %v437_v8, %v2429_v15 }
 0x119   :  { %v366_v11 = vpop.f32.mrf.mxu0  ;;  %v439_v12 = vpop.f32.mrf.mxu1 }
 0x11a   :  { %2838 = vst [vmem:[#allocation21_spill] sm:$0xff] %v2457_v9  ;;  %2839 = vst [vmem:[#allocation22_spill] sm:$0xff] %v2460_v10  ;;  %v2462_v16 = vadd.f32 %v366_v11, %v119_v23  ;;  %v2465_v21 = vadd.f32 %v439_v12, %v2435_v20 }
 0x11b   :  { %v370_v22 = vpop.f32.mrf.mxu0  ;;  %v443_v26 = vpop.f32.mrf.mxu1 }
 0x11c   :  { %2840 = vst [vmem:[#allocation23_spill] sm:$0xff] %v2462_v16  ;;  %2841 = vst [vmem:[#allocation24_spill] sm:$0xff] %v2465_v21  ;;  %v2467_v27 = vadd.f32 %v370_v22, %v115_v19  ;;  %v2470_v30 = vadd.f32 %v443_v26, %v2429_v15 }
 0x11d   :  { %v372_v31 = vpop.f32.mrf.mxu0  ;;  %v445_v44 = vpop.f32.mrf.mxu1 }
 0x11e   :  { %2842 = vst [vmem:[#allocation25_spill] sm:$0xff] %v2467_v27  ;;  %2843 = vst [vmem:[#allocation26_spill] sm:$0xff] %v2470_v30  ;;  %v2472_v53 = vadd.f32 %v372_v31, %v119_v23  ;;  %v2475_v7 = vadd.f32 %v445_v44, %v2435_v20 }
 0x11f   :  { %v374_v8 = vpop.f32.mrf.mxu0  ;;  %v447_v11 = vpop.f32.mrf.mxu1 }
 0x120   :  { %2844 = vst [vmem:[#allocation27_spill] sm:$0xff] %v2472_v53  ;;  %2845 = vst [vmem:[#allocation28_spill] sm:$0xff] %v2475_v7  ;;  %v2477_v0 = vadd.f32 %v374_v8, %v115_v19  ;;  %v2480_v12 = vadd.f32 %v447_v11, %v2429_v15 }
 0x121   :  { %v376_v21 = vpop.f32.mrf.mxu0  ;;  %v449_v22 = vpop.f32.mrf.mxu1 }
 0x122   :  { %2846 = vst [vmem:[#allocation29_spill] sm:$0xff] %v2477_v0  ;;  %2847 = vst [vmem:[#allocation30_spill] sm:$0xff] %v2480_v12  ;;  %v2482_v27 = vadd.f32 %v376_v21, %v119_v23  ;;  %v2485_v26 = vadd.f32 %v449_v22, %v2435_v20 }
 0x123   :  { %v380_v30 = vpop.f32.mrf.mxu0  ;;  %v453_v31 = vpop.f32.mrf.mxu1 }
 0x124   :  { %2848 = vst [vmem:[#allocation31_spill] sm:$0xff] %v2482_v27  ;;  %2849 = vst [vmem:[#allocation32_spill] sm:$0xff] %v2485_v26  ;;  %v2487_v53 = vadd.f32 %v380_v30, %v115_v19  ;;  %v2490_v44 = vadd.f32 %v453_v31, %v2429_v15 }
 0x125   :  { %v382_v7 = vpop.f32.mrf.mxu0  ;;  %v455_v8 = vpop.f32.mrf.mxu1 }
 0x126   :  { %2850 = vst [vmem:[#allocation33_spill] sm:$0xff] %v2487_v53  ;;  %2851 = vst [vmem:[#allocation34_spill] sm:$0xff] %v2490_v44  ;;  %v2492_v0 = vadd.f32 %v382_v7, %v119_v23  ;;  %v2495_v11 = vadd.f32 %v455_v8, %v2435_v20  ;;  %v351_v53 = vadd.f32 %v2425_v13, %v115_v19 }
 0x127   :  { %v384_v12 = vpop.f32.mrf.mxu0  ;;  %v457_v21 = vpop.f32.mrf.mxu1  ;;  %v353_v8 = vadd.f32 %v2431_v17, %v119_v23 }
 0x128   :  { %2852 = vst [vmem:[#allocation35_spill] sm:$0xff] %v2492_v0  ;;  %2853 = vst [vmem:[#allocation36_spill] sm:$0xff] %v2495_v11  ;;  %v2497_v27 = vadd.f32 %v384_v12, %v115_v19  ;;  %v2500_v22 = vadd.f32 %v457_v21, %v2429_v15  ;;  %v424_v19 = vadd.f32 %v2427_v14, %v2429_v15 }
 0x129   :  { %v386_v26 = vpop.f32.mrf.mxu0  ;;  %v459_v30 = vpop.f32.mrf.mxu1 }
 0x12a   :  { %2854 = vst [vmem:[#allocation37_spill] sm:$0xff] %v2497_v27  ;;  %2855 = vst [vmem:[#allocation38_spill] sm:$0xff] %v2500_v22  ;;  %v2503_v31 = vadd.f32 %v386_v26, %v119_v23  ;;  %v2506_v44 = vadd.f32 %v459_v30, %v2435_v20  ;;  %v426_v30 = vadd.f32 %v2433_v18, %v2435_v20 }
 0x12b   :  { %v727_v7 = vpop.f32.mrf.mxu0  ;;  %v768_v0 = vpop.f32.mrf.mxu1 }
 0x12c   :  { %v775_v11 = vadd.f32 %v727_v7, %v351_v53  ;;  %v777_v26 = vadd.f32 %v768_v0, %v424_v19 }
 0x12d   :  { %v729_v10 = vpop.f32.mrf.mxu0  ;;  %v770_v12 = vpop.f32.mrf.mxu1 }
 0x12e   :  { %v1774_v27 = vmul.f32 -1.442695, %v775_v11  ;;  %v776_v16 = vadd.f32 %v729_v10, %v353_v8  ;;  %v1776_v17 = vmul.f32 -1.442695, %v777_v26  ;;  %v778_v53 = vadd.f32 %v770_v12, %v426_v30 }
 0x12f   :  { %v731_v21 = vpop.f32.mrf.mxu0  ;;  %v772_v22 = vpop.f32.mrf.mxu1 }
 0x130   :  { %1933 = vpow2.f32 %v1774_v27  ;;  %v1775_v9 = vmul.f32 -1.442695, %v776_v16  ;;  %v2856_v21 = vmov 0  }
 0x131   :  { %v732_v6 = vpop.f32.mrf.mxu0  ;;  %v773_v13 = vpop.f32.mrf.mxu1 }
 0x132   :  { %1935 = vpow2.f32 %v1775_v9 }
 0x133   :  { %1937 = vpow2.f32 %v1776_v17 }
 0x13d   :  { %v1934_v23 = vpop.eup %1933 }
 0x13e   :  { %v788_v7 = vadd.f32 1.0, %v1934_v23 }
 0x13f   :  { %v1936_v11 = vpop.eup %1935 }
 0x140   :  { %1939 = vrcp.f32 %v788_v7  ;;  %v789_v10 = vadd.f32 1.0, %v1936_v11  ;;  %v1938_v6 = vpop.eup %1937 }
 0x141   :  { %1941 = vtanh.f32 %v778_v53  ;;  %v790_v22 = vadd.f32 1.0, %v1938_v6 }
 0x142   :  { %1943 = vrcp.f32 %v789_v10 }
 0x143   :  { %1945 = vrcp.f32 %v790_v22 }
 0x14d   :  { %v1940_v16 = vpop.eup %1939 }
 0x14e   :  { %v1942_v9 = vpop.eup %1941 }
 0x14f   :  { %v1944_v27 = vpop.eup %1943  ;;  %v799_v0 = vmul.f32 %v1942_v9, %v1940_v16 }
 0x150   :  { %v798_v14 = vmul.f32 0.0, %v1944_v27  ;;  %v1946_v18 = vpop.eup %1945 }
 0x152   :  { %v2513_v15 = vadd.f32 %v799_v0, %v798_v14 }
 0x154   :  { %1947 = vtanh.f32 %v2513_v15 }
 0x161   :  { %v1948_v20 = vpop.eup %1947 }
 0x162   :  { %v2516_v8 = vmul.f32 %v1948_v20, %v1946_v18 }
 0x164   :  { %v809_v12 = vpack.c.bf16 %v2516_v8, %v2516_v8 }
 0x166   :  { %843 = vmatmul.mubr.bf16.vlgmr.msra.gmra.mxu0 %v809_v12  ;;  %884 = vmatmul.mubr.bf16.vlgmr.msra.gmra.mxu1 %v809_v12 }
 0x167   :  { %929 = vmatpush1.bf16.msra.mxu0 %v2286_v36  ;;  %970 = vmatpush1.bf16.msra.mxu1 %v2288_v37 }
 0x168   :  { %930 = vmatprep.subr.bf16.mxu0 %v2292_v38  ;;  %971 = vmatprep.subr.bf16.mxu1 %v2294_v39 }
 0x169   :  { %960 = vmatprep.mubr.bf16.mxu0 %v2856_v21  ;;  %1001 = vmatprep.mubr.bf16.mxu1 %v2856_v21 }
 0x16b   :  { %931 = vmatpush1.bf16.msra.mxu0 %v2296_v40  ;;  %972 = vmatpush1.bf16.msra.mxu1 %v2300_v41 }
 0x16c   :  { %932 = vmatprep.subr.bf16.mxu0 %v2304_v42  ;;  %973 = vmatprep.subr.bf16.mxu1 %v2306_v43 }
 0x16f   :  { %933 = vmatpush1.bf16.msra.mxu0 %v2310_v45  ;;  %974 = vmatpush1.bf16.msra.mxu1 %v2312_v46 }
 0x170   :  { %934 = vmatprep.subr.bf16.mxu0 %v2316_v47  ;;  %975 = vmatprep.subr.bf16.mxu1 %v2320_v48 }
 0x173   :  { %935 = vmatpush1.bf16.msra.mxu0 %v2322_v49  ;;  %976 = vmatpush1.bf16.msra.mxu1 %v2324_v50 }
 0x174   :  { %936 = vmatprep.subr.bf16.mxu0 %v2328_v51  ;;  %977 = vmatprep.subr.bf16.mxu1 %v2332_v52 }
 0x177   :  { %937 = vmatpush1.bf16.msra.mxu0 %v2338_v54  ;;  %978 = vmatpush1.bf16.msra.mxu1 %v2340_v55 }
 0x178   :  { %938 = vmatprep.subr.bf16.mxu0 %v2344_v56  ;;  %979 = vmatprep.subr.bf16.mxu1 %v2346_v57 }
 0x17b   :  { %939 = vmatpush1.bf16.msra.mxu0 %v2350_v58  ;;  %980 = vmatpush1.bf16.msra.mxu1 %v2352_v59 }
 0x17c   :  { %940 = vmatprep.subr.bf16.mxu0 %v2356_v60  ;;  %981 = vmatprep.subr.bf16.mxu1 %v2358_v61 }
 0x17f   :  { %941 = vmatpush1.bf16.msra.mxu0 %v2364_v63  ;;  %982 = vmatpush1.bf16.msra.mxu1 %v2366_v1 }
 0x180   :  { %942 = vmatprep.subr.bf16.mxu0 %v2370_v2  ;;  %983 = vmatprep.subr.bf16.mxu1 %v2372_v3 }
 0x183   :  { %943 = vmatpush1.bf16.msra.mxu0 %v2376_v4  ;;  %984 = vmatpush1.bf16.msra.mxu1 %v2378_v5 }
 0x184   :  { %1046 = vmatprep.subr.bf16.mxu0 %v2282_v33  ;;  %1087 = vmatprep.subr.bf16.mxu1 %v2284_v34 }
 0x226   :  { %v844_v13 = vpop.f32.mrf.mxu0  ;;  %v885_v19 = vpop.f32.mrf.mxu1 }
 0x227   :  { %v892_v26 = vadd.f32 %v844_v13, %v2437_v24  ;;  %v894_v9 = vadd.f32 %v885_v19, %v2440_v25 }
 0x228   :  { %v846_v30 = vpop.f32.mrf.mxu0  ;;  %v887_v17 = vpop.f32.mrf.mxu1 }
 0x229   :  { %v1777_v23 = vmul.f32 -1.442695, %v892_v26  ;;  %v893_v53 = vadd.f32 %v846_v30, %v2442_v28  ;;  %v1779_v27 = vmul.f32 -1.442695, %v894_v9  ;;  %v895_v22 = vadd.f32 %v887_v17, %v2445_v29 }
 0x22a   :  { %v848_v7 = vpop.f32.mrf.mxu0  ;;  %v889_v11 = vpop.f32.mrf.mxu1 }
 0x22b   :  { %1949 = vpow2.f32 %v1777_v23  ;;  %v1778_v10 = vmul.f32 -1.442695, %v893_v53 }
 0x22c   :  { %v849_v6 = vpop.f32.mrf.mxu0  ;;  %v890_v16 = vpop.f32.mrf.mxu1 }
 0x22d   :  { %1951 = vpow2.f32 %v1778_v10 }
 0x22e   :  { %1953 = vpow2.f32 %v1779_v27 }
 0x22f   :  { %1955 = vtanh.f32 %v895_v22 }
 0x238   :  { %v1950_v14 = vpop.eup %1949 }
 0x239   :  { %v905_v0 = vadd.f32 1.0, %v1950_v14 }
 0x23a   :  { %v1952_v24 = vpop.eup %1951 }
 0x23b   :  { %1957 = vrcp.f32 %v905_v0  ;;  %v906_v18 = vadd.f32 1.0, %v1952_v24  ;;  %v1954_v28 = vpop.eup %1953 }
 0x23c   :  { %v1956_v20 = vpop.eup %1955  ;;  %v907_v30 = vadd.f32 1.0, %v1954_v28 }
 0x23d   :  { %1959 = vrcp.f32 %v906_v18 }
 0x23e   :  { %1961 = vrcp.f32 %v907_v30 }
 0x248   :  { %v1958_v12 = vpop.eup %1957 }
 0x249   :  { %v916_v13 = vmul.f32 %v1958_v12, %v1956_v20  ;;  %v2857_v20 = vld [vmem:[#allocation20_spill] sm:$0xff] }
 0x24a   :  { %v1960_v26 = vpop.eup %1959 }
 0x24b   :  { %v915_v23 = vmul.f32 %v1960_v26, %v2513_v15  ;;  %v1962_v29 = vpop.eup %1961 }
 0x24d   :  { %v2559_v25 = vadd.f32 %v916_v13, %v915_v23 }
 0x24f   :  { %1963 = vtanh.f32 %v2559_v25 }
 0x25c   :  { %v1964_v19 = vpop.eup %1963 }
 0x25d   :  { %v919_v17 = vmul.f32 %v1964_v19, %v1962_v29 }
 0x25f   :  { %v927_v53 = vpack.c.bf16 %v919_v17, %v919_v17  ;;  %v1801_v7 = vpack.c.bf16 %v919_v17, %v2516_v8 }
 0x261   :  { %961 = vmatmul.mubr.bf16.vlgmr.msra.gmra.mxu0 %v927_v53  ;;  %1002 = vmatmul.mubr.bf16.vlgmr.msra.gmra.mxu1 %v927_v53  ;;  %1802 = vst [vmem:[#allocation12] sm:$0xff] %v1801_v7  }
 0x262   :  { %1047 = vmatpush1.bf16.msra.mxu0 %v2286_v36  ;;  %1088 = vmatpush1.bf16.msra.mxu1 %v2288_v37 }
 0x263   :  { %1048 = vmatprep.subr.bf16.mxu0 %v2292_v38  ;;  %1089 = vmatprep.subr.bf16.mxu1 %v2294_v39 }
 0x264   :  { %1078 = vmatprep.mubr.bf16.mxu0 %v2856_v21  ;;  %1119 = vmatprep.mubr.bf16.mxu1 %v2856_v21 }
 0x266   :  { %1049 = vmatpush1.bf16.msra.mxu0 %v2296_v40  ;;  %1090 = vmatpush1.bf16.msra.mxu1 %v2300_v41 }
 0x267   :  { %1050 = vmatprep.subr.bf16.mxu0 %v2304_v42  ;;  %1091 = vmatprep.subr.bf16.mxu1 %v2306_v43 }
 0x26a   :  { %1051 = vmatpush1.bf16.msra.mxu0 %v2310_v45  ;;  %1092 = vmatpush1.bf16.msra.mxu1 %v2312_v46 }
 0x26b   :  { %1052 = vmatprep.subr.bf16.mxu0 %v2316_v47  ;;  %1093 = vmatprep.subr.bf16.mxu1 %v2320_v48 }
 0x26e   :  { %1053 = vmatpush1.bf16.msra.mxu0 %v2322_v49  ;;  %1094 = vmatpush1.bf16.msra.mxu1 %v2324_v50 }
 0x26f   :  { %1054 = vmatprep.subr.bf16.mxu0 %v2328_v51  ;;  %1095 = vmatprep.subr.bf16.mxu1 %v2332_v52 }
 0x272   :  { %1055 = vmatpush1.bf16.msra.mxu0 %v2338_v54  ;;  %1096 = vmatpush1.bf16.msra.mxu1 %v2340_v55 }
 0x273   :  { %1056 = vmatprep.subr.bf16.mxu0 %v2344_v56  ;;  %1097 = vmatprep.subr.bf16.mxu1 %v2346_v57 }
 0x276   :  { %1057 = vmatpush1.bf16.msra.mxu0 %v2350_v58  ;;  %1098 = vmatpush1.bf16.msra.mxu1 %v2352_v59 }
 0x277   :  { %1058 = vmatprep.subr.bf16.mxu0 %v2356_v60  ;;  %1099 = vmatprep.subr.bf16.mxu1 %v2358_v61 }
 0x27a   :  { %1059 = vmatpush1.bf16.msra.mxu0 %v2364_v63  ;;  %1100 = vmatpush1.bf16.msra.mxu1 %v2366_v1 }
 0x27b   :  { %1060 = vmatprep.subr.bf16.mxu0 %v2370_v2  ;;  %1101 = vmatprep.subr.bf16.mxu1 %v2372_v3 }
 0x27e   :  { %1061 = vmatpush1.bf16.msra.mxu0 %v2376_v4  ;;  %1102 = vmatpush1.bf16.msra.mxu1 %v2378_v5 }
 0x27f   :  { %1164 = vmatprep.subr.bf16.mxu0 %v2282_v33  ;;  %1205 = vmatprep.subr.bf16.mxu1 %v2284_v34 }
 0x321   :  { %v962_v15 = vpop.f32.mrf.mxu0  ;;  %v1003_v8 = vpop.f32.mrf.mxu1 }
 0x322   :  { %v1010_v11 = vadd.f32 %v962_v15, %v2447_v32  ;;  %v1012_v18 = vadd.f32 %v1003_v8, %v2450_v35 }
 0x323   :  { %v964_v10 = vpop.f32.mrf.mxu0  ;;  %v1005_v6 = vpop.f32.mrf.mxu1 }
 0x324   :  { %v1780_v16 = vmul.f32 -1.442695, %v1010_v11  ;;  %v1011_v9 = vadd.f32 %v964_v10, %v2452_v62  ;;  %v1782_v28 = vmul.f32 -1.442695, %v1012_v18  ;;  %v1013_v12 = vadd.f32 %v1005_v6, %v2857_v20 }
 0x325   :  { %v966_v27 = vpop.f32.mrf.mxu0  ;;  %v1007_v22 = vpop.f32.mrf.mxu1 }
 0x326   :  { %1965 = vpow2.f32 %v1780_v16  ;;  %v1781_v14 = vmul.f32 -1.442695, %v1011_v9  ;;  %v2858_v16 = vld [vmem:[#allocation21_spill] sm:$0xff] }
 0x327   :  { %v967_v0 = vpop.f32.mrf.mxu0  ;;  %v1008_v24 = vpop.f32.mrf.mxu1 }
 0x328   :  { %1967 = vpow2.f32 %v1781_v14  ;;  %v2859_v0 = vld [vmem:[#allocation23_spill] sm:$0xff] }
 0x329   :  { %1969 = vpow2.f32 %v1782_v28 }
 0x32a   :  { %1971 = vtanh.f32 %v1013_v12 }
 0x333   :  { %v1966_v13 = vpop.eup %1965 }
 0x334   :  { %v1023_v26 = vadd.f32 1.0, %v1966_v13 }
 0x335   :  { %v1968_v32 = vpop.eup %1967 }
 0x336   :  { %1973 = vrcp.f32 %v1023_v26  ;;  %v1024_v30 = vadd.f32 1.0, %v1968_v32  ;;  %v1970_v62 = vpop.eup %1969  ;;  %v2860_v26 = vld [vmem:[#allocation22_spill] sm:$0xff] }
 0x337   :  { %v1972_v23 = vpop.eup %1971  ;;  %v1025_v53 = vadd.f32 1.0, %v1970_v62 }
 0x338   :  { %1975 = vrcp.f32 %v1024_v30 }
 0x339   :  { %1977 = vrcp.f32 %v1025_v53 }
 0x343   :  { %v1974_v29 = vpop.eup %1973 }
 0x344   :  { %v1034_v19 = vmul.f32 %v1974_v29, %v1972_v23 }
 0x345   :  { %v1976_v17 = vpop.eup %1975 }
 0x346   :  { %v1033_v7 = vmul.f32 %v1976_v17, %v2559_v25  ;;  %v1978_v15 = vpop.eup %1977 }
 0x348   :  { %v2602_v35 = vadd.f32 %v1034_v19, %v1033_v7 }
 0x34a   :  { %1979 = vtanh.f32 %v2602_v35 }
 0x357   :  { %v1980_v8 = vpop.eup %1979 }
 0x358   :  { %v2605_v11 = vmul.f32 %v1980_v8, %v1978_v15 }
 0x35a   :  { %v1045_v10 = vpack.c.bf16 %v2605_v11, %v2605_v11 }
 0x35c   :  { %1079 = vmatmul.mubr.bf16.vlgmr.msra.gmra.mxu0 %v1045_v10  ;;  %1120 = vmatmul.mubr.bf16.vlgmr.msra.gmra.mxu1 %v1045_v10 }
 0x35d   :  { %1165 = vmatpush1.bf16.msra.mxu0 %v2286_v36  ;;  %1206 = vmatpush1.bf16.msra.mxu1 %v2288_v37 }
 0x35e   :  { %1166 = vmatprep.subr.bf16.mxu0 %v2292_v38  ;;  %1207 = vmatprep.subr.bf16.mxu1 %v2294_v39 }
 0x35f   :  { %1196 = vmatprep.mubr.bf16.mxu0 %v2856_v21  ;;  %1237 = vmatprep.mubr.bf16.mxu1 %v2856_v21 }
 0x361   :  { %1167 = vmatpush1.bf16.msra.mxu0 %v2296_v40  ;;  %1208 = vmatpush1.bf16.msra.mxu1 %v2300_v41 }
 0x362   :  { %1168 = vmatprep.subr.bf16.mxu0 %v2304_v42  ;;  %1209 = vmatprep.subr.bf16.mxu1 %v2306_v43 }
 0x365   :  { %1169 = vmatpush1.bf16.msra.mxu0 %v2310_v45  ;;  %1210 = vmatpush1.bf16.msra.mxu1 %v2312_v46 }
 0x366   :  { %1170 = vmatprep.subr.bf16.mxu0 %v2316_v47  ;;  %1211 = vmatprep.subr.bf16.mxu1 %v2320_v48 }
 0x369   :  { %1171 = vmatpush1.bf16.msra.mxu0 %v2322_v49  ;;  %1212 = vmatpush1.bf16.msra.mxu1 %v2324_v50 }
 0x36a   :  { %1172 = vmatprep.subr.bf16.mxu0 %v2328_v51  ;;  %1213 = vmatprep.subr.bf16.mxu1 %v2332_v52 }
 0x36d   :  { %1173 = vmatpush1.bf16.msra.mxu0 %v2338_v54  ;;  %1214 = vmatpush1.bf16.msra.mxu1 %v2340_v55 }
 0x36e   :  { %1174 = vmatprep.subr.bf16.mxu0 %v2344_v56  ;;  %1215 = vmatprep.subr.bf16.mxu1 %v2346_v57 }
 0x371   :  { %1175 = vmatpush1.bf16.msra.mxu0 %v2350_v58  ;;  %1216 = vmatpush1.bf16.msra.mxu1 %v2352_v59 }
 0x372   :  { %1176 = vmatprep.subr.bf16.mxu0 %v2356_v60  ;;  %1217 = vmatprep.subr.bf16.mxu1 %v2358_v61 }
 0x375   :  { %1177 = vmatpush1.bf16.msra.mxu0 %v2364_v63  ;;  %1218 = vmatpush1.bf16.msra.mxu1 %v2366_v1 }
 0x376   :  { %1178 = vmatprep.subr.bf16.mxu0 %v2370_v2  ;;  %1219 = vmatprep.subr.bf16.mxu1 %v2372_v3 }
 0x379   :  { %1179 = vmatpush1.bf16.msra.mxu0 %v2376_v4  ;;  %1220 = vmatpush1.bf16.msra.mxu1 %v2378_v5 }
 0x37a   :  { %1282 = vmatprep.subr.bf16.mxu0 %v2282_v33  ;;  %1323 = vmatprep.subr.bf16.mxu1 %v2284_v34  ;;  %v2861_v34 = vld [vmem:[#allocation24_spill] sm:$0xff] }
 0x41c   :  { %v1080_v25 = vpop.f32.mrf.mxu0  ;;  %v1121_v6 = vpop.f32.mrf.mxu1 }
 0x41d   :  { %v1128_v9 = vadd.f32 %v1080_v25, %v2858_v16  ;;  %v1130_v33 = vadd.f32 %v1121_v6, %v2860_v26 }
 0x41e   :  { %v1082_v27 = vpop.f32.mrf.mxu0  ;;  %v1123_v22 = vpop.f32.mrf.mxu1 }
 0x41f   :  { %v1783_v14 = vmul.f32 -1.442695, %v1128_v9  ;;  %v1129_v24 = vadd.f32 %v1082_v27, %v2859_v0  ;;  %v1785_v32 = vmul.f32 -1.442695, %v1130_v33  ;;  %v1131_v30 = vadd.f32 %v1123_v22, %v2861_v34 }
 0x420   :  { %v1084_v18 = vpop.f32.mrf.mxu0  ;;  %v1125_v28 = vpop.f32.mrf.mxu1 }
 0x421   :  { %1981 = vpow2.f32 %v1783_v14  ;;  %v1784_v20 = vmul.f32 -1.442695, %v1129_v24 }
 0x422   :  { %v1085_v12 = vpop.f32.mrf.mxu0  ;;  %v1126_v13 = vpop.f32.mrf.mxu1 }
 0x423   :  { %1983 = vpow2.f32 %v1784_v20 }
 0x424   :  { %1985 = vpow2.f32 %v1785_v32 }
 0x425   :  { %1987 = vtanh.f32 %v1131_v30 }
 0x42e   :  { %v1982_v62 = vpop.eup %1981 }
 0x42f   :  { %v1141_v23 = vadd.f32 1.0, %v1982_v62 }
 0x430   :  { %v1984_v29 = vpop.eup %1983 }
 0x431   :  { %1989 = vrcp.f32 %v1141_v23  ;;  %v1142_v19 = vadd.f32 1.0, %v1984_v29  ;;  %v1986_v17 = vpop.eup %1985 }
 0x432   :  { %v1988_v53 = vpop.eup %1987  ;;  %v1143_v10 = vadd.f32 1.0, %v1986_v17  ;;  %v2705_v17 = vld [vmem:[#allocation11 + $0xe8] ss:$16 sps:$4 sm:$0xff]  }
 0x433   :  { %1991 = vrcp.f32 %v1142_v19  ;;  %v2702_v19 = vld [vmem:[#allocation11 + $0xe0] ss:$16 sps:$4 sm:$0xff]  }
 0x434   :  { %1993 = vrcp.f32 %v1143_v10  ;;  %v2722_v10 = vld [vmem:[#allocation11 + $0xa4] ss:$16 sps:$4 sm:$0xff]  }
 0x43e   :  { %v1990_v7 = vpop.eup %1989 }
 0x43f   :  { %v1152_v15 = vmul.f32 %v1990_v7, %v1988_v53  ;;  %v2708_v53 = vld [vmem:[#allocation11 + $0xc4] ss:$16 sps:$4 sm:$0xff]   ;;  %v2711_v7 = vld [vmem:[#allocation11 + $0xcc] ss:$16 sps:$4 sm:$0xff]  }
 0x440   :  { %v1992_v8 = vpop.eup %1991 }
 0x441   :  { %v1151_v25 = vmul.f32 %v1992_v8, %v2602_v35  ;;  %v1994_v16 = vpop.eup %1993  ;;  %v2719_v8 = vld [vmem:[#allocation11 + $0xc8] ss:$16 sps:$4 sm:$0xff]  }
 0x443   :  { %v2648_v6 = vadd.f32 %v1152_v15, %v1151_v25  ;;  %v2716_v15 = vld [vmem:[#allocation11 + $0xc0] ss:$16 sps:$4 sm:$0xff]   ;;  %v2725_v25 = vld [vmem:[#allocation11 + $0xac] ss:$16 sps:$4 sm:$0xff]  }
 0x445   :  { %1995 = vtanh.f32 %v2648_v6 }
 0x452   :  { %v1996_v9 = vpop.eup %1995 }
 0x453   :  { %v1155_v27 = vmul.f32 %v1996_v9, %v1994_v16  ;;  %v2731_v16 = vld [vmem:[#allocation11 + $0xa8] ss:$16 sps:$4 sm:$0xff]   ;;  %v2734_v9 = vld [vmem:[#allocation11 + $0x84] ss:$16 sps:$4 sm:$0xff]  }
 0x455   :  { %v1163_v22 = vpack.c.bf16 %v1155_v27, %v1155_v27  ;;  %v1806_v14 = vpack.c.bf16 %v1155_v27, %v2605_v11  ;;  %v2737_v27 = vld [vmem:[#allocation11 + $0x8c] ss:$16 sps:$4 sm:$0xff]  }
 0x457   :  { %1197 = vmatmul.mubr.bf16.vlgmr.msra.gmra.mxu0 %v1163_v22  ;;  %1238 = vmatmul.mubr.bf16.vlgmr.msra.gmra.mxu1 %v1163_v22  ;;  %1818 = vst [vmem:[#allocation12 + $0x8] sm:$0xff] %v1806_v14   ;;  %v2740_v22 = vld [vmem:[#allocation11 + $0x80] ss:$16 sps:$4 sm:$0xff]   ;;  %v2743_v14 = vld [vmem:[#allocation11 + $0x88] ss:$16 sps:$4 sm:$0xff]  }
 0x458   :  { %1283 = vmatpush1.bf16.msra.mxu0 %v2286_v36  ;;  %1324 = vmatpush1.bf16.msra.mxu1 %v2288_v37  ;;  %v2684_v36 = vld [vmem:[#allocation11 + $0xe4] ss:$16 sps:$4 sm:$0xff]   ;;  %v2687_v37 = vld [vmem:[#allocation11 + $0xec] ss:$16 sps:$4 sm:$0xff]  }
 0x459   :  { %1284 = vmatprep.subr.bf16.mxu0 %v2292_v38  ;;  %1325 = vmatprep.subr.bf16.mxu1 %v2294_v39 }
 0x45a   :  { %1314 = vmatprep.mubr.bf16.mxu0 %v2856_v21  ;;  %1355 = vmatprep.mubr.bf16.mxu1 %v2856_v21 }
 0x45c   :  { %1285 = vmatpush1.bf16.msra.mxu0 %v2296_v40  ;;  %1326 = vmatpush1.bf16.msra.mxu1 %v2300_v41  ;;  %v2862_v40 = vld [vmem:[#allocation25_spill] sm:$0xff] }
 0x45d   :  { %1286 = vmatprep.subr.bf16.mxu0 %v2304_v42  ;;  %1327 = vmatprep.subr.bf16.mxu1 %v2306_v43 }
 0x460   :  { %1287 = vmatpush1.bf16.msra.mxu0 %v2310_v45  ;;  %1328 = vmatpush1.bf16.msra.mxu1 %v2312_v46  ;;  %v2863_v46 = vld [vmem:[#allocation27_spill] sm:$0xff] }
 0x461   :  { %1288 = vmatprep.subr.bf16.mxu0 %v2316_v47  ;;  %1329 = vmatprep.subr.bf16.mxu1 %v2320_v48 }
 0x464   :  { %1289 = vmatpush1.bf16.msra.mxu0 %v2322_v49  ;;  %1330 = vmatpush1.bf16.msra.mxu1 %v2324_v50 }
 0x465   :  { %1290 = vmatprep.subr.bf16.mxu0 %v2328_v51  ;;  %1331 = vmatprep.subr.bf16.mxu1 %v2332_v52 }
 0x468   :  { %1291 = vmatpush1.bf16.msra.mxu0 %v2338_v54  ;;  %1332 = vmatpush1.bf16.msra.mxu1 %v2340_v55  ;;  %v2864_v54 = vld [vmem:[#allocation26_spill] sm:$0xff] }
 0x469   :  { %1292 = vmatprep.subr.bf16.mxu0 %v2344_v56  ;;  %1333 = vmatprep.subr.bf16.mxu1 %v2346_v57  ;;  %v2865_v57 = vld [vmem:[#allocation28_spill] sm:$0xff] }
 0x46c   :  { %1293 = vmatpush1.bf16.msra.mxu0 %v2350_v58  ;;  %1334 = vmatpush1.bf16.msra.mxu1 %v2352_v59 }
 0x46d   :  { %1294 = vmatprep.subr.bf16.mxu0 %v2356_v60  ;;  %1335 = vmatprep.subr.bf16.mxu1 %v2358_v61 }
 0x470   :  { %1295 = vmatpush1.bf16.msra.mxu0 %v2364_v63  ;;  %1336 = vmatpush1.bf16.msra.mxu1 %v2366_v1 }
 0x471   :  { %1296 = vmatprep.subr.bf16.mxu0 %v2370_v2  ;;  %1337 = vmatprep.subr.bf16.mxu1 %v2372_v3 }
 0x474   :  { %1297 = vmatpush1.bf16.msra.mxu0 %v2376_v4  ;;  %1338 = vmatpush1.bf16.msra.mxu1 %v2378_v5 }
 0x475   :  { %1400 = vmatprep.subr.bf16.mxu0 %v2684_v36  ;;  %1441 = vmatprep.subr.bf16.mxu1 %v2687_v37 }
 0x517   :  { %v1198_v38 = vpop.f32.mrf.mxu0  ;;  %v1239_v39 = vpop.f32.mrf.mxu1 }
 0x518   :  { %v1246_v41 = vadd.f32 %v1198_v38, %v2862_v40  ;;  %v1248_v55 = vadd.f32 %v1239_v39, %v2864_v54  ;;  %v2746_v38 = vld [vmem:[#allocation11 + $0x64] ss:$16 sps:$4 sm:$0xff]   ;;  %v2749_v39 = vld [vmem:[#allocation11 + $0x6c] ss:$16 sps:$4 sm:$0xff]   ;;  %v2752_v40 = vld [vmem:[#allocation11 + $0x60] ss:$16 sps:$4 sm:$0xff]  }
 0x519   :  { %v1200_v42 = vpop.f32.mrf.mxu0  ;;  %v1241_v43 = vpop.f32.mrf.mxu1 }
 0x51a   :  { %v1786_v45 = vmul.f32 -1.442695, %v1246_v41  ;;  %v1247_v47 = vadd.f32 %v1200_v42, %v2863_v46  ;;  %v1788_v56 = vmul.f32 -1.442695, %v1248_v55  ;;  %v1249_v35 = vadd.f32 %v1241_v43, %v2865_v57  ;;  %v2755_v41 = vld [vmem:[#allocation11 + $0x68] ss:$16 sps:$4 sm:$0xff]  }
 0x51b   :  { %v1202_v48 = vpop.f32.mrf.mxu0  ;;  %v1243_v49 = vpop.f32.mrf.mxu1  ;;  %v2758_v42 = vld [vmem:[#allocation11 + $0x44] ss:$16 sps:$4 sm:$0xff]   ;;  %v2761_v43 = vld [vmem:[#allocation11 + $0x4c] ss:$16 sps:$4 sm:$0xff]  }
 0x51c   :  { %1997 = vpow2.f32 %v1786_v45  ;;  %v1787_v50 = vmul.f32 -1.442695, %v1247_v47 }
 0x51d   :  { %v1203_v51 = vpop.f32.mrf.mxu0  ;;  %v1244_v52 = vpop.f32.mrf.mxu1 }
 0x51e   :  { %1999 = vpow2.f32 %v1787_v50 }
 0x51f   :  { %2001 = vpow2.f32 %v1788_v56 }
 0x520   :  { %2003 = vtanh.f32 %v1249_v35 }
 0x529   :  { %v1998_v11 = vpop.eup %1997 }
 0x52a   :  { %v1259_v0 = vadd.f32 1.0, %v1998_v11 }
 0x52b   :  { %v2000_v24 = vpop.eup %1999 }
 0x52c   :  { %2005 = vrcp.f32 %v1259_v0  ;;  %v1260_v18 = vadd.f32 1.0, %v2000_v24  ;;  %v2002_v28 = vpop.eup %2001 }
 0x52d   :  { %v2004_v20 = vpop.eup %2003  ;;  %v1261_v33 = vadd.f32 1.0, %v2002_v28 }
 0x52e   :  { %2007 = vrcp.f32 %v1260_v18 }
 0x52f   :  { %2009 = vrcp.f32 %v1261_v33 }
 0x539   :  { %v2006_v12 = vpop.eup %2005 }
 0x53a   :  { %v1270_v13 = vmul.f32 %v2006_v12, %v2004_v20 }
 0x53b   :  { %v2008_v26 = vpop.eup %2007 }
 0x53c   :  { %v1269_v32 = vmul.f32 %v2008_v26, %v2648_v6  ;;  %v2010_v30 = vpop.eup %2009  ;;  %v2728_v6 = vld [vmem:[#allocation11 + $0xa0] ss:$16 sps:$4 sm:$0xff]  }
 0x53e   :  { %v2695_v34 = vadd.f32 %v1270_v13, %v1269_v32 }
 0x540   :  { %2011 = vtanh.f32 %v2695_v34 }
 0x54d   :  { %v2012_v62 = vpop.eup %2011 }
 0x54e   :  { %v2698_v23 = vmul.f32 %v2012_v62, %v2010_v30  ;;  %v2085_v30 = vld [vmem:[#allocation11 + $0x24] ss:$16 sps:$4 sm:$0xff]   ;;  %v2086_v62 = vld [vmem:[#allocation11 + $0x2c] ss:$16 sps:$4 sm:$0xff]  }
 0x550   :  { %v1281_v29 = vpack.c.bf16 %v2698_v23, %v2698_v23 }
 0x552   :  { %1315 = vmatmul.mubr.bf16.vlgmr.msra.gmra.mxu0 %v1281_v29  ;;  %1356 = vmatmul.mubr.bf16.vlgmr.msra.gmra.mxu1 %v1281_v29  ;;  %v2088_v29 = vld [vmem:[#allocation11 + $0x28] ss:$16 sps:$4 sm:$0xff]  }
 0x553   :  { %1401 = vmatpush1.bf16.msra.mxu0 %v2702_v19  ;;  %1442 = vmatpush1.bf16.msra.mxu1 %v2705_v17 }
 0x554   :  { %1402 = vmatprep.subr.bf16.mxu0 %v2708_v53  ;;  %1443 = vmatprep.subr.bf16.mxu1 %v2711_v7 }
 0x555   :  { %1432 = vmatprep.mubr.bf16.mxu0 %v2856_v21  ;;  %1473 = vmatprep.mubr.bf16.mxu1 %v2856_v21 }
 0x557   :  { %1403 = vmatpush1.bf16.msra.mxu0 %v2716_v15  ;;  %1444 = vmatpush1.bf16.msra.mxu1 %v2719_v8 }
 0x558   :  { %1404 = vmatprep.subr.bf16.mxu0 %v2722_v10  ;;  %1445 = vmatprep.subr.bf16.mxu1 %v2725_v25 }
 0x55b   :  { %1405 = vmatpush1.bf16.msra.mxu0 %v2728_v6  ;;  %1446 = vmatpush1.bf16.msra.mxu1 %v2731_v16 }
 0x55c   :  { %1406 = vmatprep.subr.bf16.mxu0 %v2734_v9  ;;  %1447 = vmatprep.subr.bf16.mxu1 %v2737_v27 }
 0x55f   :  { %1407 = vmatpush1.bf16.msra.mxu0 %v2740_v22  ;;  %1448 = vmatpush1.bf16.msra.mxu1 %v2743_v14 }
 0x560   :  { %1408 = vmatprep.subr.bf16.mxu0 %v2746_v38  ;;  %1449 = vmatprep.subr.bf16.mxu1 %v2749_v39 }
 0x563   :  { %1409 = vmatpush1.bf16.msra.mxu0 %v2752_v40  ;;  %1450 = vmatpush1.bf16.msra.mxu1 %v2755_v41 }
 0x564   :  { %1410 = vmatprep.subr.bf16.mxu0 %v2758_v42  ;;  %1451 = vmatprep.subr.bf16.mxu1 %v2761_v43 }
 0x567   :  { %1411 = vmatpush1.bf16.msra.mxu0 %v2350_v58  ;;  %1452 = vmatpush1.bf16.msra.mxu1 %v2352_v59 }
 0x568   :  { %1412 = vmatprep.subr.bf16.mxu0 %v2356_v60  ;;  %1453 = vmatprep.subr.bf16.mxu1 %v2358_v61  ;;  %v2866_v60 = vld [vmem:[#allocation29_spill] sm:$0xff] }
 0x56b   :  { %1413 = vmatpush1.bf16.msra.mxu0 %v2364_v63  ;;  %1454 = vmatpush1.bf16.msra.mxu1 %v2366_v1  ;;  %v2867_v1 = vld [vmem:[#allocation31_spill] sm:$0xff] }
 0x56c   :  { %1414 = vmatprep.subr.bf16.mxu0 %v2370_v2  ;;  %1455 = vmatprep.subr.bf16.mxu1 %v2372_v3 }
 0x56f   :  { %1415 = vmatpush1.bf16.msra.mxu0 %v2376_v4  ;;  %1456 = vmatpush1.bf16.msra.mxu1 %v2378_v5  ;;  %v2868_v5 = vld [vmem:[#allocation30_spill] sm:$0xff] }
 0x570   :  { %1518 = vmatprep.subr.bf16.mxu0 %v2684_v36  ;;  %1559 = vmatprep.subr.bf16.mxu1 %v2687_v37  ;;  %v2869_v37 = vld [vmem:[#allocation32_spill] sm:$0xff] }
 0x612   :  { %v1316_v58 = vpop.f32.mrf.mxu0  ;;  %v1357_v59 = vpop.f32.mrf.mxu1 }
 0x613   :  { %v1364_v61 = vadd.f32 %v1316_v58, %v2866_v60  ;;  %v1366_v36 = vadd.f32 %v1357_v59, %v2868_v5  ;;  %v2873_v59 = vld [vmem:[#allocation36_spill] sm:$0xff] }
 0x614   :  { %v1318_v45 = vpop.f32.mrf.mxu0  ;;  %v1359_v63 = vpop.f32.mrf.mxu1 }
 0x615   :  { %v1789_v46 = vmul.f32 -1.442695, %v1364_v61  ;;  %v1365_v47 = vadd.f32 %v1318_v45, %v2867_v1  ;;  %v1791_v50 = vmul.f32 -1.442695, %v1366_v36  ;;  %v1367_v51 = vadd.f32 %v1359_v63, %v2869_v37 }
 0x616   :  { %v1320_v2 = vpop.f32.mrf.mxu0  ;;  %v1361_v48 = vpop.f32.mrf.mxu1 }
 0x617   :  { %2013 = vpow2.f32 %v1789_v46  ;;  %v1790_v3 = vmul.f32 -1.442695, %v1365_v47 }
 0x618   :  { %v1321_v4 = vpop.f32.mrf.mxu0  ;;  %v1362_v49 = vpop.f32.mrf.mxu1 }
 0x619   :  { %2015 = vpow2.f32 %v1790_v3 }
 0x61a   :  { %2017 = vpow2.f32 %v1791_v50 }
 0x61b   :  { %2019 = vtanh.f32 %v1367_v51 }
 0x624   :  { %v2014_v52 = vpop.eup %2013 }
 0x625   :  { %v1377_v54 = vadd.f32 1.0, %v2014_v52 }
 0x626   :  { %v2016_v55 = vpop.eup %2015 }
 0x627   :  { %2021 = vrcp.f32 %v1377_v54  ;;  %v1378_v56 = vadd.f32 1.0, %v2016_v55  ;;  %v2018_v57 = vpop.eup %2017  ;;  %v2874_v55 = vld [vmem:[#allocation37_spill] sm:$0xff] }
 0x628   :  { %v2020_v35 = vpop.eup %2019  ;;  %v1379_v18 = vadd.f32 1.0, %v2018_v57 }
 0x629   :  { %2023 = vrcp.f32 %v1378_v56 }
 0x62a   :  { %2025 = vrcp.f32 %v1379_v18 }
 0x634   :  { %v2022_v11 = vpop.eup %2021 }
 0x635   :  { %v1388_v0 = vmul.f32 %v2022_v11, %v2020_v35 }
 0x636   :  { %v2024_v24 = vpop.eup %2023 }
 0x637   :  { %v1387_v28 = vmul.f32 %v2024_v24, %v2695_v34  ;;  %v2026_v12 = vpop.eup %2025  ;;  %v2084_v34 = vld [vmem:[#allocation11 + $0x48] ss:$16 sps:$4 sm:$0xff]  }
 0x639   :  { %v2781_v20 = vadd.f32 %v1388_v0, %v1387_v28 }
 0x63b   :  { %2027 = vtanh.f32 %v2781_v20 }
 0x648   :  { %v2028_v13 = vpop.eup %2027 }
 0x649   :  { %v1391_v26 = vmul.f32 %v2028_v13, %v2026_v12  ;;  %v2875_v13 = vld [vmem:[#allocation38_spill] sm:$0xff] }
 0x64b   :  { %v1399_v33 = vpack.c.bf16 %v1391_v26, %v1391_v26  ;;  %v1811_v32 = vpack.c.bf16 %v1391_v26, %v2698_v23  ;;  %v2087_v23 = vld [vmem:[#allocation11 + $0x20] ss:$16 sps:$4 sm:$0xff]  }
 0x64d   :  { %1433 = vmatmul.mubr.bf16.vlgmr.msra.gmra.mxu0 %v1399_v33  ;;  %1474 = vmatmul.mubr.bf16.vlgmr.msra.gmra.mxu1 %v1399_v33  ;;  %1819 = vst [vmem:[#allocation12 + $0x10] sm:$0xff] %v1811_v32  }
 0x64e   :  { %1519 = vmatpush1.bf16.msra.mxu0 %v2702_v19  ;;  %1560 = vmatpush1.bf16.msra.mxu1 %v2705_v17  ;;  %v2089_v19 = vld [vmem:[#allocation11 + $0x4] ss:$16 sps:$4 sm:$0xff]   ;;  %v2090_v17 = vld [vmem:[#allocation11 + $0xc] ss:$16 sps:$4 sm:$0xff]  }
 0x64f   :  { %1520 = vmatprep.subr.bf16.mxu0 %v2708_v53  ;;  %1561 = vmatprep.subr.bf16.mxu1 %v2711_v7  ;;  %v2091_v53 = vld [vmem:[#allocation11] ss:$16 sps:$4 sm:$0xff]   ;;  %v2092_v7 = vld [vmem:[#allocation11 + $0x8] ss:$16 sps:$4 sm:$0xff]  }
 0x650   :  { %1550 = vmatprep.mubr.bf16.mxu0 %v2856_v21  ;;  %1591 = vmatprep.mubr.bf16.mxu1 %v2856_v21  ;;  %v2083_v21 = vld [vmem:[#allocation11 + $0x40] ss:$16 sps:$4 sm:$0xff]  }
 0x652   :  { %1521 = vmatpush1.bf16.msra.mxu0 %v2716_v15  ;;  %1562 = vmatpush1.bf16.msra.mxu1 %v2719_v8 }
 0x653   :  { %1522 = vmatprep.subr.bf16.mxu0 %v2722_v10  ;;  %1563 = vmatprep.subr.bf16.mxu1 %v2725_v25  ;;  %v2870_v10 = vld [vmem:[#allocation33_spill] sm:$0xff] }
 0x656   :  { %1523 = vmatpush1.bf16.msra.mxu0 %v2728_v6  ;;  %1564 = vmatpush1.bf16.msra.mxu1 %v2731_v16 }
 0x657   :  { %1524 = vmatprep.subr.bf16.mxu0 %v2734_v9  ;;  %1565 = vmatprep.subr.bf16.mxu1 %v2737_v27  ;;  %v2871_v27 = vld [vmem:[#allocation35_spill] sm:$0xff] }
 0x65a   :  { %1525 = vmatpush1.bf16.msra.mxu0 %v2740_v22  ;;  %1566 = vmatpush1.bf16.msra.mxu1 %v2743_v14 }
 0x65b   :  { %1526 = vmatprep.subr.bf16.mxu0 %v2746_v38  ;;  %1567 = vmatprep.subr.bf16.mxu1 %v2749_v39 }
 0x65e   :  { %1527 = vmatpush1.bf16.msra.mxu0 %v2752_v40  ;;  %1568 = vmatpush1.bf16.msra.mxu1 %v2755_v41 }
 0x65f   :  { %1528 = vmatprep.subr.bf16.mxu0 %v2758_v42  ;;  %1569 = vmatprep.subr.bf16.mxu1 %v2761_v43  ;;  %v2872_v42 = vld [vmem:[#allocation34_spill] sm:$0xff] }
 0x662   :  { %1529 = vmatpush1.bf16.msra.mxu0 %v2083_v21  ;;  %1570 = vmatpush1.bf16.msra.mxu1 %v2084_v34 }
 0x663   :  { %1530 = vmatprep.subr.bf16.mxu0 %v2085_v30  ;;  %1571 = vmatprep.subr.bf16.mxu1 %v2086_v62 }
 0x666   :  { %1531 = vmatpush1.bf16.msra.mxu0 %v2087_v23  ;;  %1572 = vmatpush1.bf16.msra.mxu1 %v2088_v29 }
 0x667   :  { %1532 = vmatprep.subr.bf16.mxu0 %v2089_v19  ;;  %1573 = vmatprep.subr.bf16.mxu1 %v2090_v17 }
 0x66a   :  { %1533 = vmatpush1.bf16.msra.mxu0 %v2091_v53  ;;  %1574 = vmatpush1.bf16.msra.mxu1 %v2092_v7 }
 0x70d   :  { %v1434_v15 = vpop.f32.mrf.mxu0  ;;  %v1475_v8 = vpop.f32.mrf.mxu1 }
 0x70e   :  { %v1482_v25 = vadd.f32 %v1434_v15, %v2870_v10  ;;  %v1484_v43 = vadd.f32 %v1475_v8, %v2872_v42 }
 0x70f   :  { %v1436_v6 = vpop.f32.mrf.mxu0  ;;  %v1477_v16 = vpop.f32.mrf.mxu1 }
 0x710   :  { %v1792_v9 = vmul.f32 -1.442695, %v1482_v25  ;;  %v1483_v22 = vadd.f32 %v1436_v6, %v2871_v27  ;;  %v1794_v58 = vmul.f32 -1.442695, %v1484_v43  ;;  %v1485_v60 = vadd.f32 %v1477_v16, %v2873_v59 }
 0x711   :  { %v1438_v14 = vpop.f32.mrf.mxu0  ;;  %v1479_v38 = vpop.f32.mrf.mxu1 }
 0x712   :  { %2029 = vpow2.f32 %v1792_v9  ;;  %v1793_v39 = vmul.f32 -1.442695, %v1483_v22 }
 0x713   :  { %v1439_v40 = vpop.f32.mrf.mxu0  ;;  %v1480_v41 = vpop.f32.mrf.mxu1 }
 0x714   :  { %2031 = vpow2.f32 %v1793_v39 }
 0x715   :  { %2033 = vpow2.f32 %v1794_v58 }
 0x716   :  { %2035 = vtanh.f32 %v1485_v60 }
 0x71f   :  { %v2030_v61 = vpop.eup %2029 }
 0x720   :  { %v1495_v45 = vadd.f32 1.0, %v2030_v61 }
 0x721   :  { %v2032_v63 = vpop.eup %2031 }
 0x722   :  { %2037 = vrcp.f32 %v1495_v45  ;;  %v1496_v46 = vadd.f32 1.0, %v2032_v63  ;;  %v2034_v1 = vpop.eup %2033 }
 0x723   :  { %v2036_v47 = vpop.eup %2035  ;;  %v1497_v4 = vadd.f32 1.0, %v2034_v1 }
 0x724   :  { %2039 = vrcp.f32 %v1496_v46 }
 0x725   :  { %2041 = vrcp.f32 %v1497_v4 }
 0x72f   :  { %v2038_v2 = vpop.eup %2037 }
 0x730   :  { %v1506_v48 = vmul.f32 %v2038_v2, %v2036_v47 }
 0x731   :  { %v2040_v3 = vpop.eup %2039 }
 0x732   :  { %v1505_v49 = vmul.f32 %v2040_v3, %v2781_v20  ;;  %v2042_v36 = vpop.eup %2041 }
 0x734   :  { %v1507_v5 = vadd.f32 %v1506_v48, %v1505_v49 }
 0x736   :  { %2043 = vtanh.f32 %v1507_v5 }
 0x743   :  { %v2044_v50 = vpop.eup %2043 }
 0x744   :  { %v1509_v37 = vmul.f32 %v2044_v50, %v2042_v36 }
 0x746   :  { %v1517_v51 = vpack.c.bf16 %v1509_v37, %v1509_v37 }
 0x748   :  { %1551 = vmatmul.mubr.bf16.vlgmr.msra.gmra.mxu0 %v1517_v51  ;;  %1592 = vmatmul.mubr.bf16.vlgmr.msra.gmra.mxu1 %v1517_v51 }
 0x808   :  { %v1552_v52 = vpop.f32.mrf.mxu0  ;;  %v1593_v54 = vpop.f32.mrf.mxu1 }
 0x809   :  { %v1600_v56 = vadd.f32 %v1552_v52, %v2874_v55  ;;  %v1602_v26 = vadd.f32 %v1593_v54, %v2875_v13 }
 0x80a   :  { %v1554_v57 = vpop.f32.mrf.mxu0  ;;  %v1595_v35 = vpop.f32.mrf.mxu1 }
 0x80b   :  { %v1795_v11 = vmul.f32 -1.442695, %v1600_v56  ;;  %v1601_v0 = vadd.f32 %v1554_v57, %v2503_v31  ;;  %v1797_v33 = vmul.f32 -1.442695, %v1602_v26  ;;  %v1603_v32 = vadd.f32 %v1595_v35, %v2506_v44 }
 0x80c   :  { %v1556_v24 = vpop.f32.mrf.mxu0  ;;  %v1597_v18 = vpop.f32.mrf.mxu1 }
 0x80d   :  { %2045 = vpow2.f32 %v1795_v11  ;;  %v1796_v28 = vmul.f32 -1.442695, %v1601_v0 }
 0x80e   :  { %v1557_v20 = vpop.f32.mrf.mxu0  ;;  %v1598_v12 = vpop.f32.mrf.mxu1 }
 0x80f   :  { %2047 = vpow2.f32 %v1796_v28 }
 0x810   :  { %2049 = vpow2.f32 %v1797_v33 }
 0x811   :  { %2051 = vtanh.f32 %v1603_v32 }
 0x81a   :  { %v2046_v21 = vpop.eup %2045 }
 0x81b   :  { %v1613_v34 = vadd.f32 1.0, %v2046_v21 }
 0x81c   :  { %v2048_v30 = vpop.eup %2047 }
 0x81d   :  { %2053 = vrcp.f32 %v1613_v34  ;;  %v1614_v62 = vadd.f32 1.0, %v2048_v30  ;;  %v2050_v31 = vpop.eup %2049 }
 0x81e   :  { %v2052_v23 = vpop.eup %2051  ;;  %v1615_v53 = vadd.f32 1.0, %v2050_v31 }
 0x81f   :  { %2055 = vrcp.f32 %v1614_v62 }
 0x820   :  { %2057 = vrcp.f32 %v1615_v53 }
 0x82a   :  { %v2054_v29 = vpop.eup %2053 }
 0x82b   :  { %v1624_v19 = vmul.f32 %v2054_v29, %v2052_v23 }
 0x82c   :  { %v2056_v17 = vpop.eup %2055 }
 0x82d   :  { %v1623_v7 = vmul.f32 %v2056_v17, %v1507_v5  ;;  %v2058_v44 = vpop.eup %2057 }
 0x82f   :  { %v1625_v15 = vadd.f32 %v1624_v19, %v1623_v7 }
 0x831   :  { %1660 = vst [vmem:[#allocation15] sm:$0xff] %v1625_v15  ;;  %2059 = vtanh.f32 %v1625_v15 }
 0x83e   :  { %v2060_v8 = vpop.eup %2059 }
 0x83f   :  { %v1627_v10 = vmul.f32 %v2060_v8, %v2058_v44 }
 0x841   :  { %v1816_v25 = vpack.c.bf16 %v1627_v10, %v1509_v37  ;;  %1659 = vst [vmem:[#allocation13] sm:$0xff] %v1627_v10 }
 0x842   :  { %2164 = shalt.err (!%p2161_p5)
}
 0x843   :  { %1682 = dma.vmem_to_hbm [thread:$0]  %s1680_s15, 128, %s2833_s5, [#allocation14]   ;;  %1820 = vst [vmem:[#allocation12 + $0x18] sm:$0xff] %v1816_v25  }
 0x844   :  { %s2173_s23 = scalar_lea.vmem %s1690_s17, 128  ;;  %p2178_p7 = scmp.lt.s32.totalorder %s1690_s17, %s1690_s17 }
 0x845   :  { %p2174_p6 = scmp.ne.s32.totalorder %s1690_s17, %s2173_s23  ;;  %p2179_p8 = scmp.lt.s32.totalorder %s2173_s23, %s2173_s23 }
 0x847   :  { %p2180_p9 = por %p2179_p8, %p2178_p7 }
 0x849   :  { %p2181_p10 = pnand %p2180_p9, %p2174_p6 }
 0x84b   :  { %2184 = shalt.err (!%p2181_p10)
}
 0x84c   :  { %1692 = dma.vmem_to_hbm [thread:$0]  %s1690_s17, 128, %s2834_s6, [#allocation14]  }
 0x84d   :  { %s2193_s26 = scalar_lea.vmem %s1667_s19, 512  ;;  %p2198_p12 = scmp.lt.s32.totalorder %s1667_s19, %s1667_s19 }
 0x84e   :  { %p2194_p11 = scmp.ne.s32.totalorder %s1667_s19, %s2193_s26  ;;  %p2199_p13 = scmp.lt.s32.totalorder %s2193_s26, %s2193_s26 }
 0x850   :  { %p2200_p0 = por %p2199_p13, %p2198_p12 }
 0x852   :  { %p2201_p1 = pnand %p2200_p0, %p2194_p11 }
 0x854   :  { %2204 = shalt.err (!%p2201_p1)
}
 0x855   :  { %1672 = dma.vmem_to_hbm [thread:$0]  %s1667_s19, 512, %s2832_s4, [#allocation8], %s2225_s7, %s2225_s7, %s2226_s8  }
 0x856   :  { %2217 = dma.done.wait [#allocation8], 512  }
 0x857   :  { %2218 = vsyncadd [#allocation8], 4294966784 }
 0x858   :  { %2219 = dma.done.wait [#allocation14], 256  }
 0x859   :  { %2220 = vsyncadd [#allocation14], 4294967040 }
 0x85a   :  { %1702 = vsyncpa [#allocation7], 1 }
 0x85b   :  { %1703 = vsyncpa [#allocation10], 1 }
 0x85c   :  { %1704 = vsyncpa [#allocation8], 1 }
 0x85d   :  { %1705 = vsyncpa [#allocation14], 1 }

</bundles_post_ra>
